<compile_context>
chip_gen: v7x
topology: tpu7x:2x2x1
jax: 0.10.0
libtpu: 0.0.40
codegen_flags: <defaults>
</compile_context>

<pallas_src>
import jax
import jax.numpy as jnp
from jax.experimental import pallas as pl
from jax.experimental.pallas import tpu as pltpu

EPS = 1e-5


def _linear_bn_relu(x_bf16, w_bf16, gamma, beta):
    """bf16 matmul (f32 MXU accum) -> fused train-mode BatchNorm1d -> ReLU -> bf16.

    The Linear bias is intentionally omitted: train-mode BN subtracts the batch
    mean, which cancels the bias exactly, so forward semantics are unchanged.
    """
    h = jnp.dot(x_bf16, w_bf16, preferred_element_type=jnp.float32)   # (B, dout) f32
    inv_b = jnp.float32(1.0 / h.shape[0])
    mean = jnp.sum(h, axis=0, keepdims=True) * inv_b                  # XLU reduce
    meansq = jnp.sum(h * h, axis=0, keepdims=True) * inv_b
    var = jnp.maximum(meansq - mean * mean, 0.0)                      # biased batch variance
    scale = gamma * jax.lax.rsqrt(var + EPS)                          # EUP rsqrt
    shift = beta - mean * scale
    # Single FMA + ReLU pass; emit bf16 directly so the next matmul needs no
    # separate cast pass over the activations.
    return jnp.maximum(h * scale + shift, 0.0).astype(jnp.bfloat16)


def generator_kernel(z_ref, w1_ref, aux_ref,
                     w2_hbm, w3_hbm, w4_hbm,
                     out_ref,
                     w2_buf, w3_buf, w4_buf, sem):
    # Kick off layer-2/3/4 weight fetches immediately so the HBM->VMEM DMAs
    # overlap the earlier layers' compute.
    cp2 = pltpu.make_async_copy(w2_hbm, w2_buf, sem.at[0])
    cp3 = pltpu.make_async_copy(w3_hbm, w3_buf, sem.at[1])
    cp4 = pltpu.make_async_copy(w4_hbm, w4_buf, sem.at[2])
    cp2.start()
    cp3.start()
    cp4.start()

    d1 = w1_ref.shape[1]
    d2 = w2_buf.shape[1]
    d3 = w3_buf.shape[1]
    d4 = out_ref.shape[1]

    # Packed per-layer vectors: one (8, P) block, loaded once, sliced as values
    # (static, 128-aligned lane slices -> plain vreg selects).
    aux = aux_ref[...]
    g1, be1 = aux[0:1, :d1], aux[1:2, :d1]
    g2, be2 = aux[2:3, :d2], aux[3:4, :d2]
    g3, be3 = aux[4:5, :d3], aux[5:6, :d3]
    b4 = aux[6:7, :d4]

    # Layer 1 (w1 is tiny and needed right away -> auto-DMA'd by Pallas).
    h = _linear_bn_relu(z_ref[...].astype(jnp.bfloat16), w1_ref[...], g1, be1)

    cp2.wait()
    h = _linear_bn_relu(h, w2_buf[...], g2, be2)

    cp3.wait()
    h = _linear_bn_relu(h, w3_buf[...], g3, be3)

    cp4.wait()
    # Final Linear (no BN / ReLU), lane-dense padded output.
    out_ref[...] = (jnp.dot(h, w4_buf[...], preferred_element_type=jnp.float32)
                    + b4)


def _pad_to_128(n):
    return max(128, ((n + 127) // 128) * 128)


def deeper_generator(z, params):
    B = z.shape[0]
    d1 = params["w1"].shape[1]
    d2 = params["w2"].shape[1]
    d3 = params["w3"].shape[1]
    out_dim = params["w4"].shape[1]
    out_pad = _pad_to_128(out_dim)                     # lane-dense output width
    P = _pad_to_128(max(d1, d2, d3, out_pad))          # packed-vector block width

    # bf16 weights: halves the dominant HBM->VMEM byte count and is the native
    # MXU fast path.  BN affine params / final bias stay f32.
    w1 = params["w1"].astype(jnp.bfloat16)
    w2 = params["w2"].astype(jnp.bfloat16)
    w3 = params["w3"].astype(jnp.bfloat16)
    w4 = jnp.zeros((params["w4"].shape[0], out_pad), jnp.bfloat16)
    w4 = w4.at[:, :out_dim].set(params["w4"].astype(jnp.bfloat16))

    # Pack gamma/beta (layers 1-3) and the final bias into one (8, P) block.
    # Linear biases b1..b3 are folded out by train-mode BatchNorm.
    aux = jnp.zeros((8, P), jnp.float32)
    aux = aux.at[0, :d1].set(params["g1"][0]).at[1, :d1].set(params["be1"][0])
    aux = aux.at[2, :d2].set(params["g2"][0]).at[3, :d2].set(params["be2"][0])
    aux = aux.at[4, :d3].set(params["g3"][0]).at[5, :d3].set(params["be3"][0])
    aux = aux.at[6, :out_dim].set(params["b4"][0])

    vmem = pl.BlockSpec(memory_space=pltpu.MemorySpace.VMEM)
    hbm = pl.BlockSpec(memory_space=pl.ANY)   # manual overlapped DMA in-kernel

    out = pl.pallas_call(
        generator_kernel,
        out_shape=jax.ShapeDtypeStruct((B, out_pad), jnp.float32),
        in_specs=[vmem, vmem, vmem, hbm, hbm, hbm],
        out_specs=vmem,
        scratch_shapes=[
            pltpu.VMEM(w2.shape, jnp.bfloat16),   # prefetch buffers
            pltpu.VMEM(w3.shape, jnp.bfloat16),
            pltpu.VMEM(w4.shape, jnp.bfloat16),
            pltpu.SemaphoreType.DMA((3,)),
        ],
        compiler_params=pltpu.CompilerParams(
            # Working set (weights + (B,512) activations + scratch) is ~2 MiB
            # at B=128; 32 MiB leaves headroom on v5e/v6e and fits v7x's 64 MiB.
            vmem_limit_bytes=32 * 1024 * 1024,
        ),
    )(z, w1, aux, w2, w3, w4)
    return out[:, :out_dim]


def init_params(key, latent_dim, out_dim):
    """PyTorch-default-style init (uniform(-1/sqrt(fan_in), 1/sqrt(fan_in)))."""
    dims = [(latent_dim, 512), (512, 512), (512, 256), (256, out_dim)]
    params = {}
    keys = jax.random.split(key, 8)
    for i, (din, dout) in enumerate(dims, start=1):
        kw, kb = keys[2 * (i - 1)], keys[2 * (i - 1) + 1]
        bound = 1.0 / jnp.sqrt(jnp.float32(din))
        params[f"w{i}"] = jax.random.uniform(kw, (din, dout), jnp.float32, -bound, bound)
        params[f"b{i}"] = jax.random.uniform(kb, (1, dout), jnp.float32, -bound, bound)
        if i < 4:  # BatchNorm affine params for the first 3 blocks
            params[f"g{i}"] = jnp.ones((1, dout), jnp.float32)
            params[f"be{i}"] = jnp.zeros((1, dout), jnp.float32)
    return params


def reference_forward(z, p):
    """Pure-JAX mirror of the PyTorch forward (train-mode BatchNorm), using the
    same bf16 matmul operands / f32 accumulation as the kernel, but with the
    textbook formulation (explicit bias, two-pass variance)."""
    def dot_bf16(x, w):
        return jnp.dot(x.astype(jnp.bfloat16), w.astype(jnp.bfloat16),
                       preferred_element_type=jnp.float32)

    h = z
    for i in (1, 2, 3):
        h = dot_bf16(h, p[f"w{i}"]) + p[f"b{i}"]
        mean = jnp.mean(h, axis=0, keepdims=True)
        var = jnp.mean((h - mean) ** 2, axis=0, keepdims=True)
        h = (h - mean) / jnp.sqrt(var + EPS) * p[f"g{i}"] + p[f"be{i}"]
        h = jnp.maximum(h, 0.0)
    return dot_bf16(h, p["w4"]) + p["b4"]


if __name__ == "__main__":
    latent_dim, out_dim, batch = 32, 16, 128   # batch is a multiple of 128
    key = jax.random.PRNGKey(0)
    kz, kp = jax.random.split(key)
    z = jax.random.normal(kz, (batch, latent_dim), jnp.float32)
    params = init_params(kp, latent_dim, out_dim)

    gen = jax.jit(deeper_generator)
    out = jax.block_until_ready(gen(z, params))

    ref = reference_forward(z, params)
    assert out.shape == (batch, out_dim)
    max_err = float(jnp.max(jnp.abs(out - ref)))
    assert jnp.allclose(out, ref, atol=2e-2, rtol=2e-2), f"max abs err {max_err}"

    print("KERNEL_OK")
</pallas_src>

<mosaic_0001>
module attributes {stable_mosaic.version = 11 : i64} {
  func.func @generator_kernel(%arg0: memref<128x32xf32, #tpu.memory_space<vmem>>, %arg1: memref<32x512xbf16, #tpu.memory_space<vmem>>, %arg2: memref<8x512xf32, #tpu.memory_space<vmem>>, %arg3: memref<512x512xbf16, #tpu.memory_space<any>>, %arg4: memref<512x256xbf16, #tpu.memory_space<any>>, %arg5: memref<256x128xbf16, #tpu.memory_space<any>>, %arg6: memref<128x128xf32, #tpu.memory_space<vmem>>, %arg7: memref<512x512xbf16, #tpu.memory_space<vmem>>, %arg8: memref<512x256xbf16, #tpu.memory_space<vmem>>, %arg9: memref<256x128xbf16, #tpu.memory_space<vmem>>, %arg10: memref<3x!tpu.dma_semaphore, #tpu.memory_space<semaphore_mem>>) attributes {dimension_semantics = [], scalar_prefetch = 0 : i64, scratch_operands = 4 : i64, tpu.core_type = #tpu.core_type<tc>} {
    %c0_i32 = arith.constant 0 : i32
    %0 = tpu.memref_slice %arg10[%c0_i32] : memref<3x!tpu.dma_semaphore, #tpu.memory_space<semaphore_mem>> -> memref<1x!tpu.dma_semaphore, #tpu.memory_space<semaphore_mem>>
    %1 = tpu.memref_squeeze %0 : memref<1x!tpu.dma_semaphore, #tpu.memory_space<semaphore_mem>> -> memref<!tpu.dma_semaphore, #tpu.memory_space<semaphore_mem>>
    tpu.enqueue_dma source(%arg3 : memref<512x512xbf16, #tpu.memory_space<any>>) target(%arg7 : memref<512x512xbf16, #tpu.memory_space<vmem>>) target_semaphore(%1 : memref<!tpu.dma_semaphore, #tpu.memory_space<semaphore_mem>>)
    %c1_i32 = arith.constant 1 : i32
    %2 = tpu.memref_slice %arg10[%c1_i32] : memref<3x!tpu.dma_semaphore, #tpu.memory_space<semaphore_mem>> -> memref<1x!tpu.dma_semaphore, #tpu.memory_space<semaphore_mem>>
    %3 = tpu.memref_squeeze %2 : memref<1x!tpu.dma_semaphore, #tpu.memory_space<semaphore_mem>> -> memref<!tpu.dma_semaphore, #tpu.memory_space<semaphore_mem>>
    tpu.enqueue_dma source(%arg4 : memref<512x256xbf16, #tpu.memory_space<any>>) target(%arg8 : memref<512x256xbf16, #tpu.memory_space<vmem>>) target_semaphore(%3 : memref<!tpu.dma_semaphore, #tpu.memory_space<semaphore_mem>>)
    %c2_i32 = arith.constant 2 : i32
    %4 = tpu.memref_slice %arg10[%c2_i32] : memref<3x!tpu.dma_semaphore, #tpu.memory_space<semaphore_mem>> -> memref<1x!tpu.dma_semaphore, #tpu.memory_space<semaphore_mem>>
    %5 = tpu.memref_squeeze %4 : memref<1x!tpu.dma_semaphore, #tpu.memory_space<semaphore_mem>> -> memref<!tpu.dma_semaphore, #tpu.memory_space<semaphore_mem>>
    tpu.enqueue_dma source(%arg5 : memref<256x128xbf16, #tpu.memory_space<any>>) target(%arg9 : memref<256x128xbf16, #tpu.memory_space<vmem>>) target_semaphore(%5 : memref<!tpu.dma_semaphore, #tpu.memory_space<semaphore_mem>>)
    %c0 = arith.constant 0 : index
    %c0_0 = arith.constant 0 : index
    %6 = vector.load %arg2[%c0, %c0_0] : memref<8x512xf32, #tpu.memory_space<vmem>>, vector<8x512xf32>
    %7 = vector.extract_strided_slice %6 {offsets = [0, 0], sizes = [1, 512], strides = [1, 1]} : vector<8x512xf32> to vector<1x512xf32>
    %8 = vector.extract_strided_slice %6 {offsets = [1, 0], sizes = [1, 512], strides = [1, 1]} : vector<8x512xf32> to vector<1x512xf32>
    %9 = vector.extract_strided_slice %6 {offsets = [2, 0], sizes = [1, 512], strides = [1, 1]} : vector<8x512xf32> to vector<1x512xf32>
    %10 = vector.extract_strided_slice %6 {offsets = [3, 0], sizes = [1, 512], strides = [1, 1]} : vector<8x512xf32> to vector<1x512xf32>
    %11 = vector.extract_strided_slice %6 {offsets = [4, 0], sizes = [1, 256], strides = [1, 1]} : vector<8x512xf32> to vector<1x256xf32>
    %12 = vector.extract_strided_slice %6 {offsets = [5, 0], sizes = [1, 256], strides = [1, 1]} : vector<8x512xf32> to vector<1x256xf32>
    %13 = vector.extract_strided_slice %6 {offsets = [6, 0], sizes = [1, 128], strides = [1, 1]} : vector<8x512xf32> to vector<1x128xf32>
    %c0_1 = arith.constant 0 : index
    %c0_2 = arith.constant 0 : index
    %14 = vector.load %arg0[%c0_1, %c0_2] : memref<128x32xf32, #tpu.memory_space<vmem>>, vector<128x32xf32>
    %15 = arith.truncf %14 : vector<128x32xf32> to vector<128x32xbf16>
    %c0_3 = arith.constant 0 : index
    %c0_4 = arith.constant 0 : index
    %16 = vector.load %arg1[%c0_3, %c0_4] : memref<32x512xbf16, #tpu.memory_space<vmem>>, vector<32x512xbf16>
    %cst = arith.constant dense<0.000000e+00> : vector<128x512xf32>
    %17 = tpu.matmul %15, %16, %cst {dimension_numbers = #tpu.dot_dimension_numbers<[1], [0], [0], [1], [0, 0, 1, 1], [], []>} : vector<128x32xbf16>, vector<32x512xbf16>, vector<128x512xf32> -> vector<128x512xf32>
    %cst_5 = arith.constant dense<0.000000e+00> : vector<512xf32>
    %18 = vector.multi_reduction <add>, %17, %cst_5 [0] : vector<128x512xf32> to vector<512xf32>
    %19 = vector.shape_cast %18 : vector<512xf32> to vector<1x512xf32>
    %cst_6 = arith.constant 7.812500e-03 : f32
    %20 = vector.broadcast %cst_6 : f32 to vector<1x512xf32>
    %21 = arith.mulf %19, %20 : vector<1x512xf32>
    %22 = arith.mulf %17, %17 : vector<128x512xf32>
    %cst_7 = arith.constant dense<0.000000e+00> : vector<512xf32>
    %23 = vector.multi_reduction <add>, %22, %cst_7 [0] : vector<128x512xf32> to vector<512xf32>
    %24 = vector.shape_cast %23 : vector<512xf32> to vector<1x512xf32>
    %cst_8 = arith.constant 7.812500e-03 : f32
    %25 = vector.broadcast %cst_8 : f32 to vector<1x512xf32>
    %26 = arith.mulf %24, %25 : vector<1x512xf32>
    %27 = arith.mulf %21, %21 : vector<1x512xf32>
    %28 = arith.subf %26, %27 : vector<1x512xf32>
    %cst_9 = arith.constant 0.000000e+00 : f32
    %29 = vector.broadcast %cst_9 : f32 to vector<1x512xf32>
    %30 = arith.maximumf %28, %29 : vector<1x512xf32>
    %cst_10 = arith.constant 9.99999974E-6 : f32
    %31 = vector.broadcast %cst_10 : f32 to vector<1x512xf32>
    %32 = arith.addf %30, %31 : vector<1x512xf32>
    %33 = math.rsqrt %32 : vector<1x512xf32>
    %34 = arith.mulf %7, %33 : vector<1x512xf32>
    %35 = arith.mulf %21, %34 : vector<1x512xf32>
    %36 = arith.subf %8, %35 : vector<1x512xf32>
    %37 = vector.broadcast %34 : vector<1x512xf32> to vector<128x512xf32>
    %38 = arith.mulf %17, %37 : vector<128x512xf32>
    %39 = vector.broadcast %36 : vector<1x512xf32> to vector<128x512xf32>
    %40 = arith.addf %38, %39 : vector<128x512xf32>
    %cst_11 = arith.constant 0.000000e+00 : f32
    %41 = vector.broadcast %cst_11 : f32 to vector<128x512xf32>
    %42 = arith.maximumf %40, %41 : vector<128x512xf32>
    %43 = arith.truncf %42 : vector<128x512xf32> to vector<128x512xbf16>
    %c0_i32_12 = arith.constant 0 : i32
    %44 = tpu.memref_slice %arg10[%c0_i32_12] : memref<3x!tpu.dma_semaphore, #tpu.memory_space<semaphore_mem>> -> memref<1x!tpu.dma_semaphore, #tpu.memory_space<semaphore_mem>>
    %45 = tpu.memref_squeeze %44 : memref<1x!tpu.dma_semaphore, #tpu.memory_space<semaphore_mem>> -> memref<!tpu.dma_semaphore, #tpu.memory_space<semaphore_mem>>
    tpu.wait_dma2 semaphore(%45 : memref<!tpu.dma_semaphore, #tpu.memory_space<semaphore_mem>>) src(%arg3 : memref<512x512xbf16, #tpu.memory_space<any>>) dst(%arg7 : memref<512x512xbf16, #tpu.memory_space<vmem>>)
    %c0_13 = arith.constant 0 : index
    %c0_14 = arith.constant 0 : index
    %46 = vector.load %arg7[%c0_13, %c0_14] : memref<512x512xbf16, #tpu.memory_space<vmem>>, vector<512x512xbf16>
    %cst_15 = arith.constant dense<0.000000e+00> : vector<128x512xf32>
    %47 = tpu.matmul %43, %46, %cst_15 {dimension_numbers = #tpu.dot_dimension_numbers<[1], [0], [0], [1], [0, 0, 1, 1], [], []>} : vector<128x512xbf16>, vector<512x512xbf16>, vector<128x512xf32> -> vector<128x512xf32>
    %cst_16 = arith.constant dense<0.000000e+00> : vector<512xf32>
    %48 = vector.multi_reduction <add>, %47, %cst_16 [0] : vector<128x512xf32> to vector<512xf32>
    %49 = vector.shape_cast %48 : vector<512xf32> to vector<1x512xf32>
    %cst_17 = arith.constant 7.812500e-03 : f32
    %50 = vector.broadcast %cst_17 : f32 to vector<1x512xf32>
    %51 = arith.mulf %49, %50 : vector<1x512xf32>
    %52 = arith.mulf %47, %47 : vector<128x512xf32>
    %cst_18 = arith.constant dense<0.000000e+00> : vector<512xf32>
    %53 = vector.multi_reduction <add>, %52, %cst_18 [0] : vector<128x512xf32> to vector<512xf32>
    %54 = vector.shape_cast %53 : vector<512xf32> to vector<1x512xf32>
    %cst_19 = arith.constant 7.812500e-03 : f32
    %55 = vector.broadcast %cst_19 : f32 to vector<1x512xf32>
    %56 = arith.mulf %54, %55 : vector<1x512xf32>
    %57 = arith.mulf %51, %51 : vector<1x512xf32>
    %58 = arith.subf %56, %57 : vector<1x512xf32>
    %cst_20 = arith.constant 0.000000e+00 : f32
    %59 = vector.broadcast %cst_20 : f32 to vector<1x512xf32>
    %60 = arith.maximumf %58, %59 : vector<1x512xf32>
    %cst_21 = arith.constant 9.99999974E-6 : f32
    %61 = vector.broadcast %cst_21 : f32 to vector<1x512xf32>
    %62 = arith.addf %60, %61 : vector<1x512xf32>
    %63 = math.rsqrt %62 : vector<1x512xf32>
    %64 = arith.mulf %9, %63 : vector<1x512xf32>
    %65 = arith.mulf %51, %64 : vector<1x512xf32>
    %66 = arith.subf %10, %65 : vector<1x512xf32>
    %67 = vector.broadcast %64 : vector<1x512xf32> to vector<128x512xf32>
    %68 = arith.mulf %47, %67 : vector<128x512xf32>
    %69 = vector.broadcast %66 : vector<1x512xf32> to vector<128x512xf32>
    %70 = arith.addf %68, %69 : vector<128x512xf32>
    %cst_22 = arith.constant 0.000000e+00 : f32
    %71 = vector.broadcast %cst_22 : f32 to vector<128x512xf32>
    %72 = arith.maximumf %70, %71 : vector<128x512xf32>
    %73 = arith.truncf %72 : vector<128x512xf32> to vector<128x512xbf16>
    %c1_i32_23 = arith.constant 1 : i32
    %74 = tpu.memref_slice %arg10[%c1_i32_23] : memref<3x!tpu.dma_semaphore, #tpu.memory_space<semaphore_mem>> -> memref<1x!tpu.dma_semaphore, #tpu.memory_space<semaphore_mem>>
    %75 = tpu.memref_squeeze %74 : memref<1x!tpu.dma_semaphore, #tpu.memory_space<semaphore_mem>> -> memref<!tpu.dma_semaphore, #tpu.memory_space<semaphore_mem>>
    tpu.wait_dma2 semaphore(%75 : memref<!tpu.dma_semaphore, #tpu.memory_space<semaphore_mem>>) src(%arg4 : memref<512x256xbf16, #tpu.memory_space<any>>) dst(%arg8 : memref<512x256xbf16, #tpu.memory_space<vmem>>)
    %c0_24 = arith.constant 0 : index
    %c0_25 = arith.constant 0 : index
    %76 = vector.load %arg8[%c0_24, %c0_25] : memref<512x256xbf16, #tpu.memory_space<vmem>>, vector<512x256xbf16>
    %cst_26 = arith.constant dense<0.000000e+00> : vector<128x256xf32>
    %77 = tpu.matmul %73, %76, %cst_26 {dimension_numbers = #tpu.dot_dimension_numbers<[1], [0], [0], [1], [0, 0, 1, 1], [], []>} : vector<128x512xbf16>, vector<512x256xbf16>, vector<128x256xf32> -> vector<128x256xf32>
    %cst_27 = arith.constant dense<0.000000e+00> : vector<256xf32>
    %78 = vector.multi_reduction <add>, %77, %cst_27 [0] : vector<128x256xf32> to vector<256xf32>
    %79 = vector.shape_cast %78 : vector<256xf32> to vector<1x256xf32>
    %cst_28 = arith.constant 7.812500e-03 : f32
    %80 = vector.broadcast %cst_28 : f32 to vector<1x256xf32>
    %81 = arith.mulf %79, %80 : vector<1x256xf32>
    %82 = arith.mulf %77, %77 : vector<128x256xf32>
    %cst_29 = arith.constant dense<0.000000e+00> : vector<256xf32>
    %83 = vector.multi_reduction <add>, %82, %cst_29 [0] : vector<128x256xf32> to vector<256xf32>
    %84 = vector.shape_cast %83 : vector<256xf32> to vector<1x256xf32>
    %cst_30 = arith.constant 7.812500e-03 : f32
    %85 = vector.broadcast %cst_30 : f32 to vector<1x256xf32>
    %86 = arith.mulf %84, %85 : vector<1x256xf32>
    %87 = arith.mulf %81, %81 : vector<1x256xf32>
    %88 = arith.subf %86, %87 : vector<1x256xf32>
    %cst_31 = arith.constant 0.000000e+00 : f32
    %89 = vector.broadcast %cst_31 : f32 to vector<1x256xf32>
    %90 = arith.maximumf %88, %89 : vector<1x256xf32>
    %cst_32 = arith.constant 9.99999974E-6 : f32
    %91 = vector.broadcast %cst_32 : f32 to vector<1x256xf32>
    %92 = arith.addf %90, %91 : vector<1x256xf32>
    %93 = math.rsqrt %92 : vector<1x256xf32>
    %94 = arith.mulf %11, %93 : vector<1x256xf32>
    %95 = arith.mulf %81, %94 : vector<1x256xf32>
    %96 = arith.subf %12, %95 : vector<1x256xf32>
    %97 = vector.broadcast %94 : vector<1x256xf32> to vector<128x256xf32>
    %98 = arith.mulf %77, %97 : vector<128x256xf32>
    %99 = vector.broadcast %96 : vector<1x256xf32> to vector<128x256xf32>
    %100 = arith.addf %98, %99 : vector<128x256xf32>
    %cst_33 = arith.constant 0.000000e+00 : f32
    %101 = vector.broadcast %cst_33 : f32 to vector<128x256xf32>
    %102 = arith.maximumf %100, %101 : vector<128x256xf32>
    %103 = arith.truncf %102 : vector<128x256xf32> to vector<128x256xbf16>
    %c2_i32_34 = arith.constant 2 : i32
    %104 = tpu.memref_slice %arg10[%c2_i32_34] : memref<3x!tpu.dma_semaphore, #tpu.memory_space<semaphore_mem>> -> memref<1x!tpu.dma_semaphore, #tpu.memory_space<semaphore_mem>>
    %105 = tpu.memref_squeeze %104 : memref<1x!tpu.dma_semaphore, #tpu.memory_space<semaphore_mem>> -> memref<!tpu.dma_semaphore, #tpu.memory_space<semaphore_mem>>
    tpu.wait_dma2 semaphore(%105 : memref<!tpu.dma_semaphore, #tpu.memory_space<semaphore_mem>>) src(%arg5 : memref<256x128xbf16, #tpu.memory_space<any>>) dst(%arg9 : memref<256x128xbf16, #tpu.memory_space<vmem>>)
    %c0_35 = arith.constant 0 : index
    %c0_36 = arith.constant 0 : index
    %106 = vector.load %arg9[%c0_35, %c0_36] : memref<256x128xbf16, #tpu.memory_space<vmem>>, vector<256x128xbf16>
    %cst_37 = arith.constant dense<0.000000e+00> : vector<128x128xf32>
    %107 = tpu.matmul %103, %106, %cst_37 {dimension_numbers = #tpu.dot_dimension_numbers<[1], [0], [0], [1], [0, 0, 1, 1], [], []>} : vector<128x256xbf16>, vector<256x128xbf16>, vector<128x128xf32> -> vector<128x128xf32>
    %108 = vector.broadcast %13 : vector<1x128xf32> to vector<128x128xf32>
    %109 = arith.addf %107, %108 : vector<128x128xf32>
    %c0_38 = arith.constant 0 : index
    %c0_39 = arith.constant 0 : index
    %110 = vector.load %arg6[%c0_38, %c0_39] : memref<128x128xf32, #tpu.memory_space<vmem>>, vector<128x128xf32>
    tpu.vector_store %arg6[%c0_38, %c0_39], %109 {strides = array<i32>} : memref<128x128xf32, #tpu.memory_space<vmem>>, vector<128x128xf32>,
    return
  }
}

</mosaic_0001>

<bundles_post_ra>
// kernel: deeper_generator.1
= control target key start
LH: loop header
LB: loop body
LE: loop exit
PB: predicated region body
PF: predicated region fallthrough
CT: control target
= control target key end

     0   :  { %s7533_s0 = inlined_call_operand.vmem [shape: f32[128,32], index: 0, kind: input, shape index: {}]   ;;  %s7534_s1 = inlined_call_operand.vmem [shape: bf16[32,512], index: 1, kind: input, shape index: {}]   ;;  %s7535_s2 = inlined_call_operand.vmem [shape: f32[8,512], index: 2, kind: input, shape index: {}]   ;;  %s7536_s3 = inlined_call_operand.vmem [shape: bf16[512,512], index: 3, kind: input, shape index: {}]   ;;  %s7537_s4 = inlined_call_operand.vmem [shape: bf16[512,256], index: 4, kind: input, shape index: {}]   ;;  %s7538_s5 = inlined_call_operand.vmem [shape: bf16[256,128], index: 5, kind: input, shape index: {}]   ;;  %s7539_s6 = inlined_call_operand.vmem [shape: f32[128,128], index: 6, kind: output, shape index: {}]  }
   0x1   :  { %v35_v0 = vld [vmem:[%s7536_s3] sm:$0xf]  ;;  %v37_v1 = vld [vmem:[%s7536_s3 + $0x10] sm:$0xf]  ;;  %v39_v2 = vld [vmem:[%s7536_s3 + $0x4] sm:$0xf] }
   0x2   :  { %36 = vst [vmem:[#allocation2] sm:$0xf] %v35_v0  ;;  %38 = vst [vmem:[#allocation2 + $0x4] sm:$0xf] %v37_v1  ;;  %v41_v3 = vld [vmem:[%s7536_s3 + $0x14] sm:$0xf] }
   0x3   :  { %40 = vst [vmem:[#allocation2 + $0x8] sm:$0xf] %v39_v2  ;;  %v43_v4 = vld [vmem:[%s7536_s3 + $0x8] sm:$0xf]  ;;  %v45_v5 = vld [vmem:[%s7536_s3 + $0x18] sm:$0xf] }
   0x4   :  { %42 = vst [vmem:[#allocation2 + $0xc] sm:$0xf] %v41_v3  ;;  %44 = vst [vmem:[#allocation2 + $0x10] sm:$0xf] %v43_v4  ;;  %v47_v6 = vld [vmem:[%s7536_s3 + $0xc] sm:$0xf] }
   0x5   :  { %46 = vst [vmem:[#allocation2 + $0x14] sm:$0xf] %v45_v5  ;;  %v49_v7 = vld [vmem:[%s7536_s3 + $0x1c] sm:$0xff]   ;;  %v53_v8 = vld [vmem:[%s7536_s3 + $0x30] sm:$0xf] }
   0x6   :  { %48 = vst [vmem:[#allocation2 + $0x18] sm:$0xf] %v47_v6  ;;  %50 = vst [vmem:[#allocation2 + $0x1c] sm:$0xff] %v49_v7   ;;  %v55_v9 = vld [vmem:[%s7536_s3 + $0x24] sm:$0xf]  ;;  %v65_v14 = vld [vmem:[%s7536_s3 + $0x3c] sm:$0xff]  }
   0x7   :  { %54 = vst [vmem:[#allocation2 + $0x24] sm:$0xf] %v53_v8  ;;  %v57_v10 = vld [vmem:[%s7536_s3 + $0x34] sm:$0xf]  ;;  %v59_v11 = vld [vmem:[%s7536_s3 + $0x28] sm:$0xf] }
   0x8   :  { %56 = vst [vmem:[#allocation2 + $0x28] sm:$0xf] %v55_v9  ;;  %58 = vst [vmem:[#allocation2 + $0x2c] sm:$0xf] %v57_v10  ;;  %v61_v12 = vld [vmem:[%s7536_s3 + $0x38] sm:$0xf] }
   0x9   :  { %60 = vst [vmem:[#allocation2 + $0x30] sm:$0xf] %v59_v11  ;;  %v63_v13 = vld [vmem:[%s7536_s3 + $0x2c] sm:$0xf]  ;;  %62 = vst [vmem:[#allocation2 + $0x34] sm:$0xf] %v61_v12 }
   0xa   :  { %64 = vst [vmem:[#allocation2 + $0x38] sm:$0xf] %v63_v13  ;;  %66 = vst [vmem:[#allocation2 + $0x3c] sm:$0xff] %v65_v14   ;;  %v69_v15 = vld [vmem:[%s7536_s3 + $0x50] sm:$0xf]  ;;  %v81_v21 = vld [vmem:[%s7536_s3 + $0x5c] sm:$0xff]  }
   0xb   :  { %v71_v16 = vld [vmem:[%s7536_s3 + $0x44] sm:$0xf]  ;;  %v73_v17 = vld [vmem:[%s7536_s3 + $0x54] sm:$0xf]  ;;  %70 = vst [vmem:[#allocation2 + $0x44] sm:$0xf] %v69_v15 }
   0xc   :  { %72 = vst [vmem:[#allocation2 + $0x48] sm:$0xf] %v71_v16  ;;  %74 = vst [vmem:[#allocation2 + $0x4c] sm:$0xf] %v73_v17  ;;  %v75_v18 = vld [vmem:[%s7536_s3 + $0x48] sm:$0xf] }
   0xd   :  { %v77_v19 = vld [vmem:[%s7536_s3 + $0x58] sm:$0xf]  ;;  %v79_v20 = vld [vmem:[%s7536_s3 + $0x4c] sm:$0xf]  ;;  %76 = vst [vmem:[#allocation2 + $0x50] sm:$0xf] %v75_v18 }
   0xe   :  { %78 = vst [vmem:[#allocation2 + $0x54] sm:$0xf] %v77_v19  ;;  %80 = vst [vmem:[#allocation2 + $0x58] sm:$0xf] %v79_v20  ;;  %v85_v22 = vld [vmem:[%s7536_s3 + $0x70] sm:$0xf] }
   0xf   :  { %v87_v23 = vld [vmem:[%s7536_s3 + $0x64] sm:$0xf]  ;;  %82 = vst [vmem:[#allocation2 + $0x5c] sm:$0xff] %v81_v21   ;;  %86 = vst [vmem:[#allocation2 + $0x64] sm:$0xf] %v85_v22  ;;  %v97_v28 = vld [vmem:[%s7536_s3 + $0x7c] sm:$0xff]  }
  0x10   :  { %88 = vst [vmem:[#allocation2 + $0x68] sm:$0xf] %v87_v23  ;;  %v89_v24 = vld [vmem:[%s7536_s3 + $0x74] sm:$0xf]  ;;  %v91_v25 = vld [vmem:[%s7536_s3 + $0x68] sm:$0xf] }
  0x11   :  { %v93_v26 = vld [vmem:[%s7536_s3 + $0x78] sm:$0xf]  ;;  %90 = vst [vmem:[#allocation2 + $0x6c] sm:$0xf] %v89_v24  ;;  %92 = vst [vmem:[#allocation2 + $0x70] sm:$0xf] %v91_v25 }
  0x12   :  { %94 = vst [vmem:[#allocation2 + $0x74] sm:$0xf] %v93_v26  ;;  %v95_v27 = vld [vmem:[%s7536_s3 + $0x6c] sm:$0xf]  ;;  %v101_v29 = vld [vmem:[%s7536_s3 + $0x90] sm:$0xf] }
  0x13   :  { %96 = vst [vmem:[#allocation2 + $0x78] sm:$0xf] %v95_v27  ;;  %98 = vst [vmem:[#allocation2 + $0x7c] sm:$0xff] %v97_v28   ;;  %v103_v30 = vld [vmem:[%s7536_s3 + $0x84] sm:$0xf]  ;;  %v113_v35 = vld [vmem:[%s7536_s3 + $0x9c] sm:$0xff]  }
  0x14   :  { %102 = vst [vmem:[#allocation2 + $0x84] sm:$0xf] %v101_v29  ;;  %v105_v31 = vld [vmem:[%s7536_s3 + $0x94] sm:$0xf]  ;;  %v107_v32 = vld [vmem:[%s7536_s3 + $0x88] sm:$0xf] }
  0x15   :  { %104 = vst [vmem:[#allocation2 + $0x88] sm:$0xf] %v103_v30  ;;  %106 = vst [vmem:[#allocation2 + $0x8c] sm:$0xf] %v105_v31  ;;  %v109_v33 = vld [vmem:[%s7536_s3 + $0x98] sm:$0xf] }
  0x16   :  { %108 = vst [vmem:[#allocation2 + $0x90] sm:$0xf] %v107_v32  ;;  %v111_v34 = vld [vmem:[%s7536_s3 + $0x8c] sm:$0xf]  ;;  %110 = vst [vmem:[#allocation2 + $0x94] sm:$0xf] %v109_v33 }
  0x17   :  { %112 = vst [vmem:[#allocation2 + $0x98] sm:$0xf] %v111_v34  ;;  %114 = vst [vmem:[#allocation2 + $0x9c] sm:$0xff] %v113_v35   ;;  %v117_v36 = vld [vmem:[%s7536_s3 + $0xb0] sm:$0xf]  ;;  %v129_v42 = vld [vmem:[%s7536_s3 + $0xbc] sm:$0xff]  }
  0x18   :  { %v119_v37 = vld [vmem:[%s7536_s3 + $0xa4] sm:$0xf]  ;;  %v121_v38 = vld [vmem:[%s7536_s3 + $0xb4] sm:$0xf]  ;;  %118 = vst [vmem:[#allocation2 + $0xa4] sm:$0xf] %v117_v36 }
  0x19   :  { %120 = vst [vmem:[#allocation2 + $0xa8] sm:$0xf] %v119_v37  ;;  %122 = vst [vmem:[#allocation2 + $0xac] sm:$0xf] %v121_v38  ;;  %v123_v39 = vld [vmem:[%s7536_s3 + $0xa8] sm:$0xf] }
  0x1a   :  { %v125_v40 = vld [vmem:[%s7536_s3 + $0xb8] sm:$0xf]  ;;  %v127_v41 = vld [vmem:[%s7536_s3 + $0xac] sm:$0xf]  ;;  %124 = vst [vmem:[#allocation2 + $0xb0] sm:$0xf] %v123_v39 }
  0x1b   :  { %126 = vst [vmem:[#allocation2 + $0xb4] sm:$0xf] %v125_v40  ;;  %128 = vst [vmem:[#allocation2 + $0xb8] sm:$0xf] %v127_v41  ;;  %v133_v43 = vld [vmem:[%s7536_s3 + $0xd0] sm:$0xf] }
  0x1c   :  { %v135_v44 = vld [vmem:[%s7536_s3 + $0xc4] sm:$0xf]  ;;  %130 = vst [vmem:[#allocation2 + $0xbc] sm:$0xff] %v129_v42   ;;  %134 = vst [vmem:[#allocation2 + $0xc4] sm:$0xf] %v133_v43  ;;  %v145_v49 = vld [vmem:[%s7536_s3 + $0xdc] sm:$0xff]  }
  0x1d   :  { %136 = vst [vmem:[#allocation2 + $0xc8] sm:$0xf] %v135_v44  ;;  %v137_v45 = vld [vmem:[%s7536_s3 + $0xd4] sm:$0xf]  ;;  %v139_v46 = vld [vmem:[%s7536_s3 + $0xc8] sm:$0xf] }
  0x1e   :  { %v141_v47 = vld [vmem:[%s7536_s3 + $0xd8] sm:$0xf]  ;;  %138 = vst [vmem:[#allocation2 + $0xcc] sm:$0xf] %v137_v45  ;;  %140 = vst [vmem:[#allocation2 + $0xd0] sm:$0xf] %v139_v46 }
  0x1f   :  { %142 = vst [vmem:[#allocation2 + $0xd4] sm:$0xf] %v141_v47  ;;  %v143_v48 = vld [vmem:[%s7536_s3 + $0xcc] sm:$0xf]  ;;  %v149_v50 = vld [vmem:[%s7536_s3 + $0xf0] sm:$0xf] }
  0x20   :  { %144 = vst [vmem:[#allocation2 + $0xd8] sm:$0xf] %v143_v48  ;;  %146 = vst [vmem:[#allocation2 + $0xdc] sm:$0xff] %v145_v49   ;;  %v151_v51 = vld [vmem:[%s7536_s3 + $0xe4] sm:$0xf]  ;;  %v161_v56 = vld [vmem:[%s7536_s3 + $0xfc] sm:$0xff]  }
  0x21   :  { %150 = vst [vmem:[#allocation2 + $0xe4] sm:$0xf] %v149_v50  ;;  %v153_v52 = vld [vmem:[%s7536_s3 + $0xf4] sm:$0xf]  ;;  %v155_v53 = vld [vmem:[%s7536_s3 + $0xe8] sm:$0xf] }
  0x22   :  { %152 = vst [vmem:[#allocation2 + $0xe8] sm:$0xf] %v151_v51  ;;  %154 = vst [vmem:[#allocation2 + $0xec] sm:$0xf] %v153_v52  ;;  %v157_v54 = vld [vmem:[%s7536_s3 + $0xf8] sm:$0xf] }
  0x23   :  { %156 = vst [vmem:[#allocation2 + $0xf0] sm:$0xf] %v155_v53  ;;  %v159_v55 = vld [vmem:[%s7536_s3 + $0xec] sm:$0xf]  ;;  %158 = vst [vmem:[#allocation2 + $0xf4] sm:$0xf] %v157_v54 }
  0x24   :  { %160 = vst [vmem:[#allocation2 + $0xf8] sm:$0xf] %v159_v55  ;;  %162 = vst [vmem:[#allocation2 + $0xfc] sm:$0xff] %v161_v56   ;;  %v165_v57 = vld [vmem:[%s7536_s3 + $0x110] sm:$0xf]  ;;  %v177_v63 = vld [vmem:[%s7536_s3 + $0x11c] sm:$0xff]  }
  0x25   :  { %v167_v58 = vld [vmem:[%s7536_s3 + $0x104] sm:$0xf]  ;;  %v169_v59 = vld [vmem:[%s7536_s3 + $0x114] sm:$0xf]  ;;  %166 = vst [vmem:[#allocation2 + $0x104] sm:$0xf] %v165_v57 }
  0x26   :  { %168 = vst [vmem:[#allocation2 + $0x108] sm:$0xf] %v167_v58  ;;  %170 = vst [vmem:[#allocation2 + $0x10c] sm:$0xf] %v169_v59  ;;  %v171_v60 = vld [vmem:[%s7536_s3 + $0x108] sm:$0xf] }
  0x27   :  { %v173_v61 = vld [vmem:[%s7536_s3 + $0x118] sm:$0xf]  ;;  %v175_v62 = vld [vmem:[%s7536_s3 + $0x10c] sm:$0xf]  ;;  %172 = vst [vmem:[#allocation2 + $0x110] sm:$0xf] %v171_v60 }
  0x28   :  { %174 = vst [vmem:[#allocation2 + $0x114] sm:$0xf] %v173_v61  ;;  %176 = vst [vmem:[#allocation2 + $0x118] sm:$0xf] %v175_v62  ;;  %v181_v0 = vld [vmem:[%s7536_s3 + $0x130] sm:$0xf] }
  0x29   :  { %v183_v1 = vld [vmem:[%s7536_s3 + $0x124] sm:$0xf]  ;;  %178 = vst [vmem:[#allocation2 + $0x11c] sm:$0xff] %v177_v63   ;;  %182 = vst [vmem:[#allocation2 + $0x124] sm:$0xf] %v181_v0  ;;  %v193_v6 = vld [vmem:[%s7536_s3 + $0x13c] sm:$0xff]  }
  0x2a   :  { %184 = vst [vmem:[#allocation2 + $0x128] sm:$0xf] %v183_v1  ;;  %v185_v2 = vld [vmem:[%s7536_s3 + $0x134] sm:$0xf]  ;;  %v187_v3 = vld [vmem:[%s7536_s3 + $0x128] sm:$0xf] }
  0x2b   :  { %v189_v4 = vld [vmem:[%s7536_s3 + $0x138] sm:$0xf]  ;;  %186 = vst [vmem:[#allocation2 + $0x12c] sm:$0xf] %v185_v2  ;;  %188 = vst [vmem:[#allocation2 + $0x130] sm:$0xf] %v187_v3 }
  0x2c   :  { %190 = vst [vmem:[#allocation2 + $0x134] sm:$0xf] %v189_v4  ;;  %v191_v5 = vld [vmem:[%s7536_s3 + $0x12c] sm:$0xf]  ;;  %v197_v7 = vld [vmem:[%s7536_s3 + $0x150] sm:$0xf] }
  0x2d   :  { %192 = vst [vmem:[#allocation2 + $0x138] sm:$0xf] %v191_v5  ;;  %194 = vst [vmem:[#allocation2 + $0x13c] sm:$0xff] %v193_v6   ;;  %v199_v8 = vld [vmem:[%s7536_s3 + $0x144] sm:$0xf]  ;;  %v209_v13 = vld [vmem:[%s7536_s3 + $0x15c] sm:$0xff]  }
  0x2e   :  { %198 = vst [vmem:[#allocation2 + $0x144] sm:$0xf] %v197_v7  ;;  %v201_v9 = vld [vmem:[%s7536_s3 + $0x154] sm:$0xf]  ;;  %v203_v10 = vld [vmem:[%s7536_s3 + $0x148] sm:$0xf] }
  0x2f   :  { %200 = vst [vmem:[#allocation2 + $0x148] sm:$0xf] %v199_v8  ;;  %202 = vst [vmem:[#allocation2 + $0x14c] sm:$0xf] %v201_v9  ;;  %v205_v11 = vld [vmem:[%s7536_s3 + $0x158] sm:$0xf] }
  0x30   :  { %204 = vst [vmem:[#allocation2 + $0x150] sm:$0xf] %v203_v10  ;;  %v207_v12 = vld [vmem:[%s7536_s3 + $0x14c] sm:$0xf]  ;;  %206 = vst [vmem:[#allocation2 + $0x154] sm:$0xf] %v205_v11 }
  0x31   :  { %208 = vst [vmem:[#allocation2 + $0x158] sm:$0xf] %v207_v12  ;;  %210 = vst [vmem:[#allocation2 + $0x15c] sm:$0xff] %v209_v13   ;;  %v213_v14 = vld [vmem:[%s7536_s3 + $0x170] sm:$0xf]  ;;  %v225_v20 = vld [vmem:[%s7536_s3 + $0x17c] sm:$0xff]  }
  0x32   :  { %v215_v15 = vld [vmem:[%s7536_s3 + $0x164] sm:$0xf]  ;;  %v217_v16 = vld [vmem:[%s7536_s3 + $0x174] sm:$0xf]  ;;  %214 = vst [vmem:[#allocation2 + $0x164] sm:$0xf] %v213_v14 }
  0x33   :  { %216 = vst [vmem:[#allocation2 + $0x168] sm:$0xf] %v215_v15  ;;  %218 = vst [vmem:[#allocation2 + $0x16c] sm:$0xf] %v217_v16  ;;  %v219_v17 = vld [vmem:[%s7536_s3 + $0x168] sm:$0xf] }
  0x34   :  { %v221_v18 = vld [vmem:[%s7536_s3 + $0x178] sm:$0xf]  ;;  %v223_v19 = vld [vmem:[%s7536_s3 + $0x16c] sm:$0xf]  ;;  %220 = vst [vmem:[#allocation2 + $0x170] sm:$0xf] %v219_v17 }
  0x35   :  { %222 = vst [vmem:[#allocation2 + $0x174] sm:$0xf] %v221_v18  ;;  %224 = vst [vmem:[#allocation2 + $0x178] sm:$0xf] %v223_v19  ;;  %v229_v21 = vld [vmem:[%s7536_s3 + $0x190] sm:$0xf] }
  0x36   :  { %v231_v22 = vld [vmem:[%s7536_s3 + $0x184] sm:$0xf]  ;;  %226 = vst [vmem:[#allocation2 + $0x17c] sm:$0xff] %v225_v20   ;;  %230 = vst [vmem:[#allocation2 + $0x184] sm:$0xf] %v229_v21  ;;  %v241_v27 = vld [vmem:[%s7536_s3 + $0x19c] sm:$0xff]  }
  0x37   :  { %232 = vst [vmem:[#allocation2 + $0x188] sm:$0xf] %v231_v22  ;;  %v233_v23 = vld [vmem:[%s7536_s3 + $0x194] sm:$0xf]  ;;  %v235_v24 = vld [vmem:[%s7536_s3 + $0x188] sm:$0xf] }
  0x38   :  { %v237_v25 = vld [vmem:[%s7536_s3 + $0x198] sm:$0xf]  ;;  %234 = vst [vmem:[#allocation2 + $0x18c] sm:$0xf] %v233_v23  ;;  %236 = vst [vmem:[#allocation2 + $0x190] sm:$0xf] %v235_v24 }
  0x39   :  { %238 = vst [vmem:[#allocation2 + $0x194] sm:$0xf] %v237_v25  ;;  %v239_v26 = vld [vmem:[%s7536_s3 + $0x18c] sm:$0xf]  ;;  %v245_v28 = vld [vmem:[%s7536_s3 + $0x1b0] sm:$0xf] }
  0x3a   :  { %240 = vst [vmem:[#allocation2 + $0x198] sm:$0xf] %v239_v26  ;;  %242 = vst [vmem:[#allocation2 + $0x19c] sm:$0xff] %v241_v27   ;;  %v247_v29 = vld [vmem:[%s7536_s3 + $0x1a4] sm:$0xf]  ;;  %v257_v34 = vld [vmem:[%s7536_s3 + $0x1bc] sm:$0xff]  }
  0x3b   :  { %246 = vst [vmem:[#allocation2 + $0x1a4] sm:$0xf] %v245_v28  ;;  %v249_v30 = vld [vmem:[%s7536_s3 + $0x1b4] sm:$0xf]  ;;  %v251_v31 = vld [vmem:[%s7536_s3 + $0x1a8] sm:$0xf] }
  0x3c   :  { %248 = vst [vmem:[#allocation2 + $0x1a8] sm:$0xf] %v247_v29  ;;  %250 = vst [vmem:[#allocation2 + $0x1ac] sm:$0xf] %v249_v30  ;;  %v253_v32 = vld [vmem:[%s7536_s3 + $0x1b8] sm:$0xf] }
  0x3d   :  { %252 = vst [vmem:[#allocation2 + $0x1b0] sm:$0xf] %v251_v31  ;;  %v255_v33 = vld [vmem:[%s7536_s3 + $0x1ac] sm:$0xf]  ;;  %254 = vst [vmem:[#allocation2 + $0x1b4] sm:$0xf] %v253_v32 }
  0x3e   :  { %256 = vst [vmem:[#allocation2 + $0x1b8] sm:$0xf] %v255_v33  ;;  %258 = vst [vmem:[#allocation2 + $0x1bc] sm:$0xff] %v257_v34   ;;  %v261_v35 = vld [vmem:[%s7536_s3 + $0x1d0] sm:$0xf]  ;;  %v273_v41 = vld [vmem:[%s7536_s3 + $0x1dc] sm:$0xff]  }
  0x3f   :  { %v263_v36 = vld [vmem:[%s7536_s3 + $0x1c4] sm:$0xf]  ;;  %v265_v37 = vld [vmem:[%s7536_s3 + $0x1d4] sm:$0xf]  ;;  %262 = vst [vmem:[#allocation2 + $0x1c4] sm:$0xf] %v261_v35 }
  0x40   :  { %264 = vst [vmem:[#allocation2 + $0x1c8] sm:$0xf] %v263_v36  ;;  %266 = vst [vmem:[#allocation2 + $0x1cc] sm:$0xf] %v265_v37  ;;  %v267_v38 = vld [vmem:[%s7536_s3 + $0x1c8] sm:$0xf] }
  0x41   :  { %v269_v39 = vld [vmem:[%s7536_s3 + $0x1d8] sm:$0xf]  ;;  %v271_v40 = vld [vmem:[%s7536_s3 + $0x1cc] sm:$0xf]  ;;  %268 = vst [vmem:[#allocation2 + $0x1d0] sm:$0xf] %v267_v38 }
  0x42   :  { %270 = vst [vmem:[#allocation2 + $0x1d4] sm:$0xf] %v269_v39  ;;  %272 = vst [vmem:[#allocation2 + $0x1d8] sm:$0xf] %v271_v40  ;;  %v277_v42 = vld [vmem:[%s7536_s3 + $0x1f0] sm:$0xf] }
  0x43   :  { %v279_v43 = vld [vmem:[%s7536_s3 + $0x1e4] sm:$0xf]  ;;  %274 = vst [vmem:[#allocation2 + $0x1dc] sm:$0xff] %v273_v41   ;;  %278 = vst [vmem:[#allocation2 + $0x1e4] sm:$0xf] %v277_v42  ;;  %v289_v48 = vld [vmem:[%s7536_s3 + $0x1fc] sm:$0xff]  }
  0x44   :  { %280 = vst [vmem:[#allocation2 + $0x1e8] sm:$0xf] %v279_v43  ;;  %v281_v44 = vld [vmem:[%s7536_s3 + $0x1f4] sm:$0xf]  ;;  %v283_v45 = vld [vmem:[%s7536_s3 + $0x1e8] sm:$0xf] }
  0x45   :  { %v285_v46 = vld [vmem:[%s7536_s3 + $0x1f8] sm:$0xf]  ;;  %282 = vst [vmem:[#allocation2 + $0x1ec] sm:$0xf] %v281_v44  ;;  %284 = vst [vmem:[#allocation2 + $0x1f0] sm:$0xf] %v283_v45 }
  0x46   :  { %286 = vst [vmem:[#allocation2 + $0x1f4] sm:$0xf] %v285_v46  ;;  %v287_v47 = vld [vmem:[%s7536_s3 + $0x1ec] sm:$0xf]  ;;  %v293_v49 = vld [vmem:[%s7536_s3 + $0x210] sm:$0xf] }
  0x47   :  { %288 = vst [vmem:[#allocation2 + $0x1f8] sm:$0xf] %v287_v47  ;;  %290 = vst [vmem:[#allocation2 + $0x1fc] sm:$0xff] %v289_v48   ;;  %v295_v50 = vld [vmem:[%s7536_s3 + $0x204] sm:$0xf]  ;;  %v305_v55 = vld [vmem:[%s7536_s3 + $0x21c] sm:$0xff]  }
  0x48   :  { %294 = vst [vmem:[#allocation2 + $0x204] sm:$0xf] %v293_v49  ;;  %v297_v51 = vld [vmem:[%s7536_s3 + $0x214] sm:$0xf]  ;;  %v299_v52 = vld [vmem:[%s7536_s3 + $0x208] sm:$0xf] }
  0x49   :  { %296 = vst [vmem:[#allocation2 + $0x208] sm:$0xf] %v295_v50  ;;  %298 = vst [vmem:[#allocation2 + $0x20c] sm:$0xf] %v297_v51  ;;  %v301_v53 = vld [vmem:[%s7536_s3 + $0x218] sm:$0xf] }
  0x4a   :  { %300 = vst [vmem:[#allocation2 + $0x210] sm:$0xf] %v299_v52  ;;  %v303_v54 = vld [vmem:[%s7536_s3 + $0x20c] sm:$0xf]  ;;  %302 = vst [vmem:[#allocation2 + $0x214] sm:$0xf] %v301_v53 }
  0x4b   :  { %304 = vst [vmem:[#allocation2 + $0x218] sm:$0xf] %v303_v54  ;;  %306 = vst [vmem:[#allocation2 + $0x21c] sm:$0xff] %v305_v55   ;;  %v309_v56 = vld [vmem:[%s7536_s3 + $0x230] sm:$0xf]  ;;  %v321_v62 = vld [vmem:[%s7536_s3 + $0x23c] sm:$0xff]  }
  0x4c   :  { %v311_v57 = vld [vmem:[%s7536_s3 + $0x224] sm:$0xf]  ;;  %v313_v58 = vld [vmem:[%s7536_s3 + $0x234] sm:$0xf]  ;;  %310 = vst [vmem:[#allocation2 + $0x224] sm:$0xf] %v309_v56 }
  0x4d   :  { %312 = vst [vmem:[#allocation2 + $0x228] sm:$0xf] %v311_v57  ;;  %314 = vst [vmem:[#allocation2 + $0x22c] sm:$0xf] %v313_v58  ;;  %v315_v59 = vld [vmem:[%s7536_s3 + $0x228] sm:$0xf] }
  0x4e   :  { %v317_v60 = vld [vmem:[%s7536_s3 + $0x238] sm:$0xf]  ;;  %v319_v61 = vld [vmem:[%s7536_s3 + $0x22c] sm:$0xf]  ;;  %316 = vst [vmem:[#allocation2 + $0x230] sm:$0xf] %v315_v59 }
  0x4f   :  { %318 = vst [vmem:[#allocation2 + $0x234] sm:$0xf] %v317_v60  ;;  %320 = vst [vmem:[#allocation2 + $0x238] sm:$0xf] %v319_v61  ;;  %v325_v63 = vld [vmem:[%s7536_s3 + $0x250] sm:$0xf] }
  0x50   :  { %v327_v0 = vld [vmem:[%s7536_s3 + $0x244] sm:$0xf]  ;;  %322 = vst [vmem:[#allocation2 + $0x23c] sm:$0xff] %v321_v62   ;;  %326 = vst [vmem:[#allocation2 + $0x244] sm:$0xf] %v325_v63  ;;  %v337_v5 = vld [vmem:[%s7536_s3 + $0x25c] sm:$0xff]  }
  0x51   :  { %328 = vst [vmem:[#allocation2 + $0x248] sm:$0xf] %v327_v0  ;;  %v329_v1 = vld [vmem:[%s7536_s3 + $0x254] sm:$0xf]  ;;  %v331_v2 = vld [vmem:[%s7536_s3 + $0x248] sm:$0xf] }
  0x52   :  { %v333_v3 = vld [vmem:[%s7536_s3 + $0x258] sm:$0xf]  ;;  %330 = vst [vmem:[#allocation2 + $0x24c] sm:$0xf] %v329_v1  ;;  %332 = vst [vmem:[#allocation2 + $0x250] sm:$0xf] %v331_v2 }
  0x53   :  { %334 = vst [vmem:[#allocation2 + $0x254] sm:$0xf] %v333_v3  ;;  %v335_v4 = vld [vmem:[%s7536_s3 + $0x24c] sm:$0xf]  ;;  %v341_v6 = vld [vmem:[%s7536_s3 + $0x270] sm:$0xf] }
  0x54   :  { %336 = vst [vmem:[#allocation2 + $0x258] sm:$0xf] %v335_v4  ;;  %338 = vst [vmem:[#allocation2 + $0x25c] sm:$0xff] %v337_v5   ;;  %v343_v7 = vld [vmem:[%s7536_s3 + $0x264] sm:$0xf]  ;;  %v353_v12 = vld [vmem:[%s7536_s3 + $0x27c] sm:$0xff]  }
  0x55   :  { %342 = vst [vmem:[#allocation2 + $0x264] sm:$0xf] %v341_v6  ;;  %v345_v8 = vld [vmem:[%s7536_s3 + $0x274] sm:$0xf]  ;;  %v347_v9 = vld [vmem:[%s7536_s3 + $0x268] sm:$0xf] }
  0x56   :  { %344 = vst [vmem:[#allocation2 + $0x268] sm:$0xf] %v343_v7  ;;  %346 = vst [vmem:[#allocation2 + $0x26c] sm:$0xf] %v345_v8  ;;  %v349_v10 = vld [vmem:[%s7536_s3 + $0x278] sm:$0xf] }
  0x57   :  { %348 = vst [vmem:[#allocation2 + $0x270] sm:$0xf] %v347_v9  ;;  %v351_v11 = vld [vmem:[%s7536_s3 + $0x26c] sm:$0xf]  ;;  %350 = vst [vmem:[#allocation2 + $0x274] sm:$0xf] %v349_v10 }
  0x58   :  { %352 = vst [vmem:[#allocation2 + $0x278] sm:$0xf] %v351_v11  ;;  %354 = vst [vmem:[#allocation2 + $0x27c] sm:$0xff] %v353_v12   ;;  %v357_v13 = vld [vmem:[%s7536_s3 + $0x290] sm:$0xf]  ;;  %v369_v19 = vld [vmem:[%s7536_s3 + $0x29c] sm:$0xff]  }
  0x59   :  { %v359_v14 = vld [vmem:[%s7536_s3 + $0x284] sm:$0xf]  ;;  %v361_v15 = vld [vmem:[%s7536_s3 + $0x294] sm:$0xf]  ;;  %358 = vst [vmem:[#allocation2 + $0x284] sm:$0xf] %v357_v13 }
  0x5a   :  { %360 = vst [vmem:[#allocation2 + $0x288] sm:$0xf] %v359_v14  ;;  %362 = vst [vmem:[#allocation2 + $0x28c] sm:$0xf] %v361_v15  ;;  %v363_v16 = vld [vmem:[%s7536_s3 + $0x288] sm:$0xf] }
  0x5b   :  { %v365_v17 = vld [vmem:[%s7536_s3 + $0x298] sm:$0xf]  ;;  %v367_v18 = vld [vmem:[%s7536_s3 + $0x28c] sm:$0xf]  ;;  %364 = vst [vmem:[#allocation2 + $0x290] sm:$0xf] %v363_v16 }
  0x5c   :  { %366 = vst [vmem:[#allocation2 + $0x294] sm:$0xf] %v365_v17  ;;  %368 = vst [vmem:[#allocation2 + $0x298] sm:$0xf] %v367_v18  ;;  %v373_v20 = vld [vmem:[%s7536_s3 + $0x2b0] sm:$0xf] }
  0x5d   :  { %v375_v21 = vld [vmem:[%s7536_s3 + $0x2a4] sm:$0xf]  ;;  %370 = vst [vmem:[#allocation2 + $0x29c] sm:$0xff] %v369_v19   ;;  %374 = vst [vmem:[#allocation2 + $0x2a4] sm:$0xf] %v373_v20  ;;  %v385_v26 = vld [vmem:[%s7536_s3 + $0x2bc] sm:$0xff]  }
  0x5e   :  { %376 = vst [vmem:[#allocation2 + $0x2a8] sm:$0xf] %v375_v21  ;;  %v377_v22 = vld [vmem:[%s7536_s3 + $0x2b4] sm:$0xf]  ;;  %v379_v23 = vld [vmem:[%s7536_s3 + $0x2a8] sm:$0xf] }
  0x5f   :  { %v381_v24 = vld [vmem:[%s7536_s3 + $0x2b8] sm:$0xf]  ;;  %378 = vst [vmem:[#allocation2 + $0x2ac] sm:$0xf] %v377_v22  ;;  %380 = vst [vmem:[#allocation2 + $0x2b0] sm:$0xf] %v379_v23 }
  0x60   :  { %382 = vst [vmem:[#allocation2 + $0x2b4] sm:$0xf] %v381_v24  ;;  %v383_v25 = vld [vmem:[%s7536_s3 + $0x2ac] sm:$0xf]  ;;  %v389_v27 = vld [vmem:[%s7536_s3 + $0x2d0] sm:$0xf] }
  0x61   :  { %384 = vst [vmem:[#allocation2 + $0x2b8] sm:$0xf] %v383_v25  ;;  %386 = vst [vmem:[#allocation2 + $0x2bc] sm:$0xff] %v385_v26   ;;  %v391_v28 = vld [vmem:[%s7536_s3 + $0x2c4] sm:$0xf]  ;;  %v401_v33 = vld [vmem:[%s7536_s3 + $0x2dc] sm:$0xff]  }
  0x62   :  { %390 = vst [vmem:[#allocation2 + $0x2c4] sm:$0xf] %v389_v27  ;;  %v393_v29 = vld [vmem:[%s7536_s3 + $0x2d4] sm:$0xf]  ;;  %v395_v30 = vld [vmem:[%s7536_s3 + $0x2c8] sm:$0xf] }
  0x63   :  { %392 = vst [vmem:[#allocation2 + $0x2c8] sm:$0xf] %v391_v28  ;;  %394 = vst [vmem:[#allocation2 + $0x2cc] sm:$0xf] %v393_v29  ;;  %v397_v31 = vld [vmem:[%s7536_s3 + $0x2d8] sm:$0xf] }
  0x64   :  { %396 = vst [vmem:[#allocation2 + $0x2d0] sm:$0xf] %v395_v30  ;;  %v399_v32 = vld [vmem:[%s7536_s3 + $0x2cc] sm:$0xf]  ;;  %398 = vst [vmem:[#allocation2 + $0x2d4] sm:$0xf] %v397_v31 }
  0x65   :  { %400 = vst [vmem:[#allocation2 + $0x2d8] sm:$0xf] %v399_v32  ;;  %402 = vst [vmem:[#allocation2 + $0x2dc] sm:$0xff] %v401_v33   ;;  %v405_v34 = vld [vmem:[%s7536_s3 + $0x2f0] sm:$0xf]  ;;  %v417_v40 = vld [vmem:[%s7536_s3 + $0x2fc] sm:$0xff]  }
  0x66   :  { %v407_v35 = vld [vmem:[%s7536_s3 + $0x2e4] sm:$0xf]  ;;  %v409_v36 = vld [vmem:[%s7536_s3 + $0x2f4] sm:$0xf]  ;;  %406 = vst [vmem:[#allocation2 + $0x2e4] sm:$0xf] %v405_v34 }
  0x67   :  { %408 = vst [vmem:[#allocation2 + $0x2e8] sm:$0xf] %v407_v35  ;;  %410 = vst [vmem:[#allocation2 + $0x2ec] sm:$0xf] %v409_v36  ;;  %v411_v37 = vld [vmem:[%s7536_s3 + $0x2e8] sm:$0xf] }
  0x68   :  { %v413_v38 = vld [vmem:[%s7536_s3 + $0x2f8] sm:$0xf]  ;;  %v415_v39 = vld [vmem:[%s7536_s3 + $0x2ec] sm:$0xf]  ;;  %412 = vst [vmem:[#allocation2 + $0x2f0] sm:$0xf] %v411_v37 }
  0x69   :  { %414 = vst [vmem:[#allocation2 + $0x2f4] sm:$0xf] %v413_v38  ;;  %416 = vst [vmem:[#allocation2 + $0x2f8] sm:$0xf] %v415_v39  ;;  %v421_v41 = vld [vmem:[%s7536_s3 + $0x310] sm:$0xf] }
  0x6a   :  { %v423_v42 = vld [vmem:[%s7536_s3 + $0x304] sm:$0xf]  ;;  %418 = vst [vmem:[#allocation2 + $0x2fc] sm:$0xff] %v417_v40   ;;  %422 = vst [vmem:[#allocation2 + $0x304] sm:$0xf] %v421_v41  ;;  %v433_v47 = vld [vmem:[%s7536_s3 + $0x31c] sm:$0xff]  }
  0x6b   :  { %424 = vst [vmem:[#allocation2 + $0x308] sm:$0xf] %v423_v42  ;;  %v425_v43 = vld [vmem:[%s7536_s3 + $0x314] sm:$0xf]  ;;  %v427_v44 = vld [vmem:[%s7536_s3 + $0x308] sm:$0xf] }
  0x6c   :  { %v429_v45 = vld [vmem:[%s7536_s3 + $0x318] sm:$0xf]  ;;  %426 = vst [vmem:[#allocation2 + $0x30c] sm:$0xf] %v425_v43  ;;  %428 = vst [vmem:[#allocation2 + $0x310] sm:$0xf] %v427_v44 }
  0x6d   :  { %430 = vst [vmem:[#allocation2 + $0x314] sm:$0xf] %v429_v45  ;;  %v431_v46 = vld [vmem:[%s7536_s3 + $0x30c] sm:$0xf]  ;;  %v437_v48 = vld [vmem:[%s7536_s3 + $0x330] sm:$0xf] }
  0x6e   :  { %432 = vst [vmem:[#allocation2 + $0x318] sm:$0xf] %v431_v46  ;;  %434 = vst [vmem:[#allocation2 + $0x31c] sm:$0xff] %v433_v47   ;;  %v439_v49 = vld [vmem:[%s7536_s3 + $0x324] sm:$0xf]  ;;  %v449_v54 = vld [vmem:[%s7536_s3 + $0x33c] sm:$0xff]  }
  0x6f   :  { %438 = vst [vmem:[#allocation2 + $0x324] sm:$0xf] %v437_v48  ;;  %v441_v50 = vld [vmem:[%s7536_s3 + $0x334] sm:$0xf]  ;;  %v443_v51 = vld [vmem:[%s7536_s3 + $0x328] sm:$0xf] }
  0x70   :  { %440 = vst [vmem:[#allocation2 + $0x328] sm:$0xf] %v439_v49  ;;  %442 = vst [vmem:[#allocation2 + $0x32c] sm:$0xf] %v441_v50  ;;  %v445_v52 = vld [vmem:[%s7536_s3 + $0x338] sm:$0xf] }
  0x71   :  { %444 = vst [vmem:[#allocation2 + $0x330] sm:$0xf] %v443_v51  ;;  %v447_v53 = vld [vmem:[%s7536_s3 + $0x32c] sm:$0xf]  ;;  %446 = vst [vmem:[#allocation2 + $0x334] sm:$0xf] %v445_v52 }
  0x72   :  { %448 = vst [vmem:[#allocation2 + $0x338] sm:$0xf] %v447_v53  ;;  %450 = vst [vmem:[#allocation2 + $0x33c] sm:$0xff] %v449_v54   ;;  %v453_v55 = vld [vmem:[%s7536_s3 + $0x350] sm:$0xf]  ;;  %v465_v61 = vld [vmem:[%s7536_s3 + $0x35c] sm:$0xff]  }
  0x73   :  { %v455_v56 = vld [vmem:[%s7536_s3 + $0x344] sm:$0xf]  ;;  %v457_v57 = vld [vmem:[%s7536_s3 + $0x354] sm:$0xf]  ;;  %454 = vst [vmem:[#allocation2 + $0x344] sm:$0xf] %v453_v55 }
  0x74   :  { %456 = vst [vmem:[#allocation2 + $0x348] sm:$0xf] %v455_v56  ;;  %458 = vst [vmem:[#allocation2 + $0x34c] sm:$0xf] %v457_v57  ;;  %v459_v58 = vld [vmem:[%s7536_s3 + $0x348] sm:$0xf] }
  0x75   :  { %v461_v59 = vld [vmem:[%s7536_s3 + $0x358] sm:$0xf]  ;;  %v463_v60 = vld [vmem:[%s7536_s3 + $0x34c] sm:$0xf]  ;;  %460 = vst [vmem:[#allocation2 + $0x350] sm:$0xf] %v459_v58 }
  0x76   :  { %462 = vst [vmem:[#allocation2 + $0x354] sm:$0xf] %v461_v59  ;;  %464 = vst [vmem:[#allocation2 + $0x358] sm:$0xf] %v463_v60  ;;  %v469_v62 = vld [vmem:[%s7536_s3 + $0x370] sm:$0xf] }
  0x77   :  { %v471_v63 = vld [vmem:[%s7536_s3 + $0x364] sm:$0xf]  ;;  %466 = vst [vmem:[#allocation2 + $0x35c] sm:$0xff] %v465_v61   ;;  %470 = vst [vmem:[#allocation2 + $0x364] sm:$0xf] %v469_v62  ;;  %v481_v4 = vld [vmem:[%s7536_s3 + $0x37c] sm:$0xff]  }
  0x78   :  { %472 = vst [vmem:[#allocation2 + $0x368] sm:$0xf] %v471_v63  ;;  %v473_v0 = vld [vmem:[%s7536_s3 + $0x374] sm:$0xf]  ;;  %v475_v1 = vld [vmem:[%s7536_s3 + $0x368] sm:$0xf] }
  0x79   :  { %v477_v2 = vld [vmem:[%s7536_s3 + $0x378] sm:$0xf]  ;;  %474 = vst [vmem:[#allocation2 + $0x36c] sm:$0xf] %v473_v0  ;;  %476 = vst [vmem:[#allocation2 + $0x370] sm:$0xf] %v475_v1 }
  0x7a   :  { %478 = vst [vmem:[#allocation2 + $0x374] sm:$0xf] %v477_v2  ;;  %v479_v3 = vld [vmem:[%s7536_s3 + $0x36c] sm:$0xf]  ;;  %v485_v5 = vld [vmem:[%s7536_s3 + $0x390] sm:$0xf] }
  0x7b   :  { %480 = vst [vmem:[#allocation2 + $0x378] sm:$0xf] %v479_v3  ;;  %482 = vst [vmem:[#allocation2 + $0x37c] sm:$0xff] %v481_v4   ;;  %v487_v6 = vld [vmem:[%s7536_s3 + $0x384] sm:$0xf]  ;;  %v497_v11 = vld [vmem:[%s7536_s3 + $0x39c] sm:$0xff]  }
  0x7c   :  { %486 = vst [vmem:[#allocation2 + $0x384] sm:$0xf] %v485_v5  ;;  %v489_v7 = vld [vmem:[%s7536_s3 + $0x394] sm:$0xf]  ;;  %v491_v8 = vld [vmem:[%s7536_s3 + $0x388] sm:$0xf] }
  0x7d   :  { %488 = vst [vmem:[#allocation2 + $0x388] sm:$0xf] %v487_v6  ;;  %490 = vst [vmem:[#allocation2 + $0x38c] sm:$0xf] %v489_v7  ;;  %v493_v9 = vld [vmem:[%s7536_s3 + $0x398] sm:$0xf] }
  0x7e   :  { %492 = vst [vmem:[#allocation2 + $0x390] sm:$0xf] %v491_v8  ;;  %v495_v10 = vld [vmem:[%s7536_s3 + $0x38c] sm:$0xf]  ;;  %494 = vst [vmem:[#allocation2 + $0x394] sm:$0xf] %v493_v9 }
  0x7f   :  { %496 = vst [vmem:[#allocation2 + $0x398] sm:$0xf] %v495_v10  ;;  %498 = vst [vmem:[#allocation2 + $0x39c] sm:$0xff] %v497_v11   ;;  %v501_v12 = vld [vmem:[%s7536_s3 + $0x3b0] sm:$0xf]  ;;  %v513_v18 = vld [vmem:[%s7536_s3 + $0x3bc] sm:$0xff]  }
  0x80   :  { %v503_v13 = vld [vmem:[%s7536_s3 + $0x3a4] sm:$0xf]  ;;  %v505_v14 = vld [vmem:[%s7536_s3 + $0x3b4] sm:$0xf]  ;;  %502 = vst [vmem:[#allocation2 + $0x3a4] sm:$0xf] %v501_v12 }
  0x81   :  { %504 = vst [vmem:[#allocation2 + $0x3a8] sm:$0xf] %v503_v13  ;;  %506 = vst [vmem:[#allocation2 + $0x3ac] sm:$0xf] %v505_v14  ;;  %v507_v15 = vld [vmem:[%s7536_s3 + $0x3a8] sm:$0xf] }
  0x82   :  { %v509_v16 = vld [vmem:[%s7536_s3 + $0x3b8] sm:$0xf]  ;;  %v511_v17 = vld [vmem:[%s7536_s3 + $0x3ac] sm:$0xf]  ;;  %508 = vst [vmem:[#allocation2 + $0x3b0] sm:$0xf] %v507_v15 }
  0x83   :  { %510 = vst [vmem:[#allocation2 + $0x3b4] sm:$0xf] %v509_v16  ;;  %512 = vst [vmem:[#allocation2 + $0x3b8] sm:$0xf] %v511_v17  ;;  %v517_v19 = vld [vmem:[%s7536_s3 + $0x3d0] sm:$0xf] }
  0x84   :  { %v519_v20 = vld [vmem:[%s7536_s3 + $0x3c4] sm:$0xf]  ;;  %514 = vst [vmem:[#allocation2 + $0x3bc] sm:$0xff] %v513_v18   ;;  %518 = vst [vmem:[#allocation2 + $0x3c4] sm:$0xf] %v517_v19  ;;  %v529_v25 = vld [vmem:[%s7536_s3 + $0x3dc] sm:$0xff]  }
  0x85   :  { %520 = vst [vmem:[#allocation2 + $0x3c8] sm:$0xf] %v519_v20  ;;  %v521_v21 = vld [vmem:[%s7536_s3 + $0x3d4] sm:$0xf]  ;;  %v523_v22 = vld [vmem:[%s7536_s3 + $0x3c8] sm:$0xf] }
  0x86   :  { %v525_v23 = vld [vmem:[%s7536_s3 + $0x3d8] sm:$0xf]  ;;  %522 = vst [vmem:[#allocation2 + $0x3cc] sm:$0xf] %v521_v21  ;;  %524 = vst [vmem:[#allocation2 + $0x3d0] sm:$0xf] %v523_v22 }
  0x87   :  { %526 = vst [vmem:[#allocation2 + $0x3d4] sm:$0xf] %v525_v23  ;;  %v527_v24 = vld [vmem:[%s7536_s3 + $0x3cc] sm:$0xf]  ;;  %v533_v26 = vld [vmem:[%s7536_s3 + $0x3f0] sm:$0xf] }
  0x88   :  { %528 = vst [vmem:[#allocation2 + $0x3d8] sm:$0xf] %v527_v24  ;;  %530 = vst [vmem:[#allocation2 + $0x3dc] sm:$0xff] %v529_v25   ;;  %v535_v27 = vld [vmem:[%s7536_s3 + $0x3e4] sm:$0xf] }
  0x89   :  { %534 = vst [vmem:[#allocation2 + $0x3e4] sm:$0xf] %v533_v26  ;;  %v537_v28 = vld [vmem:[%s7536_s3 + $0x3f4] sm:$0xf]  ;;  %v539_v29 = vld [vmem:[%s7536_s3 + $0x3e8] sm:$0xf] }
  0x8a   :  { %536 = vst [vmem:[#allocation2 + $0x3e8] sm:$0xf] %v535_v27  ;;  %538 = vst [vmem:[#allocation2 + $0x3ec] sm:$0xf] %v537_v28  ;;  %v541_v30 = vld [vmem:[%s7536_s3 + $0x3f8] sm:$0xf] }
  0x8b   :  { %540 = vst [vmem:[#allocation2 + $0x3f0] sm:$0xf] %v539_v29  ;;  %v543_v31 = vld [vmem:[%s7536_s3 + $0x3ec] sm:$0xf]  ;;  %v545_v32 = vld [vmem:[%s7536_s3 + $0x3fc] sm:$0xf] }
  0x8c   :  { %542 = vst [vmem:[#allocation2 + $0x3f4] sm:$0xf] %v541_v30  ;;  %544 = vst [vmem:[#allocation2 + $0x3f8] sm:$0xf] %v543_v31 }
  0x8d   :  { %546 = vst [vmem:[#allocation2 + $0x3fc] sm:$0xf] %v545_v32 }
  0x8e   :  { %1089 = vsyncadd [#allocation5], 16384  ;;  %v1108_v33 = vld [vmem:[%s7537_s4] sm:$0xf]  ;;  %v1110_v34 = vld [vmem:[%s7537_s4 + $0x8] sm:$0xf] }
  0x8f   :  { %1109 = vst [vmem:[#allocation3] sm:$0xf] %v1108_v33  ;;  %1111 = vst [vmem:[#allocation3 + $0x4] sm:$0xf] %v1110_v34  ;;  %v1112_v35 = vld [vmem:[%s7537_s4 + $0x4] sm:$0xf] }
  0x90   :  { %v1114_v36 = vld [vmem:[%s7537_s4 + $0xc] sm:$0xff]   ;;  %v1118_v37 = vld [vmem:[%s7537_s4 + $0x18] sm:$0xf]  ;;  %1113 = vst [vmem:[#allocation3 + $0x8] sm:$0xf] %v1112_v35  ;;  %v1122_v39 = vld [vmem:[%s7537_s4 + $0x1c] sm:$0xff]  }
  0x91   :  { %1115 = vst [vmem:[#allocation3 + $0xc] sm:$0xff] %v1114_v36   ;;  %1119 = vst [vmem:[#allocation3 + $0x14] sm:$0xf] %v1118_v37  ;;  %v1120_v38 = vld [vmem:[%s7537_s4 + $0x14] sm:$0xf]  ;;  %v1130_v42 = vld [vmem:[%s7537_s4 + $0x2c] sm:$0xff]  }
  0x92   :  { %v1126_v40 = vld [vmem:[%s7537_s4 + $0x28] sm:$0xf]  ;;  %1121 = vst [vmem:[#allocation3 + $0x18] sm:$0xf] %v1120_v38  ;;  %1123 = vst [vmem:[#allocation3 + $0x1c] sm:$0xff] %v1122_v39   ;;  %v1138_v45 = vld [vmem:[%s7537_s4 + $0x3c] sm:$0xff]  }
  0x93   :  { %1127 = vst [vmem:[#allocation3 + $0x24] sm:$0xf] %v1126_v40  ;;  %v1128_v41 = vld [vmem:[%s7537_s4 + $0x24] sm:$0xf]  ;;  %v1134_v43 = vld [vmem:[%s7537_s4 + $0x38] sm:$0xf] }
  0x94   :  { %1129 = vst [vmem:[#allocation3 + $0x28] sm:$0xf] %v1128_v41  ;;  %1131 = vst [vmem:[#allocation3 + $0x2c] sm:$0xff] %v1130_v42   ;;  %v1136_v44 = vld [vmem:[%s7537_s4 + $0x34] sm:$0xf]  ;;  %v1146_v48 = vld [vmem:[%s7537_s4 + $0x4c] sm:$0xff]  }
  0x95   :  { %1135 = vst [vmem:[#allocation3 + $0x34] sm:$0xf] %v1134_v43  ;;  %v1142_v46 = vld [vmem:[%s7537_s4 + $0x48] sm:$0xf]  ;;  %1137 = vst [vmem:[#allocation3 + $0x38] sm:$0xf] %v1136_v44 }
  0x96   :  { %1139 = vst [vmem:[#allocation3 + $0x3c] sm:$0xff] %v1138_v45   ;;  %1143 = vst [vmem:[#allocation3 + $0x44] sm:$0xf] %v1142_v46  ;;  %v1144_v47 = vld [vmem:[%s7537_s4 + $0x44] sm:$0xf]  ;;  %v1154_v51 = vld [vmem:[%s7537_s4 + $0x5c] sm:$0xff]  }
  0x97   :  { %v1150_v49 = vld [vmem:[%s7537_s4 + $0x58] sm:$0xf]  ;;  %1145 = vst [vmem:[#allocation3 + $0x48] sm:$0xf] %v1144_v47  ;;  %1147 = vst [vmem:[#allocation3 + $0x4c] sm:$0xff] %v1146_v48   ;;  %v1162_v54 = vld [vmem:[%s7537_s4 + $0x6c] sm:$0xff]  }
  0x98   :  { %1151 = vst [vmem:[#allocation3 + $0x54] sm:$0xf] %v1150_v49  ;;  %v1152_v50 = vld [vmem:[%s7537_s4 + $0x54] sm:$0xf]  ;;  %v1158_v52 = vld [vmem:[%s7537_s4 + $0x68] sm:$0xf] }
  0x99   :  { %1153 = vst [vmem:[#allocation3 + $0x58] sm:$0xf] %v1152_v50  ;;  %1155 = vst [vmem:[#allocation3 + $0x5c] sm:$0xff] %v1154_v51   ;;  %v1160_v53 = vld [vmem:[%s7537_s4 + $0x64] sm:$0xf]  ;;  %v1170_v57 = vld [vmem:[%s7537_s4 + $0x7c] sm:$0xff]  }
  0x9a   :  { %1159 = vst [vmem:[#allocation3 + $0x64] sm:$0xf] %v1158_v52  ;;  %v1166_v55 = vld [vmem:[%s7537_s4 + $0x78] sm:$0xf]  ;;  %1161 = vst [vmem:[#allocation3 + $0x68] sm:$0xf] %v1160_v53 }
  0x9b   :  { %1163 = vst [vmem:[#allocation3 + $0x6c] sm:$0xff] %v1162_v54   ;;  %1167 = vst [vmem:[#allocation3 + $0x74] sm:$0xf] %v1166_v55  ;;  %v1168_v56 = vld [vmem:[%s7537_s4 + $0x74] sm:$0xf]  ;;  %v1178_v60 = vld [vmem:[%s7537_s4 + $0x8c] sm:$0xff]  }
  0x9c   :  { %v1174_v58 = vld [vmem:[%s7537_s4 + $0x88] sm:$0xf]  ;;  %1169 = vst [vmem:[#allocation3 + $0x78] sm:$0xf] %v1168_v56  ;;  %1171 = vst [vmem:[#allocation3 + $0x7c] sm:$0xff] %v1170_v57   ;;  %v1186_v63 = vld [vmem:[%s7537_s4 + $0x9c] sm:$0xff]  }
  0x9d   :  { %1175 = vst [vmem:[#allocation3 + $0x84] sm:$0xf] %v1174_v58  ;;  %v1176_v59 = vld [vmem:[%s7537_s4 + $0x84] sm:$0xf]  ;;  %v1182_v61 = vld [vmem:[%s7537_s4 + $0x98] sm:$0xf] }
  0x9e   :  { %1177 = vst [vmem:[#allocation3 + $0x88] sm:$0xf] %v1176_v59  ;;  %1179 = vst [vmem:[#allocation3 + $0x8c] sm:$0xff] %v1178_v60   ;;  %v1184_v62 = vld [vmem:[%s7537_s4 + $0x94] sm:$0xf]  ;;  %v1194_v2 = vld [vmem:[%s7537_s4 + $0xac] sm:$0xff]  }
  0x9f   :  { %1183 = vst [vmem:[#allocation3 + $0x94] sm:$0xf] %v1182_v61  ;;  %v1190_v0 = vld [vmem:[%s7537_s4 + $0xa8] sm:$0xf]  ;;  %1185 = vst [vmem:[#allocation3 + $0x98] sm:$0xf] %v1184_v62 }
  0xa0   :  { %1187 = vst [vmem:[#allocation3 + $0x9c] sm:$0xff] %v1186_v63   ;;  %1191 = vst [vmem:[#allocation3 + $0xa4] sm:$0xf] %v1190_v0  ;;  %v1192_v1 = vld [vmem:[%s7537_s4 + $0xa4] sm:$0xf]  ;;  %v1202_v5 = vld [vmem:[%s7537_s4 + $0xbc] sm:$0xff]  }
  0xa1   :  { %v1198_v3 = vld [vmem:[%s7537_s4 + $0xb8] sm:$0xf]  ;;  %1193 = vst [vmem:[#allocation3 + $0xa8] sm:$0xf] %v1192_v1  ;;  %1195 = vst [vmem:[#allocation3 + $0xac] sm:$0xff] %v1194_v2   ;;  %v1210_v8 = vld [vmem:[%s7537_s4 + $0xcc] sm:$0xff]  }
  0xa2   :  { %1199 = vst [vmem:[#allocation3 + $0xb4] sm:$0xf] %v1198_v3  ;;  %v1200_v4 = vld [vmem:[%s7537_s4 + $0xb4] sm:$0xf]  ;;  %v1206_v6 = vld [vmem:[%s7537_s4 + $0xc8] sm:$0xf] }
  0xa3   :  { %1201 = vst [vmem:[#allocation3 + $0xb8] sm:$0xf] %v1200_v4  ;;  %1203 = vst [vmem:[#allocation3 + $0xbc] sm:$0xff] %v1202_v5   ;;  %v1208_v7 = vld [vmem:[%s7537_s4 + $0xc4] sm:$0xf]  ;;  %v1218_v11 = vld [vmem:[%s7537_s4 + $0xdc] sm:$0xff]  }
  0xa4   :  { %1207 = vst [vmem:[#allocation3 + $0xc4] sm:$0xf] %v1206_v6  ;;  %v1214_v9 = vld [vmem:[%s7537_s4 + $0xd8] sm:$0xf]  ;;  %1209 = vst [vmem:[#allocation3 + $0xc8] sm:$0xf] %v1208_v7 }
  0xa5   :  { %1211 = vst [vmem:[#allocation3 + $0xcc] sm:$0xff] %v1210_v8   ;;  %1215 = vst [vmem:[#allocation3 + $0xd4] sm:$0xf] %v1214_v9  ;;  %v1216_v10 = vld [vmem:[%s7537_s4 + $0xd4] sm:$0xf]  ;;  %v1226_v14 = vld [vmem:[%s7537_s4 + $0xec] sm:$0xff]  }
  0xa6   :  { %v1222_v12 = vld [vmem:[%s7537_s4 + $0xe8] sm:$0xf]  ;;  %1217 = vst [vmem:[#allocation3 + $0xd8] sm:$0xf] %v1216_v10  ;;  %1219 = vst [vmem:[#allocation3 + $0xdc] sm:$0xff] %v1218_v11   ;;  %v1234_v17 = vld [vmem:[%s7537_s4 + $0xfc] sm:$0xff]  }
  0xa7   :  { %1223 = vst [vmem:[#allocation3 + $0xe4] sm:$0xf] %v1222_v12  ;;  %v1224_v13 = vld [vmem:[%s7537_s4 + $0xe4] sm:$0xf]  ;;  %v1230_v15 = vld [vmem:[%s7537_s4 + $0xf8] sm:$0xf] }
  0xa8   :  { %1225 = vst [vmem:[#allocation3 + $0xe8] sm:$0xf] %v1224_v13  ;;  %1227 = vst [vmem:[#allocation3 + $0xec] sm:$0xff] %v1226_v14   ;;  %v1232_v16 = vld [vmem:[%s7537_s4 + $0xf4] sm:$0xf]  ;;  %v1242_v20 = vld [vmem:[%s7537_s4 + $0x10c] sm:$0xff]  }
  0xa9   :  { %1231 = vst [vmem:[#allocation3 + $0xf4] sm:$0xf] %v1230_v15  ;;  %v1238_v18 = vld [vmem:[%s7537_s4 + $0x108] sm:$0xf]  ;;  %1233 = vst [vmem:[#allocation3 + $0xf8] sm:$0xf] %v1232_v16 }
  0xaa   :  { %1235 = vst [vmem:[#allocation3 + $0xfc] sm:$0xff] %v1234_v17   ;;  %1239 = vst [vmem:[#allocation3 + $0x104] sm:$0xf] %v1238_v18  ;;  %v1240_v19 = vld [vmem:[%s7537_s4 + $0x104] sm:$0xf]  ;;  %v1250_v23 = vld [vmem:[%s7537_s4 + $0x11c] sm:$0xff]  }
  0xab   :  { %v1246_v21 = vld [vmem:[%s7537_s4 + $0x118] sm:$0xf]  ;;  %1241 = vst [vmem:[#allocation3 + $0x108] sm:$0xf] %v1240_v19  ;;  %1243 = vst [vmem:[#allocation3 + $0x10c] sm:$0xff] %v1242_v20   ;;  %v1258_v26 = vld [vmem:[%s7537_s4 + $0x12c] sm:$0xff]  }
  0xac   :  { %1247 = vst [vmem:[#allocation3 + $0x114] sm:$0xf] %v1246_v21  ;;  %v1248_v22 = vld [vmem:[%s7537_s4 + $0x114] sm:$0xf]  ;;  %v1254_v24 = vld [vmem:[%s7537_s4 + $0x128] sm:$0xf] }
  0xad   :  { %1249 = vst [vmem:[#allocation3 + $0x118] sm:$0xf] %v1248_v22  ;;  %1251 = vst [vmem:[#allocation3 + $0x11c] sm:$0xff] %v1250_v23   ;;  %v1256_v25 = vld [vmem:[%s7537_s4 + $0x124] sm:$0xf]  ;;  %v1266_v29 = vld [vmem:[%s7537_s4 + $0x13c] sm:$0xff]  }
  0xae   :  { %1255 = vst [vmem:[#allocation3 + $0x124] sm:$0xf] %v1254_v24  ;;  %v1262_v27 = vld [vmem:[%s7537_s4 + $0x138] sm:$0xf]  ;;  %1257 = vst [vmem:[#allocation3 + $0x128] sm:$0xf] %v1256_v25 }
  0xaf   :  { %1259 = vst [vmem:[#allocation3 + $0x12c] sm:$0xff] %v1258_v26   ;;  %1263 = vst [vmem:[#allocation3 + $0x134] sm:$0xf] %v1262_v27  ;;  %v1264_v28 = vld [vmem:[%s7537_s4 + $0x134] sm:$0xf]  ;;  %v1274_v32 = vld [vmem:[%s7537_s4 + $0x14c] sm:$0xff]  }
  0xb0   :  { %v1270_v30 = vld [vmem:[%s7537_s4 + $0x148] sm:$0xf]  ;;  %1265 = vst [vmem:[#allocation3 + $0x138] sm:$0xf] %v1264_v28  ;;  %1267 = vst [vmem:[#allocation3 + $0x13c] sm:$0xff] %v1266_v29   ;;  %v1282_v35 = vld [vmem:[%s7537_s4 + $0x15c] sm:$0xff]  }
  0xb1   :  { %1271 = vst [vmem:[#allocation3 + $0x144] sm:$0xf] %v1270_v30  ;;  %v1272_v31 = vld [vmem:[%s7537_s4 + $0x144] sm:$0xf]  ;;  %v1278_v33 = vld [vmem:[%s7537_s4 + $0x158] sm:$0xf] }
  0xb2   :  { %1273 = vst [vmem:[#allocation3 + $0x148] sm:$0xf] %v1272_v31  ;;  %1275 = vst [vmem:[#allocation3 + $0x14c] sm:$0xff] %v1274_v32   ;;  %v1280_v34 = vld [vmem:[%s7537_s4 + $0x154] sm:$0xf]  ;;  %v1290_v38 = vld [vmem:[%s7537_s4 + $0x16c] sm:$0xff]  }
  0xb3   :  { %1279 = vst [vmem:[#allocation3 + $0x154] sm:$0xf] %v1278_v33  ;;  %v1286_v36 = vld [vmem:[%s7537_s4 + $0x168] sm:$0xf]  ;;  %1281 = vst [vmem:[#allocation3 + $0x158] sm:$0xf] %v1280_v34 }
  0xb4   :  { %1283 = vst [vmem:[#allocation3 + $0x15c] sm:$0xff] %v1282_v35   ;;  %1287 = vst [vmem:[#allocation3 + $0x164] sm:$0xf] %v1286_v36  ;;  %v1288_v37 = vld [vmem:[%s7537_s4 + $0x164] sm:$0xf]  ;;  %v1298_v41 = vld [vmem:[%s7537_s4 + $0x17c] sm:$0xff]  }
  0xb5   :  { %v1294_v39 = vld [vmem:[%s7537_s4 + $0x178] sm:$0xf]  ;;  %1289 = vst [vmem:[#allocation3 + $0x168] sm:$0xf] %v1288_v37  ;;  %1291 = vst [vmem:[#allocation3 + $0x16c] sm:$0xff] %v1290_v38   ;;  %v1306_v44 = vld [vmem:[%s7537_s4 + $0x18c] sm:$0xff]  }
  0xb6   :  { %1295 = vst [vmem:[#allocation3 + $0x174] sm:$0xf] %v1294_v39  ;;  %v1296_v40 = vld [vmem:[%s7537_s4 + $0x174] sm:$0xf]  ;;  %v1302_v42 = vld [vmem:[%s7537_s4 + $0x188] sm:$0xf] }
  0xb7   :  { %1297 = vst [vmem:[#allocation3 + $0x178] sm:$0xf] %v1296_v40  ;;  %1299 = vst [vmem:[#allocation3 + $0x17c] sm:$0xff] %v1298_v41   ;;  %v1304_v43 = vld [vmem:[%s7537_s4 + $0x184] sm:$0xf]  ;;  %v1314_v47 = vld [vmem:[%s7537_s4 + $0x19c] sm:$0xff]  }
  0xb8   :  { %1303 = vst [vmem:[#allocation3 + $0x184] sm:$0xf] %v1302_v42  ;;  %v1310_v45 = vld [vmem:[%s7537_s4 + $0x198] sm:$0xf]  ;;  %1305 = vst [vmem:[#allocation3 + $0x188] sm:$0xf] %v1304_v43 }
  0xb9   :  { %1307 = vst [vmem:[#allocation3 + $0x18c] sm:$0xff] %v1306_v44   ;;  %1311 = vst [vmem:[#allocation3 + $0x194] sm:$0xf] %v1310_v45  ;;  %v1312_v46 = vld [vmem:[%s7537_s4 + $0x194] sm:$0xf]  ;;  %v1322_v50 = vld [vmem:[%s7537_s4 + $0x1ac] sm:$0xff]  }
  0xba   :  { %v1318_v48 = vld [vmem:[%s7537_s4 + $0x1a8] sm:$0xf]  ;;  %1313 = vst [vmem:[#allocation3 + $0x198] sm:$0xf] %v1312_v46  ;;  %1315 = vst [vmem:[#allocation3 + $0x19c] sm:$0xff] %v1314_v47   ;;  %v1330_v53 = vld [vmem:[%s7537_s4 + $0x1bc] sm:$0xff]  }
  0xbb   :  { %1319 = vst [vmem:[#allocation3 + $0x1a4] sm:$0xf] %v1318_v48  ;;  %v1320_v49 = vld [vmem:[%s7537_s4 + $0x1a4] sm:$0xf]  ;;  %v1326_v51 = vld [vmem:[%s7537_s4 + $0x1b8] sm:$0xf] }
  0xbc   :  { %1321 = vst [vmem:[#allocation3 + $0x1a8] sm:$0xf] %v1320_v49  ;;  %1323 = vst [vmem:[#allocation3 + $0x1ac] sm:$0xff] %v1322_v50   ;;  %v1328_v52 = vld [vmem:[%s7537_s4 + $0x1b4] sm:$0xf]  ;;  %v1338_v56 = vld [vmem:[%s7537_s4 + $0x1cc] sm:$0xff]  }
  0xbd   :  { %1327 = vst [vmem:[#allocation3 + $0x1b4] sm:$0xf] %v1326_v51  ;;  %v1334_v54 = vld [vmem:[%s7537_s4 + $0x1c8] sm:$0xf]  ;;  %1329 = vst [vmem:[#allocation3 + $0x1b8] sm:$0xf] %v1328_v52 }
  0xbe   :  { %1331 = vst [vmem:[#allocation3 + $0x1bc] sm:$0xff] %v1330_v53   ;;  %1335 = vst [vmem:[#allocation3 + $0x1c4] sm:$0xf] %v1334_v54  ;;  %v1336_v55 = vld [vmem:[%s7537_s4 + $0x1c4] sm:$0xf]  ;;  %v1346_v59 = vld [vmem:[%s7537_s4 + $0x1dc] sm:$0xff]  }
  0xbf   :  { %v1342_v57 = vld [vmem:[%s7537_s4 + $0x1d8] sm:$0xf]  ;;  %1337 = vst [vmem:[#allocation3 + $0x1c8] sm:$0xf] %v1336_v55  ;;  %1339 = vst [vmem:[#allocation3 + $0x1cc] sm:$0xff] %v1338_v56   ;;  %v1354_v62 = vld [vmem:[%s7537_s4 + $0x1ec] sm:$0xff]  }
  0xc0   :  { %1343 = vst [vmem:[#allocation3 + $0x1d4] sm:$0xf] %v1342_v57  ;;  %v1344_v58 = vld [vmem:[%s7537_s4 + $0x1d4] sm:$0xf]  ;;  %v1350_v60 = vld [vmem:[%s7537_s4 + $0x1e8] sm:$0xf] }
  0xc1   :  { %1345 = vst [vmem:[#allocation3 + $0x1d8] sm:$0xf] %v1344_v58  ;;  %1347 = vst [vmem:[#allocation3 + $0x1dc] sm:$0xff] %v1346_v59   ;;  %v1352_v61 = vld [vmem:[%s7537_s4 + $0x1e4] sm:$0xf] }
  0xc2   :  { %1351 = vst [vmem:[#allocation3 + $0x1e4] sm:$0xf] %v1350_v60  ;;  %v1358_v63 = vld [vmem:[%s7537_s4 + $0x1f8] sm:$0xf]  ;;  %1353 = vst [vmem:[#allocation3 + $0x1e8] sm:$0xf] %v1352_v61 }
  0xc3   :  { %1355 = vst [vmem:[#allocation3 + $0x1ec] sm:$0xff] %v1354_v62   ;;  %1359 = vst [vmem:[#allocation3 + $0x1f4] sm:$0xf] %v1358_v63  ;;  %v1360_v0 = vld [vmem:[%s7537_s4 + $0x1f4] sm:$0xf] }
  0xc4   :  { %v1362_v1 = vld [vmem:[%s7537_s4 + $0x1fc] sm:$0xf]  ;;  %1361 = vst [vmem:[#allocation3 + $0x1f8] sm:$0xf] %v1360_v0 }
  0xc5   :  { %1363 = vst [vmem:[#allocation3 + $0x1fc] sm:$0xf] %v1362_v1 }
  0xc6   :  { %1650 = vsyncadd [#allocation5 + $0x1], 8192  ;;  %v5738_v2 = vld [vmem:[%s7538_s5] sm:$0xff]  ;;  %v5743_v3 = vld [vmem:[%s7538_s5 + $0x8] sm:$0xff] }
  0xc7   :  { %7620 = vst [vmem:[#allocation12_spill] sm:$0xff] %v5738_v2  ;;  %7621 = vst [vmem:[#allocation13_spill] sm:$0xff] %v5743_v3  ;;  %v5748_v4 = vld [vmem:[%s7538_s5 + $0x10] sm:$0xff]  ;;  %v5753_v5 = vld [vmem:[%s7538_s5 + $0x18] sm:$0xff] }
  0xc8   :  { %7622 = vst [vmem:[#allocation14_spill] sm:$0xff] %v5748_v4  ;;  %7623 = vst [vmem:[#allocation15_spill] sm:$0xff] %v5753_v5  ;;  %v5758_v6 = vld [vmem:[%s7538_s5 + $0x20] sm:$0xff]  ;;  %v5763_v7 = vld [vmem:[%s7538_s5 + $0x28] sm:$0xff] }
  0xc9   :  { %7624 = vst [vmem:[#allocation16_spill] sm:$0xff] %v5758_v6  ;;  %7625 = vst [vmem:[#allocation17_spill] sm:$0xff] %v5763_v7  ;;  %v5768_v8 = vld [vmem:[%s7538_s5 + $0x30] sm:$0xff]  ;;  %v5773_v9 = vld [vmem:[%s7538_s5 + $0x38] sm:$0xff] }
  0xca   :  { %7626 = vst [vmem:[#allocation18_spill] sm:$0xff] %v5768_v8  ;;  %7627 = vst [vmem:[#allocation19_spill] sm:$0xff] %v5773_v9  ;;  %v5778_v10 = vld [vmem:[%s7538_s5 + $0x40] sm:$0xff]  ;;  %v5783_v11 = vld [vmem:[%s7538_s5 + $0x48] sm:$0xff] }
  0xcb   :  { %7628 = vst [vmem:[#allocation20_spill] sm:$0xff] %v5778_v10  ;;  %7629 = vst [vmem:[#allocation21_spill] sm:$0xff] %v5783_v11  ;;  %v5788_v12 = vld [vmem:[%s7538_s5 + $0x50] sm:$0xff]  ;;  %v5793_v13 = vld [vmem:[%s7538_s5 + $0x58] sm:$0xff] }
  0xcc   :  { %7630 = vst [vmem:[#allocation22_spill] sm:$0xff] %v5788_v12  ;;  %7631 = vst [vmem:[#allocation23_spill] sm:$0xff] %v5793_v13  ;;  %v5798_v14 = vld [vmem:[%s7538_s5 + $0x60] sm:$0xff]  ;;  %v5803_v15 = vld [vmem:[%s7538_s5 + $0x68] sm:$0xff] }
  0xcd   :  { %7632 = vst [vmem:[#allocation24_spill] sm:$0xff] %v5798_v14  ;;  %7633 = vst [vmem:[#allocation25_spill] sm:$0xff] %v5803_v15  ;;  %v5808_v16 = vld [vmem:[%s7538_s5 + $0x70] sm:$0xff]  ;;  %v5813_v17 = vld [vmem:[%s7538_s5 + $0x78] sm:$0xff] }
  0xce   :  { %7634 = vst [vmem:[#allocation26_spill] sm:$0xff] %v5808_v16  ;;  %7635 = vst [vmem:[#allocation27_spill] sm:$0xff] %v5813_v17 }
  0xcf   :  { %1723 = vsyncadd [#allocation5 + $0x2], 2048  ;;  %v4695_v18 = vld [vmem:[%s7534_s1 + $0x4] ss:$16 sps:$4 sm:$0xff]   ;;  %v4733_v19 = vmov 0   ;;  %v1729_v28 = vld [vmem:[%s7533_s0 + $0x8] sm:$0xff] }
  0xd0   :  { %1857 = vmatprep.mubr.bf16.mxu0 %v4733_v19  ;;  %1970 = vmatprep.mubr.bf16.mxu1 %v4733_v19  ;;  %v4697_v20 = vld [vmem:[%s7534_s1 + $0xc] ss:$16 sps:$4 sm:$0xff]   ;;  %v4699_v21 = vld [vmem:[%s7534_s1] ss:$16 sps:$4 sm:$0xff]   ;;  %v4700_v22 = vld [vmem:[%s7534_s1 + $0x8] ss:$16 sps:$4 sm:$0xff]  }
  0xd1   :  { %1825 = vmatprep.subr.bf16.mxu0 %v4695_v18  ;;  %v4701_v23 = vld [vmem:[%s7534_s1 + $0x24] ss:$16 sps:$4 sm:$0xff]   ;;  %1938 = vmatprep.subr.bf16.mxu1 %v4697_v20  ;;  %v4703_v24 = vld [vmem:[%s7534_s1 + $0x2c] ss:$16 sps:$4 sm:$0xff]   ;;  %v4705_v25 = vld [vmem:[%s7534_s1 + $0x20] ss:$16 sps:$4 sm:$0xff]  }
  0xd2   :  { %1826 = vmatpush1.bf16.msra.mxu0 %v4699_v21  ;;  %1939 = vmatpush1.bf16.msra.mxu1 %v4700_v22  ;;  %v4706_v26 = vld [vmem:[%s7534_s1 + $0x28] ss:$16 sps:$4 sm:$0xff]   ;;  %v1728_v27 = vld [vmem:[%s7533_s0] sm:$0xff]  ;;  %vm1800_vm0 = vcmask 261120   ;;  %v1730_v30 = vld [vmem:[%s7533_s0 + $0x10] sm:$0xff] }
  0xd3   :  { %1827 = vmatprep.subr.bf16.mxu0 %v4701_v23  ;;  %1940 = vmatprep.subr.bf16.mxu1 %v4703_v24  ;;  %v1744_v29 = vpack.c.bf16 %v1729_v28, %v1728_v27  ;;  %v1731_v31 = vld [vmem:[%s7533_s0 + $0x18] sm:$0xff]  ;;  %v1732_v33 = vld [vmem:[%s7533_s0 + $0x20] sm:$0xff]  ;;  %v1733_v34 = vld [vmem:[%s7533_s0 + $0x28] sm:$0xff] }
  0xd4   :  { %v1745_v32 = vpack.c.bf16 %v1731_v31, %v1730_v30  ;;  %v1746_v35 = vpack.c.bf16 %v1733_v34, %v1732_v33  ;;  %v1734_v36 = vld [vmem:[%s7533_s0 + $0x30] sm:$0xff]  ;;  %v1735_v37 = vld [vmem:[%s7533_s0 + $0x38] sm:$0xff]  ;;  %v1736_v39 = vld [vmem:[%s7533_s0 + $0x40] sm:$0xff] }
  0xd5   :  { %v1747_v38 = vpack.c.bf16 %v1735_v37, %v1734_v36  ;;  %v1737_v40 = vld [vmem:[%s7533_s0 + $0x48] sm:$0xff]  ;;  %v1738_v42 = vld [vmem:[%s7533_s0 + $0x50] sm:$0xff]  ;;  %v1739_v43 = vld [vmem:[%s7533_s0 + $0x58] sm:$0xff] }
  0xd6   :  { %1828 = vmatpush1.bf16.msra.mxu0 %v4705_v25  ;;  %1941 = vmatpush1.bf16.msra.mxu1 %v4706_v26  ;;  %v1748_v41 = vpack.c.bf16 %v1737_v40, %v1736_v39  ;;  %v1749_v44 = vpack.c.bf16 %v1739_v43, %v1738_v42  ;;  %v1740_v45 = vld [vmem:[%s7533_s0 + $0x60] sm:$0xff]  ;;  %v1741_v46 = vld [vmem:[%s7533_s0 + $0x68] sm:$0xff]  ;;  %v1742_v48 = vld [vmem:[%s7533_s0 + $0x70] sm:$0xff] }
  0xd7   :  { %v1750_v47 = vpack.c.bf16 %v1741_v46, %v1740_v45  ;;  %v1743_v49 = vld [vmem:[%s7533_s0 + $0x78] sm:$0xff] }
  0xd8   :  { %v1751_v50 = vpack.c.bf16 %v1743_v49, %v1742_v48 }
  0xd9   :  { %4483 = vmatmul.mubr.msk.bf16.vlgmr.msra.gmra.mrb[0].mxu0 %vm1800_vm0, %v1744_v29  ;;  %4491 = vmatmul.mubr.msk.bf16.vlgmr.msra.gmra.mrb[0].mxu1 %vm1800_vm0, %v1744_v29 }
  0xda   :  { %1867 = vmatprep.mubr.bf16.mxu0 %v4733_v19  ;;  %1980 = vmatprep.mubr.bf16.mxu1 %v4733_v19 }
  0xe1   :  { %4484 = vmatmul.mubr.msk.bf16.gmra.mrb[4].mxu0 %vm1800_vm0, %v1745_v32  ;;  %4492 = vmatmul.mubr.msk.bf16.gmra.mrb[4].mxu1 %vm1800_vm0, %v1745_v32 }
  0xe2   :  { %1877 = vmatprep.mubr.bf16.mxu0 %v4733_v19  ;;  %1990 = vmatprep.mubr.bf16.mxu1 %v4733_v19 }
  0xe9   :  { %4485 = vmatmul.mubr.msk.bf16.gmra.mrb[8].mxu0 %vm1800_vm0, %v1746_v35  ;;  %4493 = vmatmul.mubr.msk.bf16.gmra.mrb[8].mxu1 %vm1800_vm0, %v1746_v35 }
  0xea   :  { %1887 = vmatprep.mubr.bf16.mxu0 %v4733_v19  ;;  %2000 = vmatprep.mubr.bf16.mxu1 %v4733_v19 }
  0xf1   :  { %4486 = vmatmul.mubr.msk.bf16.gmra.mrb[12].mxu0 %vm1800_vm0, %v1747_v38  ;;  %4494 = vmatmul.mubr.msk.bf16.gmra.mrb[12].mxu1 %vm1800_vm0, %v1747_v38 }
  0xf2   :  { %1897 = vmatprep.mubr.bf16.mxu0 %v4733_v19  ;;  %2010 = vmatprep.mubr.bf16.mxu1 %v4733_v19 }
  0xf9   :  { %4487 = vmatmul.mubr.msk.bf16.gmra.mrb[16].mxu0 %vm1800_vm0, %v1748_v41  ;;  %4495 = vmatmul.mubr.msk.bf16.gmra.mrb[16].mxu1 %vm1800_vm0, %v1748_v41 }
  0xfa   :  { %1907 = vmatprep.mubr.bf16.mxu0 %v4733_v19  ;;  %2020 = vmatprep.mubr.bf16.mxu1 %v4733_v19 }
 0x101   :  { %4488 = vmatmul.mubr.msk.bf16.gmra.mrb[20].mxu0 %vm1800_vm0, %v1749_v44  ;;  %4496 = vmatmul.mubr.msk.bf16.gmra.mrb[20].mxu1 %vm1800_vm0, %v1749_v44 }
 0x102   :  { %1917 = vmatprep.mubr.bf16.mxu0 %v4733_v19  ;;  %2030 = vmatprep.mubr.bf16.mxu1 %v4733_v19 }
 0x109   :  { %4489 = vmatmul.mubr.msk.bf16.gmra.mrb[24].mxu0 %vm1800_vm0, %v1750_v47  ;;  %4497 = vmatmul.mubr.msk.bf16.gmra.mrb[24].mxu1 %vm1800_vm0, %v1750_v47 }
 0x10a   :  { %1927 = vmatprep.mubr.bf16.mxu0 %v4733_v19  ;;  %2040 = vmatprep.mubr.bf16.mxu1 %v4733_v19 }
 0x111   :  { %4490 = vmatmul.mubr.msk.bf16.gmra.mrb[28].mxu0 %vm1800_vm0, %v1751_v50  ;;  %4498 = vmatmul.mubr.msk.bf16.gmra.mrb[28].mxu1 %vm1800_vm0, %v1751_v50 }
 0x1ac   :  { %v5919_v51 = vpop.f32.mrb[0].mxu0  ;;  %v5921_v52 = vpop.f32.mrb[0].mxu1 }
 0x1ad   :  { %v5923_v53 = vpop.f32.mrb[1].mxu0  ;;  %v2139_v54 = vmul.f32 %v5919_v51, %v5919_v51  ;;  %v5927_v55 = vpop.f32.mrb[1].mxu1  ;;  %v2141_v57 = vmul.f32 %v5921_v52, %v5921_v52 }
 0x1ae   :  { %7636 = vst [vmem:[#allocation28_spill] sm:$0xff] %v5923_v53  ;;  %7637 = vst [vmem:[#allocation29_spill] sm:$0xff] %v5927_v55  ;;  %v5929_v56 = vpop.f32.mrb[2].mxu0  ;;  %v2140_v58 = vmul.f32 %v5923_v53, %v5923_v53  ;;  %v5939_v61 = vpop.f32.mrb[2].mxu1  ;;  %v2142_v20 = vmul.f32 %v5927_v55, %v5927_v55 }
 0x1af   :  { %v2051_v59 = vadd.f32 %v5929_v56, %v5919_v51  ;;  %v2143_v60 = vmul.f32 %v5929_v56, %v5929_v56  ;;  %v5941_v62 = vpop.f32.mrb[3].mxu0  ;;  %v2093_v63 = vadd.f32 %v5939_v61, %v5921_v52  ;;  %v2145_v0 = vmul.f32 %v5939_v61, %v5939_v61  ;;  %v5951_v19 = vpop.f32.mrb[3].mxu1 }
 0x1b0   :  { %7638 = vst [vmem:[#allocation30_spill] sm:$0xff] %v5941_v62  ;;  %v2072_v1 = vadd.f32 %v5941_v62, %v5923_v53  ;;  %v2144_v18 = vmul.f32 %v5941_v62, %v5941_v62  ;;  %7639 = vst [vmem:[#allocation31_spill] sm:$0xff] %v5951_v19  ;;  %v2114_v22 = vadd.f32 %v5951_v19, %v5927_v55 }
 0x1b1   :  { %v2203_v21 = vadd.f32 %v2143_v60, %v2139_v54  ;;  %v2146_v23 = vmul.f32 %v5951_v19, %v5951_v19  ;;  %v2245_v24 = vadd.f32 %v2145_v0, %v2141_v57 }
 0x1b2   :  { %v2224_v25 = vadd.f32 %v2144_v18, %v2140_v58 }
 0x1b3   :  { %v2266_v26 = vadd.f32 %v2146_v23, %v2142_v20 }
 0x1b4   :  { %v5959_v27 = vpop.f32.mrb[4].mxu0  ;;  %v5964_v30 = vpop.f32.mrb[4].mxu1 }
 0x1b5   :  { %v2052_v28 = vadd.f32 %v2051_v59, %v5959_v27  ;;  %v2147_v29 = vmul.f32 %v5959_v27, %v5959_v27  ;;  %v5966_v31 = vpop.f32.mrb[5].mxu0  ;;  %v2094_v32 = vadd.f32 %v2093_v63, %v5964_v30  ;;  %v2149_v33 = vmul.f32 %v5964_v30, %v5964_v30  ;;  %v5974_v36 = vpop.f32.mrb[5].mxu1 }
 0x1b6   :  { %7640 = vst [vmem:[#allocation32_spill] sm:$0xff] %v5966_v31  ;;  %v2073_v34 = vadd.f32 %v2072_v1, %v5966_v31  ;;  %v2148_v35 = vmul.f32 %v5966_v31, %v5966_v31  ;;  %7641 = vst [vmem:[#allocation33_spill] sm:$0xff] %v5974_v36  ;;  %v5976_v37 = vpop.f32.mrb[6].mxu0  ;;  %v2115_v39 = vadd.f32 %v2114_v22, %v5974_v36  ;;  %v5982_v42 = vpop.f32.mrb[6].mxu1 }
 0x1b7   :  { %v2204_v38 = vadd.f32 %v2203_v21, %v2147_v29  ;;  %v2150_v40 = vmul.f32 %v5974_v36, %v5974_v36  ;;  %v2053_v41 = vadd.f32 %v2052_v28, %v5976_v37  ;;  %v5984_v43 = vpop.f32.mrb[7].mxu0  ;;  %v2246_v44 = vadd.f32 %v2245_v24, %v2149_v33  ;;  %v5989_v48 = vpop.f32.mrb[7].mxu1 }
 0x1b8   :  { %7642 = vst [vmem:[#allocation34_spill] sm:$0xff] %v5984_v43  ;;  %v2225_v45 = vadd.f32 %v2224_v25, %v2148_v35  ;;  %v2151_v46 = vmul.f32 %v5976_v37, %v5976_v37  ;;  %v2095_v47 = vadd.f32 %v2094_v32, %v5982_v42  ;;  %7643 = vst [vmem:[#allocation35_spill] sm:$0xff] %v5989_v48 }
 0x1b9   :  { %v2267_v49 = vadd.f32 %v2266_v26, %v2150_v40  ;;  %v2153_v50 = vmul.f32 %v5982_v42, %v5982_v42  ;;  %v2074_v54 = vadd.f32 %v2073_v34, %v5984_v43  ;;  %v2152_v57 = vmul.f32 %v5984_v43, %v5984_v43 }
 0x1ba   :  { %v2205_v58 = vadd.f32 %v2204_v38, %v2151_v46  ;;  %v2116_v59 = vadd.f32 %v2115_v39, %v5989_v48  ;;  %v2154_v60 = vmul.f32 %v5989_v48, %v5989_v48 }
 0x1bb   :  { %v2247_v63 = vadd.f32 %v2246_v44, %v2153_v50  ;;  %v2226_v0 = vadd.f32 %v2225_v45, %v2152_v57 }
 0x1bc   :  { %v2268_v1 = vadd.f32 %v2267_v49, %v2154_v60  ;;  %v5999_v18 = vpop.f32.mrb[8].mxu0  ;;  %v6004_v22 = vpop.f32.mrb[8].mxu1 }
 0x1bd   :  { %v2054_v20 = vadd.f32 %v2053_v41, %v5999_v18  ;;  %v2155_v21 = vmul.f32 %v5999_v18, %v5999_v18  ;;  %v6006_v23 = vpop.f32.mrb[9].mxu0  ;;  %v2096_v24 = vadd.f32 %v2095_v47, %v6004_v22  ;;  %v2157_v25 = vmul.f32 %v6004_v22, %v6004_v22  ;;  %v6014_v29 = vpop.f32.mrb[9].mxu1 }
 0x1be   :  { %7644 = vst [vmem:[#allocation36_spill] sm:$0xff] %v6006_v23  ;;  %v2075_v26 = vadd.f32 %v2074_v54, %v6006_v23  ;;  %v2156_v28 = vmul.f32 %v6006_v23, %v6006_v23  ;;  %7645 = vst [vmem:[#allocation37_spill] sm:$0xff] %v6014_v29  ;;  %v6016_v32 = vpop.f32.mrb[10].mxu0  ;;  %v2117_v34 = vadd.f32 %v2116_v59, %v6014_v29  ;;  %v6022_v39 = vpop.f32.mrb[10].mxu1 }
 0x1bf   :  { %v2206_v33 = vadd.f32 %v2205_v58, %v2155_v21  ;;  %v2158_v35 = vmul.f32 %v6014_v29, %v6014_v29  ;;  %v2055_v38 = vadd.f32 %v2054_v20, %v6016_v32  ;;  %v6024_v40 = vpop.f32.mrb[11].mxu0  ;;  %v2248_v41 = vadd.f32 %v2247_v63, %v2157_v25  ;;  %v6029_v47 = vpop.f32.mrb[11].mxu1 }
 0x1c0   :  { %7646 = vst [vmem:[#allocation38_spill] sm:$0xff] %v6024_v40  ;;  %v2227_v44 = vadd.f32 %v2226_v0, %v2156_v28  ;;  %v2159_v45 = vmul.f32 %v6016_v32, %v6016_v32  ;;  %v2097_v46 = vadd.f32 %v2096_v24, %v6022_v39  ;;  %7647 = vst [vmem:[#allocation39_spill] sm:$0xff] %v6029_v47 }
 0x1c1   :  { %v2269_v49 = vadd.f32 %v2268_v1, %v2158_v35  ;;  %v2161_v50 = vmul.f32 %v6022_v39, %v6022_v39  ;;  %v2076_v54 = vadd.f32 %v2075_v26, %v6024_v40  ;;  %v2160_v57 = vmul.f32 %v6024_v40, %v6024_v40 }
 0x1c2   :  { %v2207_v58 = vadd.f32 %v2206_v33, %v2159_v45  ;;  %v2118_v59 = vadd.f32 %v2117_v34, %v6029_v47  ;;  %v2162_v60 = vmul.f32 %v6029_v47, %v6029_v47 }
 0x1c3   :  { %v2249_v63 = vadd.f32 %v2248_v41, %v2161_v50  ;;  %v2228_v0 = vadd.f32 %v2227_v44, %v2160_v57 }
 0x1c4   :  { %v2270_v20 = vadd.f32 %v2269_v49, %v2162_v60  ;;  %v6039_v21 = vpop.f32.mrb[12].mxu0  ;;  %v6044_v25 = vpop.f32.mrb[12].mxu1 }
 0x1c5   :  { %v2056_v1 = vadd.f32 %v2055_v38, %v6039_v21  ;;  %v2163_v24 = vmul.f32 %v6039_v21, %v6039_v21  ;;  %v6046_v26 = vpop.f32.mrb[13].mxu0  ;;  %v2098_v28 = vadd.f32 %v2097_v46, %v6044_v25  ;;  %v2165_v33 = vmul.f32 %v6044_v25, %v6044_v25  ;;  %v6054_v41 = vpop.f32.mrb[13].mxu1 }
 0x1c6   :  { %7648 = vst [vmem:[#allocation40_spill] sm:$0xff] %v6046_v26  ;;  %v2077_v34 = vadd.f32 %v2076_v54, %v6046_v26  ;;  %v2164_v35 = vmul.f32 %v6046_v26, %v6046_v26  ;;  %7649 = vst [vmem:[#allocation41_spill] sm:$0xff] %v6054_v41  ;;  %v6056_v38 = vpop.f32.mrb[14].mxu0  ;;  %v2119_v45 = vadd.f32 %v2118_v59, %v6054_v41  ;;  %v6062_v50 = vpop.f32.mrb[14].mxu1 }
 0x1c7   :  { %v2208_v44 = vadd.f32 %v2207_v58, %v2163_v24  ;;  %v2166_v49 = vmul.f32 %v6054_v41, %v6054_v41  ;;  %v2057_v46 = vadd.f32 %v2056_v1, %v6056_v38  ;;  %v6064_v57 = vpop.f32.mrb[15].mxu0  ;;  %v2250_v54 = vadd.f32 %v2249_v63, %v2165_v33  ;;  %v6069_v8 = vpop.f32.mrb[15].mxu1 }
 0x1c8   :  { %7650 = vst [vmem:[#allocation42_spill] sm:$0xff] %v6064_v57  ;;  %v2229_v60 = vadd.f32 %v2228_v0, %v2164_v35  ;;  %v2167_v9 = vmul.f32 %v6056_v38, %v6056_v38  ;;  %v2099_v17 = vadd.f32 %v2098_v28, %v6062_v50  ;;  %7651 = vst [vmem:[#allocation43_spill] sm:$0xff] %v6069_v8 }
 0x1c9   :  { %v2271_v58 = vadd.f32 %v2270_v20, %v2166_v49  ;;  %v2169_v59 = vmul.f32 %v6062_v50, %v6062_v50  ;;  %v2078_v24 = vadd.f32 %v2077_v34, %v6064_v57  ;;  %v2168_v1 = vmul.f32 %v6064_v57, %v6064_v57 }
 0x1ca   :  { %v2209_v16 = vadd.f32 %v2208_v44, %v2167_v9  ;;  %v2120_v63 = vadd.f32 %v2119_v45, %v6069_v8  ;;  %v2170_v0 = vmul.f32 %v6069_v8, %v6069_v8 }
 0x1cb   :  { %v2251_v33 = vadd.f32 %v2250_v54, %v2169_v59  ;;  %v2230_v35 = vadd.f32 %v2229_v60, %v2168_v1 }
 0x1cc   :  { %v2272_v28 = vadd.f32 %v2271_v58, %v2170_v0  ;;  %v6079_v7 = vpop.f32.mrb[16].mxu0  ;;  %v6084_v34 = vpop.f32.mrb[16].mxu1 }
 0x1cd   :  { %v2058_v20 = vadd.f32 %v2057_v46, %v6079_v7  ;;  %v2171_v49 = vmul.f32 %v6079_v7, %v6079_v7  ;;  %v6086_v15 = vpop.f32.mrb[17].mxu0  ;;  %v2100_v9 = vadd.f32 %v2099_v17, %v6084_v34  ;;  %v2173_v44 = vmul.f32 %v6084_v34, %v6084_v34  ;;  %v6094_v60 = vpop.f32.mrb[17].mxu1 }
 0x1ce   :  { %7652 = vst [vmem:[#allocation44_spill] sm:$0xff] %v6086_v15  ;;  %v2079_v45 = vadd.f32 %v2078_v24, %v6086_v15  ;;  %v2172_v54 = vmul.f32 %v6086_v15, %v6086_v15  ;;  %7653 = vst [vmem:[#allocation45_spill] sm:$0xff] %v6094_v60  ;;  %v6096_v46 = vpop.f32.mrb[18].mxu0  ;;  %v2121_v59 = vadd.f32 %v2120_v63, %v6094_v60  ;;  %v6102_v0 = vpop.f32.mrb[18].mxu1 }
 0x1cf   :  { %v2210_v58 = vadd.f32 %v2209_v16, %v2171_v49  ;;  %v2174_v1 = vmul.f32 %v6094_v60, %v6094_v60  ;;  %v2059_v17 = vadd.f32 %v2058_v20, %v6096_v46  ;;  %v6104_v6 = vpop.f32.mrb[19].mxu0  ;;  %v2252_v24 = vadd.f32 %v2251_v33, %v2173_v44  ;;  %v6109_v4 = vpop.f32.mrb[19].mxu1 }
 0x1d0   :  { %7654 = vst [vmem:[#allocation46_spill] sm:$0xff] %v6104_v6  ;;  %v2231_v14 = vadd.f32 %v2230_v35, %v2172_v54  ;;  %v2175_v5 = vmul.f32 %v6096_v46, %v6096_v46  ;;  %v2101_v13 = vadd.f32 %v2100_v9, %v6102_v0  ;;  %7655 = vst [vmem:[#allocation47_spill] sm:$0xff] %v6109_v4 }
 0x1d1   :  { %v2273_v16 = vadd.f32 %v2272_v28, %v2174_v1  ;;  %v2177_v63 = vmul.f32 %v6102_v0, %v6102_v0  ;;  %v2080_v49 = vadd.f32 %v2079_v45, %v6104_v6  ;;  %v2176_v20 = vmul.f32 %v6104_v6, %v6104_v6 }
 0x1d2   :  { %v2211_v12 = vadd.f32 %v2210_v58, %v2175_v5  ;;  %v2122_v33 = vadd.f32 %v2121_v59, %v6109_v4  ;;  %v2178_v35 = vmul.f32 %v6109_v4, %v6109_v4 }
 0x1d3   :  { %v2253_v44 = vadd.f32 %v2252_v24, %v2177_v63  ;;  %v2232_v54 = vadd.f32 %v2231_v14, %v2176_v20 }
 0x1d4   :  { %v2274_v9 = vadd.f32 %v2273_v16, %v2178_v35  ;;  %v6119_v3 = vpop.f32.mrb[20].mxu0  ;;  %v6124_v45 = vpop.f32.mrb[20].mxu1 }
 0x1d5   :  { %v2060_v28 = vadd.f32 %v2059_v17, %v6119_v3  ;;  %v2179_v1 = vmul.f32 %v6119_v3, %v6119_v3  ;;  %v6126_v11 = vpop.f32.mrb[21].mxu0  ;;  %v2102_v5 = vadd.f32 %v2101_v13, %v6124_v45  ;;  %v2181_v58 = vmul.f32 %v6124_v45, %v6124_v45  ;;  %v6134_v24 = vpop.f32.mrb[21].mxu1 }
 0x1d6   :  { %7656 = vst [vmem:[#allocation48_spill] sm:$0xff] %v6126_v11  ;;  %v2081_v59 = vadd.f32 %v2080_v49, %v6126_v11  ;;  %v2180_v14 = vmul.f32 %v6126_v11, %v6126_v11  ;;  %7657 = vst [vmem:[#allocation49_spill] sm:$0xff] %v6134_v24  ;;  %v6136_v17 = vpop.f32.mrb[22].mxu0  ;;  %v2123_v63 = vadd.f32 %v2122_v33, %v6134_v24  ;;  %v6142_v35 = vpop.f32.mrb[22].mxu1 }
 0x1d7   :  { %v2212_v16 = vadd.f32 %v2211_v12, %v2179_v1  ;;  %v2182_v20 = vmul.f32 %v6134_v24, %v6134_v24  ;;  %v2061_v13 = vadd.f32 %v2060_v28, %v6136_v17  ;;  %v6144_v2 = vpop.f32.mrb[23].mxu0  ;;  %v2254_v49 = vadd.f32 %v2253_v44, %v2181_v58  ;;  %v6149_v8 = vpop.f32.mrb[23].mxu1 }
 0x1d8   :  { %7658 = vst [vmem:[#allocation50_spill] sm:$0xff] %v6144_v2  ;;  %v2233_v10 = vadd.f32 %v2232_v54, %v2180_v14  ;;  %v2183_v4 = vmul.f32 %v6136_v17, %v6136_v17  ;;  %v2103_v60 = vadd.f32 %v2102_v5, %v6142_v35  ;;  %7659 = vst [vmem:[#allocation51_spill] sm:$0xff] %v6149_v8 }
 0x1d9   :  { %v2275_v12 = vadd.f32 %v2274_v9, %v2182_v20  ;;  %v2185_v33 = vmul.f32 %v6142_v35, %v6142_v35  ;;  %v2082_v1 = vadd.f32 %v2081_v59, %v6144_v2  ;;  %v2184_v28 = vmul.f32 %v6144_v2, %v6144_v2 }
 0x1da   :  { %v2213_v24 = vadd.f32 %v2212_v16, %v2183_v4  ;;  %v2124_v44 = vadd.f32 %v2123_v63, %v6149_v8  ;;  %v2186_v54 = vmul.f32 %v6149_v8, %v6149_v8 }
 0x1db   :  { %v2255_v58 = vadd.f32 %v2254_v49, %v2185_v33  ;;  %v2234_v14 = vadd.f32 %v2233_v10, %v2184_v28 }
 0x1dc   :  { %v2276_v5 = vadd.f32 %v2275_v12, %v2186_v54  ;;  %v6159_v41 = vpop.f32.mrb[24].mxu0  ;;  %v6164_v59 = vpop.f32.mrb[24].mxu1 }
 0x1dd   :  { %v2062_v9 = vadd.f32 %v2061_v13, %v6159_v41  ;;  %v2187_v20 = vmul.f32 %v6159_v41, %v6159_v41  ;;  %v6166_v47 = vpop.f32.mrb[25].mxu0  ;;  %v2104_v4 = vadd.f32 %v2103_v60, %v6164_v59  ;;  %v2189_v16 = vmul.f32 %v6164_v59, %v6164_v59  ;;  %v6174_v49 = vpop.f32.mrb[25].mxu1 }
 0x1de   :  { %7660 = vst [vmem:[#allocation52_spill] sm:$0xff] %v6166_v47  ;;  %v2083_v63 = vadd.f32 %v2082_v1, %v6166_v47  ;;  %v2188_v10 = vmul.f32 %v6166_v47, %v6166_v47  ;;  %7661 = vst [vmem:[#allocation53_spill] sm:$0xff] %v6174_v49  ;;  %v6176_v13 = vpop.f32.mrb[26].mxu0  ;;  %v2125_v33 = vadd.f32 %v2124_v44, %v6174_v49  ;;  %v6182_v54 = vpop.f32.mrb[26].mxu1 }
 0x1df   :  { %v2214_v12 = vadd.f32 %v2213_v24, %v2187_v20  ;;  %v2190_v28 = vmul.f32 %v6174_v49, %v6174_v49  ;;  %v2063_v60 = vadd.f32 %v2062_v9, %v6176_v13  ;;  %v6184_v8 = vpop.f32.mrb[27].mxu0  ;;  %v2256_v1 = vadd.f32 %v2255_v58, %v2189_v16  ;;  %v6189_v19 = vpop.f32.mrb[27].mxu1 }
 0x1e0   :  { %7662 = vst [vmem:[#allocation54_spill] sm:$0xff] %v6184_v8  ;;  %v2235_v29 = vadd.f32 %v2234_v14, %v2188_v10  ;;  %v2191_v48 = vmul.f32 %v6176_v13, %v6176_v13  ;;  %v2105_v36 = vadd.f32 %v2104_v4, %v6182_v54  ;;  %7663 = vst [vmem:[#allocation55_spill] sm:$0xff] %v6189_v19 }
 0x1e1   :  { %v2277_v24 = vadd.f32 %v2276_v5, %v2190_v28  ;;  %v2193_v44 = vmul.f32 %v6182_v54, %v6182_v54  ;;  %v2084_v20 = vadd.f32 %v2083_v63, %v6184_v8  ;;  %v2192_v9 = vmul.f32 %v6184_v8, %v6184_v8 }
 0x1e2   :  { %v2215_v49 = vadd.f32 %v2214_v12, %v2191_v48  ;;  %v2126_v58 = vadd.f32 %v2125_v33, %v6189_v19  ;;  %v2194_v14 = vmul.f32 %v6189_v19, %v6189_v19 }
 0x1e3   :  { %v2257_v16 = vadd.f32 %v2256_v1, %v2193_v44  ;;  %v2236_v10 = vadd.f32 %v2235_v29, %v2192_v9 }
 0x1e4   :  { %v2278_v4 = vadd.f32 %v2277_v24, %v2194_v14  ;;  %v6199_v55 = vpop.f32.mrb[28].mxu0  ;;  %v6204_v63 = vpop.f32.mrb[28].mxu1 }
 0x1e5   :  { %v2064_v5 = vadd.f32 %v2063_v60, %v6199_v55  ;;  %v2195_v28 = vmul.f32 %v6199_v55, %v6199_v55  ;;  %7664 = vst [vmem:[#allocation56_spill] sm:$0xff] %v6204_v63  ;;  %v6206_v47 = vpop.f32.mrb[29].mxu0  ;;  %v2106_v48 = vadd.f32 %v2105_v36, %v6204_v63  ;;  %v2197_v12 = vmul.f32 %v6204_v63, %v6204_v63  ;;  %v6214_v1 = vpop.f32.mrb[29].mxu1 }
 0x1e6   :  { %7665 = vst [vmem:[#allocation57_spill] sm:$0xff] %v6206_v47  ;;  %v2085_v33 = vadd.f32 %v2084_v20, %v6206_v47  ;;  %v2196_v29 = vmul.f32 %v6206_v47, %v6206_v47  ;;  %7666 = vst [vmem:[#allocation58_spill] sm:$0xff] %v6214_v1  ;;  %v6216_v60 = vpop.f32.mrb[30].mxu0  ;;  %v2127_v44 = vadd.f32 %v2126_v58, %v6214_v1  ;;  %v6222_v14 = vpop.f32.mrb[30].mxu1 }
 0x1e7   :  { %v2216_v24 = vadd.f32 %v2215_v49, %v2195_v28  ;;  %v2198_v9 = vmul.f32 %v6214_v1, %v6214_v1  ;;  %v2065_v36 = vadd.f32 %v2064_v5, %v6216_v60  ;;  %7667 = vst [vmem:[#allocation59_spill] sm:$0xff] %v6222_v14  ;;  %v6224_v19 = vpop.f32.mrb[31].mxu0  ;;  %v2258_v20 = vadd.f32 %v2257_v16, %v2197_v12  ;;  %v6229_v11 = vpop.f32.mrb[31].mxu1 }
 0x1e8   :  { %7668 = vst [vmem:[#allocation60_spill] sm:$0xff] %v6224_v19  ;;  %v2237_v8 = vadd.f32 %v2236_v10, %v2196_v29  ;;  %v2199_v47 = vmul.f32 %v6216_v60, %v6216_v60  ;;  %v2107_v2 = vadd.f32 %v2106_v48, %v6222_v14  ;;  %7669 = vst [vmem:[#allocation61_spill] sm:$0xff] %v6229_v11 }
 0x1e9   :  { %v2279_v49 = vadd.f32 %v2278_v4, %v2198_v9  ;;  %v2066_v58 = vrot.slane %v2065_v36, 4  ;;  %v2201_v28 = vmul.f32 %v6222_v14, %v6222_v14  ;;  %v2086_v5 = vadd.f32 %v2085_v33, %v6224_v19 }
 0x1ea   :  { %v2217_v1 = vadd.f32 %v2216_v24, %v2199_v47  ;;  %v2108_v6 = vrot.slane %v2107_v2, 4  ;;  %v2200_v16 = vmul.f32 %v6224_v19, %v6224_v19  ;;  %v2128_v10 = vadd.f32 %v2127_v44, %v6229_v11 }
 0x1eb   :  { %v2067_v12 = vadd.f32 %v2066_v58, %v2065_v36  ;;  %v2259_v29 = vadd.f32 %v2258_v20, %v2201_v28  ;;  %v2087_v15 = vrot.slane %v2086_v5, 4  ;;  %v2202_v48 = vmul.f32 %v6229_v11, %v6229_v11 }
 0x1ec   :  { %v2218_v4 = vrot.slane %v2217_v1, 4  ;;  %v2109_v9 = vadd.f32 %v2108_v6, %v2107_v2  ;;  %v2238_v57 = vadd.f32 %v2237_v8, %v2200_v16  ;;  %v2129_v26 = vrot.slane %v2128_v10, 4 }
 0x1ed   :  { %v2068_v40 = vrot.slane %v2067_v12, 2  ;;  %v2260_v23 = vrot.slane %v2259_v29, 4  ;;  %v2088_v33 = vadd.f32 %v2087_v15, %v2086_v5  ;;  %v2280_v47 = vadd.f32 %v2279_v49, %v2202_v48 }
 0x1ee   :  { %v2219_v24 = vadd.f32 %v2218_v4, %v2217_v1  ;;  %v2110_v43 = vrot.slane %v2109_v9, 2  ;;  %v2239_v31 = vrot.slane %v2238_v57, 4  ;;  %v2130_v19 = vadd.f32 %v2129_v26, %v2128_v10 }
 0x1ef   :  { %v2069_v62 = vadd.f32 %v2068_v40, %v2067_v12  ;;  %v2261_v44 = vadd.f32 %v2260_v23, %v2259_v29  ;;  %v2089_v36 = vrot.slane %v2088_v33, 2  ;;  %v2281_v20 = vrot.slane %v2280_v47, 4 }
 0x1f0   :  { %v2220_v58 = vrot.slane %v2219_v24, 2  ;;  %v2111_v28 = vadd.f32 %v2110_v43, %v2109_v9  ;;  %v2240_v53 = vadd.f32 %v2239_v31, %v2238_v57  ;;  %v2131_v11 = vrot.slane %v2130_v19, 2 }
 0x1f1   :  { %v2070_v14 = vrot.slane %v2069_v62, 1  ;;  %v2262_v2 = vrot.slane %v2261_v44, 2  ;;  %v2090_v6 = vadd.f32 %v2089_v36, %v2088_v33  ;;  %v2282_v8 = vadd.f32 %v2281_v20, %v2280_v47 }
 0x1f2   :  { %v2221_v16 = vadd.f32 %v2220_v58, %v2219_v24  ;;  %v2112_v63 = vrot.slane %v2111_v28, 1  ;;  %v2241_v15 = vrot.slane %v2240_v53, 2  ;;  %v2132_v49 = vadd.f32 %v2131_v11, %v2130_v19 }
 0x1f3   :  { %v2071_v1 = vadd.f32 %v2070_v14, %v2069_v62  ;;  %v2263_v5 = vadd.f32 %v2262_v2, %v2261_v44  ;;  %v2091_v48 = vrot.slane %v2090_v6, 1  ;;  %v2283_v26 = vrot.slane %v2282_v8, 2 }
 0x1f4   :  { %v2222_v40 = vrot.slane %v2221_v16, 1  ;;  %v2113_v23 = vadd.f32 %v2112_v63, %v2111_v28  ;;  %v2242_v10 = vadd.f32 %v2241_v15, %v2240_v53  ;;  %v2133_v12 = vrot.slane %v2132_v49, 1 }
 0x1f5   :  { %v2135_v29 = vmul.f32 0.0078125, %v2071_v1  ;;  %v2264_v43 = vrot.slane %v2263_v5, 1  ;;  %v2092_v31 = vadd.f32 %v2091_v48, %v2090_v6  ;;  %v2284_v57 = vadd.f32 %v2283_v26, %v2282_v8 }
 0x1f6   :  { %v2223_v4 = vadd.f32 %v2222_v40, %v2221_v16  ;;  %v2137_v9 = vmul.f32 0.0078125, %v2113_v23  ;;  %v2243_v33 = vrot.slane %v2242_v10, 1  ;;  %v2134_v47 = vadd.f32 %v2133_v12, %v2132_v49 }
 0x1f7   :  { %v2291_v24 = vmul.f32 %v2135_v29, %v2135_v29  ;;  %v2265_v36 = vadd.f32 %v2264_v43, %v2263_v5  ;;  %v6239_v20 = vmul.f32 0.0078125, %v2092_v31  ;;  %v2285_v11 = vrot.slane %v2284_v57, 1 }
 0x1f8   :  { %v2287_v62 = vmul.f32 0.0078125, %v2223_v4  ;;  %v2293_v19 = vmul.f32 %v2137_v9, %v2137_v9  ;;  %v2244_v14 = vadd.f32 %v2243_v33, %v2242_v10  ;;  %v6241_v44 = vmul.f32 0.0078125, %v2134_v47  ;;  %v6260_v33 = vld [vmem:[%s7535_s2 + $0x10] sm:$0xff] }
 0x1f9   :  { %v2289_v53 = vmul.f32 0.0078125, %v2265_v36  ;;  %v2292_v63 = vmul.f32 %v6239_v20, %v6239_v20  ;;  %v2286_v58 = vadd.f32 %v2285_v11, %v2284_v57  ;;  %v2335_v12 = vlaneseq  ;;  %v6252_v57 = vld [vmem:[%s7535_s2] sm:$0xff]  ;;  %7672 = vst [vmem:[#allocation64_spill] sm:$0xff] %v6260_v33  ;;  %v6266_v11 = vld [vmem:[%s7535_s2 + $0x8] sm:$0xff] }
 0x1fa   :  { %v2295_v28 = vsub.f32 %v2287_v62, %v2291_v24  ;;  %v2288_v2 = vmul.f32 0.0078125, %v2244_v14  ;;  %v2294_v6 = vmul.f32 %v6241_v44, %v6241_v44  ;;  %7671 = vst [vmem:[#allocation63_spill] sm:$0xff] %v6252_v57  ;;  %7673 = vst [vmem:[#allocation65_spill] sm:$0xff] %v6266_v11  ;;  %v6271_v62 = vld [vmem:[%s7535_s2 + $0x18] sm:$0xff] }
 0x1fb   :  { %v2297_v8 = vsub.f32 %v2289_v53, %v2293_v19  ;;  %v2290_v16 = vmul.f32 0.0078125, %v2286_v58  ;;  %v6247_v31 = vshrl.u32 %v2335_v12, 7  ;;  %7674 = vst [vmem:[#allocation66_spill] sm:$0xff] %v6271_v62 }
 0x1fc   :  { %v2299_v15 = vmax.f32 %v2295_v28, 0.0  ;;  %v2296_v49 = vsub.f32 %v2288_v2, %v2292_v63 }
 0x1fd   :  { %v2301_v1 = vmax.f32 %v2297_v8, 0.0  ;;  %v2298_v5 = vsub.f32 %v2290_v16, %v2294_v6  ;;  %7670 = vst [vmem:[#allocation62_spill] sm:$0xff] %v6247_v31  ;;  %v6255_v4 = vsub.s32 0, %v6247_v31  ;;  %v6276_v28 = vsub.s32 1, %v6247_v31 }
 0x1fe   :  { %v2303_v48 = vadd.f32 1e-05, %v2299_v15  ;;  %v2300_v26 = vmax.f32 %v2296_v49, 0.0 }
 0x1ff   :  { %v2305_v40 = vadd.f32 1e-05, %v2301_v1  ;;  %v2302_v23 = vmax.f32 %v2298_v5, 0.0 }
 0x200   :  { %4707 = vrsqrt.f32 %v2303_v48  ;;  %v2304_v10 = vadd.f32 1e-05, %v2300_v26 }
 0x201   :  { %4709 = vrsqrt.f32 %v2305_v40  ;;  %v2306_v43 = vadd.f32 1e-05, %v2302_v23 }
 0x202   :  { %4711 = vrsqrt.f32 %v2304_v10 }
 0x203   :  { %4713 = vrsqrt.f32 %v2306_v43 }
 0x20a   :  { %v4708_v47 = vpop.eup %4707 }
 0x20b   :  { %v4710_v24 = vpop.eup %4709  ;;  %v2311_v36 = vmul.f32 %v4708_v47, %v6252_v57 }
 0x20c   :  { %v4712_v19 = vpop.eup %4711  ;;  %v2313_v14 = vmul.f32 %v4710_v24, %v6260_v33 }
 0x20d   :  { %v4714_v53 = vpop.eup %4713  ;;  %v2315_v63 = vmul.f32 %v2311_v36, %v2135_v29  ;;  %v2338_v58 = vrot.slane %v2311_v36, %v6255_v4  ;;  %v6284_v8 = vmul.f32 %v4712_v19, %v6266_v11 }
 0x20e   :  { %v6278_v2 = vmul.f32 %v2313_v14, %v2137_v9  ;;  %v6281_v6 = vrot.slane %v2313_v14, %v6255_v4  ;;  %v6287_v16 = vmul.f32 %v4714_v53, %v6271_v62 }
 0x20f   :  { %v2323_v15 = vrot.slane %v2315_v63, 7  ;;  %v2351_v49 = vmul.f32 %v2338_v58, %v5919_v51  ;;  %v2355_v29 = vmul.f32 %v2338_v58, %v5929_v56  ;;  %v2359_v1 = vmul.f32 %v2338_v58, %v5959_v27 }
 0x210   :  { %v2363_v5 = vmul.f32 %v2338_v58, %v5976_v37  ;;  %v2367_v9 = vmul.f32 %v2338_v58, %v5999_v18  ;;  %v2371_v48 = vmul.f32 %v2338_v58, %v6016_v32  ;;  %v2375_v26 = vmul.f32 %v2338_v58, %v6039_v21 }
 0x211   :  { %v2331_v40 = vsub.f32 %v6252_v57, %v2323_v15  ;;  %v2379_v23 = vmul.f32 %v2338_v58, %v6056_v38  ;;  %v2383_v10 = vmul.f32 %v2338_v58, %v6079_v7  ;;  %v2387_v51 = vmul.f32 %v2338_v58, %v6096_v46 }
 0x212   :  { %v2391_v56 = vmul.f32 %v2338_v58, %v6119_v3  ;;  %v2395_v27 = vmul.f32 %v2338_v58, %v6136_v17  ;;  %v2399_v37 = vmul.f32 %v2338_v58, %v6159_v41  ;;  %v2403_v18 = vmul.f32 %v2338_v58, %v6176_v13 }
 0x213   :  { %v2407_v32 = vmul.f32 %v2338_v58, %v6199_v55  ;;  %v2411_v21 = vmul.f32 %v2338_v58, %v6216_v60  ;;  %v2418_v12 = vrot.slane %v2331_v40, %v6276_v28  ;;  %v2325_v38 = vrot.slane %v6278_v2, 7 }
 0x214   :  { %v2353_v7 = vmul.f32 %v6281_v6, %v5921_v52  ;;  %v2357_v3 = vmul.f32 %v6281_v6, %v5939_v61  ;;  %v2361_v46 = vmul.f32 %v6281_v6, %v5964_v30  ;;  %v2365_v41 = vmul.f32 %v6281_v6, %v5982_v42 }
 0x215   :  { %v2431_v17 = vadd.f32 %v2418_v12, %v2351_v49  ;;  %v2435_v55 = vadd.f32 %v2418_v12, %v2355_v29  ;;  %v2439_v13 = vadd.f32 %v2418_v12, %v2359_v1  ;;  %v2443_v60 = vadd.f32 %v2418_v12, %v2363_v5 }
 0x216   :  { %v2447_v43 = vadd.f32 %v2418_v12, %v2367_v9  ;;  %v2451_v47 = vadd.f32 %v2418_v12, %v2371_v48  ;;  %v2455_v24 = vadd.f32 %v2418_v12, %v2375_v26  ;;  %v2459_v36 = vadd.f32 %v2418_v12, %v2379_v23 }
 0x217   :  { %v2463_v19 = vadd.f32 %v2418_v12, %v2383_v10  ;;  %v2467_v14 = vadd.f32 %v2418_v12, %v2387_v51  ;;  %v2471_v52 = vadd.f32 %v2418_v12, %v2391_v56  ;;  %v2475_v53 = vadd.f32 %v2418_v12, %v2395_v27 }
 0x218   :  { %v2479_v63 = vadd.f32 %v2418_v12, %v2399_v37  ;;  %v2483_v61 = vadd.f32 %v2418_v12, %v2403_v18  ;;  %v2487_v58 = vadd.f32 %v2418_v12, %v2407_v32  ;;  %v2491_v2 = vadd.f32 %v2418_v12, %v2411_v21 }
 0x219   :  { %v2495_v30 = vmax.f32 %v2431_v17, 0.0  ;;  %v2499_v15 = vmax.f32 %v2435_v55, 0.0  ;;  %v2503_v40 = vmax.f32 %v2439_v13, 0.0  ;;  %v2507_v42 = vmax.f32 %v2443_v60, 0.0 }
 0x21a   :  { %v2511_v49 = vmax.f32 %v2447_v43, 0.0  ;;  %v2515_v29 = vmax.f32 %v2451_v47, 0.0  ;;  %v2519_v1 = vmax.f32 %v2455_v24, 0.0  ;;  %v2523_v5 = vmax.f32 %v2459_v36, 0.0 }
 0x21b   :  { %v2527_v9 = vmax.f32 %v2463_v19, 0.0  ;;  %v2531_v48 = vmax.f32 %v2467_v14, 0.0  ;;  %v2535_v26 = vmax.f32 %v2471_v52, 0.0  ;;  %v2539_v23 = vmax.f32 %v2475_v53, 0.0  ;;  %v7675_v52 = vld [vmem:[#allocation56_spill] sm:$0xff]  ;;  %v7676_v53 = vld [vmem:[#allocation59_spill] sm:$0xff] }
 0x21c   :  { %v2543_v10 = vmax.f32 %v2479_v63, 0.0  ;;  %v2547_v51 = vmax.f32 %v2483_v61, 0.0  ;;  %v2551_v56 = vmax.f32 %v2487_v58, 0.0  ;;  %v2555_v27 = vmax.f32 %v2491_v2, 0.0 }
 0x21d   :  { %v6316_v37 = vpack.c.bf16 %v2499_v15, %v2495_v30  ;;  %v6318_v18 = vpack.c.bf16 %v2507_v42, %v2503_v40  ;;  %v6320_v32 = vpack.c.bf16 %v2515_v29, %v2511_v49  ;;  %v6322_v21 = vpack.c.bf16 %v2523_v5, %v2519_v1 }
 0x21e   :  { %v6324_v12 = vpack.c.bf16 %v2531_v48, %v2527_v9  ;;  %v6326_v17 = vpack.c.bf16 %v2539_v23, %v2535_v26  ;;  %v6328_v55 = vpack.c.bf16 %v2547_v51, %v2543_v10  ;;  %v6330_v13 = vpack.c.bf16 %v2555_v27, %v2551_v56 }
 0x21f   :  { %v2333_v60 = vsub.f32 %v6260_v33, %v2325_v38  ;;  %v2369_v43 = vmul.f32 %v6281_v6, %v6004_v22  ;;  %v2373_v47 = vmul.f32 %v6281_v6, %v6022_v39  ;;  %v2377_v24 = vmul.f32 %v6281_v6, %v6044_v25 }
 0x220   :  { %v2381_v36 = vmul.f32 %v6281_v6, %v6062_v50  ;;  %v2385_v19 = vmul.f32 %v6281_v6, %v6084_v34  ;;  %v2389_v14 = vmul.f32 %v6281_v6, %v6102_v0  ;;  %v2393_v38 = vmul.f32 %v6281_v6, %v6124_v45 }
 0x221   :  { %v2397_v22 = vmul.f32 %v6281_v6, %v6142_v35  ;;  %v2401_v39 = vmul.f32 %v6281_v6, %v6164_v59  ;;  %v2405_v25 = vmul.f32 %v6281_v6, %v6182_v54  ;;  %v2409_v50 = vmul.f32 %v6281_v6, %v7675_v52  ;;  %v7677_v52 = vld [vmem:[#allocation28_spill] sm:$0xff] }
 0x222   :  { %v2413_v34 = vmul.f32 %v6281_v6, %v7676_v53  ;;  %v2426_v0 = vrot.slane %v2333_v60, %v6276_v28  ;;  %v2316_v45 = vmul.f32 %v6284_v8, %v6239_v20  ;;  %v2342_v35 = vrot.slane %v6284_v8, %v6255_v4  ;;  %v7678_v53 = vld [vmem:[#allocation30_spill] sm:$0xff] }
 0x223   :  { %v6364_v59 = vmul.f32 %v6287_v16, %v6241_v44  ;;  %v6368_v54 = vrot.slane %v6287_v16, %v6255_v4 }
 0x224   :  { %v2433_v63 = vadd.f32 %v2426_v0, %v2353_v7  ;;  %v2437_v61 = vadd.f32 %v2426_v0, %v2357_v3  ;;  %v2441_v58 = vadd.f32 %v2426_v0, %v2361_v46  ;;  %v2445_v6 = vadd.f32 %v2426_v0, %v2365_v41 }
 0x225   :  { %v2449_v2 = vadd.f32 %v2426_v0, %v2369_v43  ;;  %v2453_v30 = vadd.f32 %v2426_v0, %v2373_v47  ;;  %v2457_v15 = vadd.f32 %v2426_v0, %v2377_v24  ;;  %v2461_v40 = vadd.f32 %v2426_v0, %v2381_v36 }
 0x226   :  { %v2465_v20 = vadd.f32 %v2426_v0, %v2385_v19  ;;  %v2469_v42 = vadd.f32 %v2426_v0, %v2389_v14  ;;  %v2473_v49 = vadd.f32 %v2426_v0, %v2393_v38  ;;  %v2477_v8 = vadd.f32 %v2426_v0, %v2397_v22 }
 0x227   :  { %v2481_v29 = vadd.f32 %v2426_v0, %v2401_v39  ;;  %v2485_v1 = vadd.f32 %v2426_v0, %v2405_v25  ;;  %v2489_v44 = vadd.f32 %v2426_v0, %v2409_v50  ;;  %v2493_v5 = vadd.f32 %v2426_v0, %v2413_v34  ;;  %v7679_v0 = vld [vmem:[#allocation32_spill] sm:$0xff] }
 0x228   :  { %v2497_v9 = vmax.f32 %v2433_v63, 0.0  ;;  %v2501_v48 = vmax.f32 %v2437_v61, 0.0  ;;  %v2505_v4 = vmax.f32 %v2441_v58, 0.0  ;;  %v2509_v16 = vmax.f32 %v2445_v6, 0.0  ;;  %v7680_v61 = vld [vmem:[#allocation34_spill] sm:$0xff]  ;;  %v7681_v6 = vld [vmem:[#allocation36_spill] sm:$0xff] }
 0x229   :  { %v2513_v7 = vmax.f32 %v2449_v2, 0.0  ;;  %v2517_v3 = vmax.f32 %v2453_v30, 0.0  ;;  %v2521_v46 = vmax.f32 %v2457_v15, 0.0  ;;  %v2525_v41 = vmax.f32 %v2461_v40, 0.0  ;;  %v7682_v30 = vld [vmem:[#allocation38_spill] sm:$0xff]  ;;  %v7683_v40 = vld [vmem:[#allocation40_spill] sm:$0xff] }
 0x22a   :  { %v2529_v26 = vmax.f32 %v2465_v20, 0.0  ;;  %v2533_v23 = vmax.f32 %v2469_v42, 0.0  ;;  %v2537_v10 = vmax.f32 %v2473_v49, 0.0  ;;  %v2541_v51 = vmax.f32 %v2477_v8, 0.0  ;;  %v7684_v49 = vld [vmem:[#allocation42_spill] sm:$0xff] }
 0x22b   :  { %v2545_v56 = vmax.f32 %v2481_v29, 0.0  ;;  %v2549_v27 = vmax.f32 %v2485_v1, 0.0  ;;  %v2553_v60 = vmax.f32 %v2489_v44, 0.0  ;;  %v2557_v43 = vmax.f32 %v2493_v5, 0.0  ;;  %v7685_v29 = vld [vmem:[#allocation44_spill] sm:$0xff]  ;;  %v7686_v1 = vld [vmem:[#allocation46_spill] sm:$0xff] }
 0x22c   :  { %v6370_v47 = vpack.c.bf16 %v2501_v48, %v2497_v9  ;;  %v6372_v24 = vpack.c.bf16 %v2509_v16, %v2505_v4  ;;  %v6374_v36 = vpack.c.bf16 %v2517_v3, %v2513_v7  ;;  %v6376_v19 = vpack.c.bf16 %v2525_v41, %v2521_v46  ;;  %v7687_v5 = vld [vmem:[#allocation48_spill] sm:$0xff]  ;;  %v7688_v48 = vld [vmem:[#allocation50_spill] sm:$0xff]  ;;  %v7691_v41 = vld [vmem:[#allocation57_spill] sm:$0xff] }
 0x22d   :  { %v6378_v14 = vpack.c.bf16 %v2533_v23, %v2529_v26  ;;  %v6380_v38 = vpack.c.bf16 %v2541_v51, %v2537_v10  ;;  %v6382_v22 = vpack.c.bf16 %v2549_v27, %v2545_v56  ;;  %v6384_v39 = vpack.c.bf16 %v2557_v43, %v2553_v60  ;;  %v7689_v16 = vld [vmem:[#allocation52_spill] sm:$0xff]  ;;  %v7690_v3 = vld [vmem:[#allocation54_spill] sm:$0xff]  ;;  %v7693_v27 = vld [vmem:[#allocation29_spill] sm:$0xff] }
 0x22e   :  { %v2324_v25 = vrot.slane %v2316_v45, 7  ;;  %v2352_v50 = vmul.f32 %v2342_v35, %v7677_v52  ;;  %v2356_v34 = vmul.f32 %v2342_v35, %v7678_v53  ;;  %v2360_v63 = vmul.f32 %v2342_v35, %v7679_v0  ;;  %v7692_v23 = vld [vmem:[#allocation60_spill] sm:$0xff]  ;;  %v7694_v43 = vld [vmem:[#allocation31_spill] sm:$0xff]  ;;  %v7695_v52 = vld [vmem:[#allocation33_spill] sm:$0xff] }
 0x22f   :  { %v2364_v58 = vmul.f32 %v2342_v35, %v7680_v61  ;;  %v2368_v2 = vmul.f32 %v2342_v35, %v7681_v6  ;;  %v2372_v15 = vmul.f32 %v2342_v35, %v7682_v30  ;;  %v2376_v20 = vmul.f32 %v2342_v35, %v7683_v40  ;;  %v7696_v0 = vld [vmem:[#allocation35_spill] sm:$0xff] }
 0x230   :  { %v2332_v42 = vsub.f32 %v6266_v11, %v2324_v25  ;;  %v2380_v8 = vmul.f32 %v2342_v35, %v7684_v49  ;;  %v2384_v45 = vmul.f32 %v2342_v35, %v7685_v29  ;;  %v2388_v44 = vmul.f32 %v2342_v35, %v7686_v1 }
 0x231   :  { %v2392_v9 = vmul.f32 %v2342_v35, %v7687_v5  ;;  %v2396_v4 = vmul.f32 %v2342_v35, %v7688_v48  ;;  %v2400_v7 = vmul.f32 %v2342_v35, %v7689_v16  ;;  %v2404_v46 = vmul.f32 %v2342_v35, %v7690_v3 }
 0x232   :  { %v2408_v26 = vmul.f32 %v2342_v35, %v7691_v41  ;;  %v2412_v10 = vmul.f32 %v2342_v35, %v7692_v23  ;;  %v2422_v51 = vrot.slane %v2332_v42, %v6276_v28  ;;  %v2326_v56 = vrot.slane %v6364_v59, 7 }
 0x233   :  { %v2354_v60 = vmul.f32 %v6368_v54, %v7693_v27  ;;  %v2358_v25 = vmul.f32 %v6368_v54, %v7694_v43  ;;  %v2362_v53 = vmul.f32 %v6368_v54, %v7695_v52  ;;  %v2366_v61 = vmul.f32 %v6368_v54, %v7696_v0 }
 0x234   :  { %v2432_v6 = vadd.f32 %v2422_v51, %v2352_v50  ;;  %v2436_v30 = vadd.f32 %v2422_v51, %v2356_v34  ;;  %v2440_v40 = vadd.f32 %v2422_v51, %v2360_v63  ;;  %v2444_v35 = vadd.f32 %v2422_v51, %v2364_v58 }
 0x235   :  { %v2448_v49 = vadd.f32 %v2422_v51, %v2368_v2  ;;  %v2452_v42 = vadd.f32 %v2422_v51, %v2372_v15  ;;  %v2456_v29 = vadd.f32 %v2422_v51, %v2376_v20  ;;  %v2460_v59 = vadd.f32 %v2422_v51, %v2380_v8 }
 0x236   :  { %v2464_v1 = vadd.f32 %v2422_v51, %v2384_v45  ;;  %v2468_v5 = vadd.f32 %v2422_v51, %v2388_v44  ;;  %v2472_v48 = vadd.f32 %v2422_v51, %v2392_v9  ;;  %v2476_v16 = vadd.f32 %v2422_v51, %v2396_v4 }
 0x237   :  { %v2480_v3 = vadd.f32 %v2422_v51, %v2400_v7  ;;  %v2484_v41 = vadd.f32 %v2422_v51, %v2404_v46  ;;  %v2488_v23 = vadd.f32 %v2422_v51, %v2408_v26  ;;  %v2492_v27 = vadd.f32 %v2422_v51, %v2412_v10 }
 0x238   :  { %v2496_v43 = vmax.f32 %v2432_v6, 0.0  ;;  %v2500_v52 = vmax.f32 %v2436_v30, 0.0  ;;  %v2504_v11 = vmax.f32 %v2440_v40, 0.0  ;;  %v2508_v0 = vmax.f32 %v2444_v35, 0.0 }
 0x239   :  { %v2512_v50 = vmax.f32 %v2448_v49, 0.0  ;;  %v2516_v34 = vmax.f32 %v2452_v42, 0.0  ;;  %v2520_v63 = vmax.f32 %v2456_v29, 0.0  ;;  %v2524_v58 = vmax.f32 %v2460_v59, 0.0  ;;  %v7697_v49 = vld [vmem:[#allocation37_spill] sm:$0xff]  ;;  %v7698_v29 = vld [vmem:[#allocation39_spill] sm:$0xff] }
 0x23a   :  { %v2528_v2 = vmax.f32 %v2464_v1, 0.0  ;;  %v2532_v15 = vmax.f32 %v2468_v5, 0.0  ;;  %v2536_v20 = vmax.f32 %v2472_v48, 0.0  ;;  %v2540_v8 = vmax.f32 %v2476_v16, 0.0  ;;  %v7699_v59 = vld [vmem:[#allocation41_spill] sm:$0xff]  ;;  %v7700_v5 = vld [vmem:[#allocation43_spill] sm:$0xff] }
 0x23b   :  { %v2544_v45 = vmax.f32 %v2480_v3, 0.0  ;;  %v2548_v44 = vmax.f32 %v2484_v41, 0.0  ;;  %v2552_v9 = vmax.f32 %v2488_v23, 0.0  ;;  %v2556_v4 = vmax.f32 %v2492_v27, 0.0  ;;  %v7701_v16 = vld [vmem:[#allocation45_spill] sm:$0xff]  ;;  %v7702_v41 = vld [vmem:[#allocation47_spill] sm:$0xff] }
 0x23c   :  { %v6413_v7 = vpack.c.bf16 %v2500_v52, %v2496_v43  ;;  %v6415_v46 = vpack.c.bf16 %v2508_v0, %v2504_v11  ;;  %v6417_v26 = vpack.c.bf16 %v2516_v34, %v2512_v50  ;;  %v6419_v10 = vpack.c.bf16 %v2524_v58, %v2520_v63  ;;  %v7703_v27 = vld [vmem:[#allocation49_spill] sm:$0xff]  ;;  %v7704_v43 = vld [vmem:[#allocation51_spill] sm:$0xff]  ;;  %v7707_v58 = vld [vmem:[#allocation58_spill] sm:$0xff] }
 0x23d   :  { %v6421_v51 = vpack.c.bf16 %v2532_v15, %v2528_v2  ;;  %v6423_v6 = vpack.c.bf16 %v2540_v8, %v2536_v20  ;;  %v6425_v30 = vpack.c.bf16 %v2548_v44, %v2544_v45  ;;  %v6427_v40 = vpack.c.bf16 %v2556_v4, %v2552_v9  ;;  %v7705_v0 = vld [vmem:[#allocation53_spill] sm:$0xff]  ;;  %v7706_v34 = vld [vmem:[#allocation55_spill] sm:$0xff] }
 0x23e   :  { %v2334_v35 = vsub.f32 %v6271_v62, %v2326_v56  ;;  %v2370_v42 = vmul.f32 %v6368_v54, %v7697_v49  ;;  %v2374_v11 = vmul.f32 %v6368_v54, %v7698_v29  ;;  %v2378_v1 = vmul.f32 %v6368_v54, %v7699_v59  ;;  %v7708_v15 = vld [vmem:[#allocation61_spill] sm:$0xff] }
 0x23f   :  { %v2382_v48 = vmul.f32 %v6368_v54, %v7700_v5  ;;  %v2386_v3 = vmul.f32 %v6368_v54, %v7701_v16  ;;  %v2390_v23 = vmul.f32 %v6368_v54, %v7702_v41  ;;  %v2394_v56 = vmul.f32 %v6368_v54, %v7703_v27 }
 0x240   :  { %v2398_v52 = vmul.f32 %v6368_v54, %v7704_v43  ;;  %v2402_v50 = vmul.f32 %v6368_v54, %v7705_v0  ;;  %v2406_v63 = vmul.f32 %v6368_v54, %v7706_v34  ;;  %v2410_v2 = vmul.f32 %v6368_v54, %v7707_v58 }
 0x241   :  { %v2414_v20 = vmul.f32 %v6368_v54, %v7708_v15  ;;  %v2430_v8 = vrot.slane %v2334_v35, %v6276_v28 }
 0x243   :  { %v2434_v45 = vadd.f32 %v2430_v8, %v2354_v60  ;;  %v2438_v44 = vadd.f32 %v2430_v8, %v2358_v25  ;;  %v2442_v9 = vadd.f32 %v2430_v8, %v2362_v53  ;;  %v2446_v4 = vadd.f32 %v2430_v8, %v2366_v61 }
 0x244   :  { %v2450_v49 = vadd.f32 %v2430_v8, %v2370_v42  ;;  %v2454_v29 = vadd.f32 %v2430_v8, %v2374_v11  ;;  %v2458_v59 = vadd.f32 %v2430_v8, %v2378_v1  ;;  %v2462_v5 = vadd.f32 %v2430_v8, %v2382_v48 }
 0x245   :  { %v2466_v16 = vadd.f32 %v2430_v8, %v2386_v3  ;;  %v2470_v41 = vadd.f32 %v2430_v8, %v2390_v23  ;;  %v2474_v27 = vadd.f32 %v2430_v8, %v2394_v56  ;;  %v2478_v43 = vadd.f32 %v2430_v8, %v2398_v52 }
 0x246   :  { %v2482_v0 = vadd.f32 %v2430_v8, %v2402_v50  ;;  %v2486_v34 = vadd.f32 %v2430_v8, %v2406_v63  ;;  %v2490_v58 = vadd.f32 %v2430_v8, %v2410_v2  ;;  %v2494_v62 = vadd.f32 %v2430_v8, %v2414_v20 }
 0x247   :  { %v2498_v33 = vmax.f32 %v2434_v45, 0.0  ;;  %v2502_v54 = vmax.f32 %v2438_v44, 0.0  ;;  %v2506_v15 = vmax.f32 %v2442_v9, 0.0  ;;  %v2510_v28 = vmax.f32 %v2446_v4, 0.0 }
 0x248   :  { %v2514_v60 = vmax.f32 %v2450_v49, 0.0  ;;  %v2518_v25 = vmax.f32 %v2454_v29, 0.0  ;;  %v2522_v53 = vmax.f32 %v2458_v59, 0.0  ;;  %v2526_v61 = vmax.f32 %v2462_v5, 0.0 }
 0x249   :  { %v2530_v35 = vmax.f32 %v2466_v16, 0.0  ;;  %v2534_v42 = vmax.f32 %v2470_v41, 0.0  ;;  %v2538_v11 = vmax.f32 %v2474_v27, 0.0  ;;  %v2542_v1 = vmax.f32 %v2478_v43, 0.0 }
 0x24a   :  { %v2546_v48 = vmax.f32 %v2482_v0, 0.0  ;;  %v2550_v3 = vmax.f32 %v2486_v34, 0.0  ;;  %v2554_v23 = vmax.f32 %v2490_v58, 0.0  ;;  %v2558_v56 = vmax.f32 %v2494_v62, 0.0 }
 0x24b   :  { %v6455_v52 = vpack.c.bf16 %v2502_v54, %v2498_v33  ;;  %v6457_v50 = vpack.c.bf16 %v2510_v28, %v2506_v15  ;;  %v6459_v63 = vpack.c.bf16 %v2518_v25, %v2514_v60  ;;  %v6461_v2 = vpack.c.bf16 %v2526_v61, %v2522_v53 }
 0x24c   :  { %v6463_v20 = vpack.c.bf16 %v2534_v42, %v2530_v35  ;;  %v6465_v8 = vpack.c.bf16 %v2542_v1, %v2538_v11  ;;  %v6467_v45 = vpack.c.bf16 %v2550_v3, %v2546_v48  ;;  %v6469_v44 = vpack.c.bf16 %v2558_v56, %v2554_v23 }
 0x24d   :  { %4727 = dma.done.wait [#allocation5], 16384 }
 0x24e   :  { %4728 = vsyncadd [#allocation5], 4294950912  ;;  %2755 = vmatprep.mubr.bf16.mxu0 %v6413_v7  ;;  %2981 = vmatprep.mubr.bf16.mxu1 %v6413_v7  ;;  %v2596_v33 = vld [vmem:[#allocation2 + $0x8] sm:$0xff]  ;;  %v2598_v62 = vld [vmem:[#allocation2 + $0x18] sm:$0xff] }
 0x24f   :  { %v2595_v9 = vld [vmem:[#allocation2] sm:$0xff]  ;;  %2723 = vmatprep.subr.bf16.mxu0 %v2596_v33  ;;  %2949 = vmatprep.subr.bf16.mxu1 %v2598_v62  ;;  %v2597_v4 = vld [vmem:[#allocation2 + $0x10] sm:$0xff]  ;;  %v2600_v49 = vld [vmem:[#allocation2 + $0x28] sm:$0xff] }
 0x250   :  { %v2602_v29 = vld [vmem:[#allocation2 + $0x38] sm:$0xff]  ;;  %2724 = vmatpush1.bf16.msra.mxu0 %v2595_v9  ;;  %2950 = vmatpush1.bf16.msra.mxu1 %v2597_v4  ;;  %v2599_v59 = vld [vmem:[#allocation2 + $0x20] sm:$0xff]  ;;  %v2601_v5 = vld [vmem:[#allocation2 + $0x30] sm:$0xff] }
 0x251   :  { %2725 = vmatprep.subr.bf16.mxu0 %v2600_v49  ;;  %2951 = vmatprep.subr.bf16.mxu1 %v2602_v29  ;;  %v2604_v16 = vld [vmem:[#allocation2 + $0x48] sm:$0xff]  ;;  %v2606_v41 = vld [vmem:[#allocation2 + $0x58] sm:$0xff]  ;;  %v2603_v7 = vld [vmem:[#allocation2 + $0x40] sm:$0xff] }
 0x252   :  { %v2605_v27 = vld [vmem:[#allocation2 + $0x50] sm:$0xff]  ;;  %v2608_v43 = vld [vmem:[#allocation2 + $0x68] sm:$0xff]  ;;  %v2610_v0 = vld [vmem:[#allocation2 + $0x78] sm:$0xff] }
 0x253   :  { %v2607_v34 = vld [vmem:[#allocation2 + $0x60] sm:$0xff]  ;;  %v2609_v58 = vld [vmem:[#allocation2 + $0x70] sm:$0xff]  ;;  %v2612_v54 = vld [vmem:[#allocation2 + $0x88] sm:$0xff] }
 0x254   :  { %2726 = vmatpush1.bf16.msra.mxu0 %v2599_v59  ;;  %2952 = vmatpush1.bf16.msra.mxu1 %v2601_v5  ;;  %v2614_v15 = vld [vmem:[#allocation2 + $0x98] sm:$0xff]  ;;  %v2611_v28 = vld [vmem:[#allocation2 + $0x80] sm:$0xff]  ;;  %v2613_v60 = vld [vmem:[#allocation2 + $0x90] sm:$0xff] }
 0x255   :  { %2727 = vmatprep.subr.bf16.mxu0 %v2604_v16  ;;  %2953 = vmatprep.subr.bf16.mxu1 %v2606_v41  ;;  %v2616_v25 = vld [vmem:[#allocation2 + $0xa8] sm:$0xff]  ;;  %v2618_v53 = vld [vmem:[#allocation2 + $0xb8] sm:$0xff]  ;;  %v2615_v61 = vld [vmem:[#allocation2 + $0xa0] sm:$0xff] }
 0x256   :  { %v2617_v35 = vld [vmem:[#allocation2 + $0xb0] sm:$0xff]  ;;  %v2620_v42 = vld [vmem:[#allocation2 + $0xc8] sm:$0xff]  ;;  %v2622_v11 = vld [vmem:[#allocation2 + $0xd8] sm:$0xff] }
 0x257   :  { %v2619_v1 = vld [vmem:[#allocation2 + $0xc0] sm:$0xff]  ;;  %v2621_v48 = vld [vmem:[#allocation2 + $0xd0] sm:$0xff]  ;;  %v2624_v3 = vld [vmem:[#allocation2 + $0xe8] sm:$0xff] }
 0x258   :  { %2728 = vmatpush1.bf16.msra.mxu0 %v2603_v7  ;;  %2954 = vmatpush1.bf16.msra.mxu1 %v2605_v27  ;;  %v2626_v23 = vld [vmem:[#allocation2 + $0xf8] sm:$0xff]  ;;  %v2623_v56 = vld [vmem:[#allocation2 + $0xe0] sm:$0xff]  ;;  %v2625_v33 = vld [vmem:[#allocation2 + $0xf0] sm:$0xff] }
 0x259   :  { %2729 = vmatprep.subr.bf16.mxu0 %v2608_v43  ;;  %2955 = vmatprep.subr.bf16.mxu1 %v2610_v0  ;;  %v2628_v62 = vld [vmem:[#allocation2 + $0x108] sm:$0xff]  ;;  %v2630_v9 = vld [vmem:[#allocation2 + $0x118] sm:$0xff]  ;;  %v2627_v4 = vld [vmem:[#allocation2 + $0x100] sm:$0xff] }
 0x25a   :  { %v2629_v49 = vld [vmem:[#allocation2 + $0x110] sm:$0xff]  ;;  %v2632_v29 = vld [vmem:[#allocation2 + $0x128] sm:$0xff]  ;;  %v2634_v59 = vld [vmem:[#allocation2 + $0x138] sm:$0xff] }
 0x25b   :  { %v2631_v5 = vld [vmem:[#allocation2 + $0x120] sm:$0xff]  ;;  %v2633_v16 = vld [vmem:[#allocation2 + $0x130] sm:$0xff]  ;;  %v2636_v41 = vld [vmem:[#allocation2 + $0x148] sm:$0xff] }
 0x25c   :  { %2730 = vmatpush1.bf16.msra.mxu0 %v2607_v34  ;;  %2956 = vmatpush1.bf16.msra.mxu1 %v2609_v58  ;;  %v2638_v7 = vld [vmem:[#allocation2 + $0x158] sm:$0xff]  ;;  %v2635_v27 = vld [vmem:[#allocation2 + $0x140] sm:$0xff]  ;;  %v2637_v43 = vld [vmem:[#allocation2 + $0x150] sm:$0xff] }
 0x25d   :  { %2731 = vmatprep.subr.bf16.mxu0 %v2612_v54  ;;  %2957 = vmatprep.subr.bf16.mxu1 %v2614_v15  ;;  %v2640_v0 = vld [vmem:[#allocation2 + $0x168] sm:$0xff]  ;;  %v2642_v34 = vld [vmem:[#allocation2 + $0x178] sm:$0xff]  ;;  %v2639_v58 = vld [vmem:[#allocation2 + $0x160] sm:$0xff] }
 0x25e   :  { %v2641_v54 = vld [vmem:[#allocation2 + $0x170] sm:$0xff]  ;;  %v2644_v15 = vld [vmem:[#allocation2 + $0x188] sm:$0xff] }
 0x260   :  { %2732 = vmatpush1.bf16.msra.mxu0 %v2611_v28  ;;  %2958 = vmatpush1.bf16.msra.mxu1 %v2613_v60  ;;  %v2646_v28 = vld [vmem:[#allocation2 + $0x198] sm:$0xff]  ;;  %v2643_v60 = vld [vmem:[#allocation2 + $0x180] sm:$0xff] }
 0x261   :  { %2733 = vmatprep.subr.bf16.mxu0 %v2616_v25  ;;  %2959 = vmatprep.subr.bf16.mxu1 %v2618_v53  ;;  %v2645_v25 = vld [vmem:[#allocation2 + $0x190] sm:$0xff]  ;;  %v2648_v53 = vld [vmem:[#allocation2 + $0x1a8] sm:$0xff] }
 0x264   :  { %2734 = vmatpush1.bf16.msra.mxu0 %v2615_v61  ;;  %2960 = vmatpush1.bf16.msra.mxu1 %v2617_v35  ;;  %v2650_v61 = vld [vmem:[#allocation2 + $0x1b8] sm:$0xff]  ;;  %v2647_v35 = vld [vmem:[#allocation2 + $0x1a0] sm:$0xff] }
 0x265   :  { %2735 = vmatprep.subr.bf16.mxu0 %v2620_v42  ;;  %2961 = vmatprep.subr.bf16.mxu1 %v2622_v11  ;;  %v2649_v42 = vld [vmem:[#allocation2 + $0x1b0] sm:$0xff]  ;;  %v2652_v11 = vld [vmem:[#allocation2 + $0x1c8] sm:$0xff] }
 0x268   :  { %2736 = vmatpush1.bf16.msra.mxu0 %v2619_v1  ;;  %2962 = vmatpush1.bf16.msra.mxu1 %v2621_v48  ;;  %v2654_v1 = vld [vmem:[#allocation2 + $0x1d8] sm:$0xff]  ;;  %v2651_v48 = vld [vmem:[#allocation2 + $0x1c0] sm:$0xff] }
 0x269   :  { %2737 = vmatprep.subr.bf16.mxu0 %v2624_v3  ;;  %2963 = vmatprep.subr.bf16.mxu1 %v2626_v23  ;;  %v2653_v3 = vld [vmem:[#allocation2 + $0x1d0] sm:$0xff]  ;;  %v2656_v23 = vld [vmem:[#allocation2 + $0x1e8] sm:$0xff] }
 0x26c   :  { %2738 = vmatpush1.bf16.msra.mxu0 %v2623_v56  ;;  %2964 = vmatpush1.bf16.msra.mxu1 %v2625_v33  ;;  %v2658_v56 = vld [vmem:[#allocation2 + $0x1f8] sm:$0xff]  ;;  %v2655_v33 = vld [vmem:[#allocation2 + $0x1e0] sm:$0xff] }
 0x26d   :  { %2739 = vmatprep.subr.bf16.mxu0 %v2628_v62  ;;  %2965 = vmatprep.subr.bf16.mxu1 %v2630_v9  ;;  %v2657_v62 = vld [vmem:[#allocation2 + $0x1f0] sm:$0xff]  ;;  %v2660_v9 = vld [vmem:[#allocation2 + $0x208] sm:$0xff] }
 0x270   :  { %2740 = vmatpush1.bf16.msra.mxu0 %v2627_v4  ;;  %2966 = vmatpush1.bf16.msra.mxu1 %v2629_v49  ;;  %v2662_v4 = vld [vmem:[#allocation2 + $0x218] sm:$0xff]  ;;  %v2659_v49 = vld [vmem:[#allocation2 + $0x200] sm:$0xff] }
 0x271   :  { %2741 = vmatprep.subr.bf16.mxu0 %v2632_v29  ;;  %2967 = vmatprep.subr.bf16.mxu1 %v2634_v59  ;;  %v2661_v29 = vld [vmem:[#allocation2 + $0x210] sm:$0xff]  ;;  %v2664_v59 = vld [vmem:[#allocation2 + $0x228] sm:$0xff] }
 0x274   :  { %2742 = vmatpush1.bf16.msra.mxu0 %v2631_v5  ;;  %2968 = vmatpush1.bf16.msra.mxu1 %v2633_v16  ;;  %v2666_v5 = vld [vmem:[#allocation2 + $0x238] sm:$0xff]  ;;  %v2663_v16 = vld [vmem:[#allocation2 + $0x220] sm:$0xff] }
 0x275   :  { %2743 = vmatprep.subr.bf16.mxu0 %v2636_v41  ;;  %2969 = vmatprep.subr.bf16.mxu1 %v2638_v7  ;;  %v2665_v41 = vld [vmem:[#allocation2 + $0x230] sm:$0xff]  ;;  %v2668_v7 = vld [vmem:[#allocation2 + $0x248] sm:$0xff] }
 0x278   :  { %2744 = vmatpush1.bf16.msra.mxu0 %v2635_v27  ;;  %2970 = vmatpush1.bf16.msra.mxu1 %v2637_v43  ;;  %v2670_v27 = vld [vmem:[#allocation2 + $0x258] sm:$0xff]  ;;  %v2667_v43 = vld [vmem:[#allocation2 + $0x240] sm:$0xff] }
 0x279   :  { %2745 = vmatprep.subr.bf16.mxu0 %v2640_v0  ;;  %2971 = vmatprep.subr.bf16.mxu1 %v2642_v34  ;;  %v2669_v0 = vld [vmem:[#allocation2 + $0x250] sm:$0xff]  ;;  %v2672_v34 = vld [vmem:[#allocation2 + $0x268] sm:$0xff] }
 0x27c   :  { %2746 = vmatpush1.bf16.msra.mxu0 %v2639_v58  ;;  %2972 = vmatpush1.bf16.msra.mxu1 %v2641_v54  ;;  %v2671_v58 = vld [vmem:[#allocation2 + $0x260] sm:$0xff]  ;;  %v2676_v54 = vld [vmem:[#allocation2 + $0x288] sm:$0xff] }
 0x27d   :  { %2747 = vmatprep.subr.bf16.mxu0 %v2644_v15  ;;  %2973 = vmatprep.subr.bf16.mxu1 %v2646_v28  ;;  %v2678_v15 = vld [vmem:[#allocation2 + $0x298] sm:$0xff]  ;;  %v2675_v28 = vld [vmem:[#allocation2 + $0x280] sm:$0xff] }
 0x280   :  { %2748 = vmatpush1.bf16.msra.mxu0 %v2643_v60  ;;  %2974 = vmatpush1.bf16.msra.mxu1 %v2645_v25  ;;  %v2677_v60 = vld [vmem:[#allocation2 + $0x290] sm:$0xff]  ;;  %v2680_v25 = vld [vmem:[#allocation2 + $0x2a8] sm:$0xff] }
 0x281   :  { %2749 = vmatprep.subr.bf16.mxu0 %v2648_v53  ;;  %2975 = vmatprep.subr.bf16.mxu1 %v2650_v61  ;;  %v2679_v53 = vld [vmem:[#allocation2 + $0x2a0] sm:$0xff]  ;;  %v2684_v61 = vld [vmem:[#allocation2 + $0x2c8] sm:$0xff] }
 0x284   :  { %2750 = vmatpush1.bf16.msra.mxu0 %v2647_v35  ;;  %2976 = vmatpush1.bf16.msra.mxu1 %v2649_v42  ;;  %v2686_v35 = vld [vmem:[#allocation2 + $0x2d8] sm:$0xff]  ;;  %v2683_v42 = vld [vmem:[#allocation2 + $0x2c0] sm:$0xff] }
 0x285   :  { %2751 = vmatprep.subr.bf16.mxu0 %v2652_v11  ;;  %2977 = vmatprep.subr.bf16.mxu1 %v2654_v1  ;;  %v2685_v11 = vld [vmem:[#allocation2 + $0x2d0] sm:$0xff]  ;;  %v2688_v1 = vld [vmem:[#allocation2 + $0x2e8] sm:$0xff] }
 0x288   :  { %2752 = vmatpush1.bf16.msra.mxu0 %v2651_v48  ;;  %2978 = vmatpush1.bf16.msra.mxu1 %v2653_v3  ;;  %v2687_v48 = vld [vmem:[#allocation2 + $0x2e0] sm:$0xff]  ;;  %v2692_v3 = vld [vmem:[#allocation2 + $0x308] sm:$0xff] }
 0x289   :  { %2753 = vmatprep.subr.bf16.mxu0 %v2656_v23  ;;  %2979 = vmatprep.subr.bf16.mxu1 %v2658_v56  ;;  %v2694_v23 = vld [vmem:[#allocation2 + $0x318] sm:$0xff]  ;;  %v2691_v56 = vld [vmem:[#allocation2 + $0x300] sm:$0xff] }
 0x28c   :  { %2754 = vmatpush1.bf16.msra.mxu0 %v2655_v33  ;;  %2980 = vmatpush1.bf16.msra.mxu1 %v2657_v62  ;;  %v2693_v33 = vld [vmem:[#allocation2 + $0x310] sm:$0xff]  ;;  %v2696_v62 = vld [vmem:[#allocation2 + $0x328] sm:$0xff] }
 0x28d   :  { %2836 = vmatprep.subr.bf16.mxu0 %v2660_v9  ;;  %3062 = vmatprep.subr.bf16.mxu1 %v2662_v4  ;;  %v2695_v9 = vld [vmem:[#allocation2 + $0x320] sm:$0xff]  ;;  %v2700_v4 = vld [vmem:[#allocation2 + $0x348] sm:$0xff] }
 0x28f   :  { %2756 = vmatmul.mubr.bf16.vlgmr.msra.gmra.mrb[32].mxu0 %v6316_v37  ;;  %2982 = vmatmul.mubr.bf16.vlgmr.msra.gmra.mrb[32].mxu1 %v6316_v37  ;;  %v2674_v37 = vld [vmem:[#allocation2 + $0x278] sm:$0xff] }
 0x290   :  { %2837 = vmatpush1.bf16.msra.mxu0 %v2659_v49  ;;  %3063 = vmatpush1.bf16.msra.mxu1 %v2661_v29  ;;  %v2702_v49 = vld [vmem:[#allocation2 + $0x358] sm:$0xff]  ;;  %v2699_v29 = vld [vmem:[#allocation2 + $0x340] sm:$0xff] }
 0x291   :  { %2838 = vmatprep.subr.bf16.mxu0 %v2664_v59  ;;  %3064 = vmatprep.subr.bf16.mxu1 %v2666_v5  ;;  %v2701_v59 = vld [vmem:[#allocation2 + $0x350] sm:$0xff]  ;;  %v2704_v5 = vld [vmem:[#allocation2 + $0x368] sm:$0xff] }
 0x292   :  { %2765 = vmatprep.mubr.bf16.mxu0 %v6415_v46  ;;  %2991 = vmatprep.mubr.bf16.mxu1 %v6415_v46  ;;  %v2673_v46 = vld [vmem:[#allocation2 + $0x270] sm:$0xff] }
 0x294   :  { %2839 = vmatpush1.bf16.msra.mxu0 %v2663_v16  ;;  %3065 = vmatpush1.bf16.msra.mxu1 %v2665_v41  ;;  %v2703_v16 = vld [vmem:[#allocation2 + $0x360] sm:$0xff]  ;;  %v2708_v41 = vld [vmem:[#allocation2 + $0x388] sm:$0xff] }
 0x295   :  { %2840 = vmatprep.subr.bf16.mxu0 %v2668_v7  ;;  %3066 = vmatprep.subr.bf16.mxu1 %v2670_v27  ;;  %v2710_v7 = vld [vmem:[#allocation2 + $0x398] sm:$0xff]  ;;  %v2707_v27 = vld [vmem:[#allocation2 + $0x380] sm:$0xff] }
 0x297   :  { %2766 = vmatmul.mubr.bf16.gmra.mrb[36].mxu0 %v6318_v18  ;;  %2992 = vmatmul.mubr.bf16.gmra.mrb[36].mxu1 %v6318_v18  ;;  %v2682_v18 = vld [vmem:[#allocation2 + $0x2b8] sm:$0xff] }
 0x298   :  { %2841 = vmatpush1.bf16.msra.mxu0 %v2667_v43  ;;  %3067 = vmatpush1.bf16.msra.mxu1 %v2669_v0  ;;  %v2709_v43 = vld [vmem:[#allocation2 + $0x390] sm:$0xff]  ;;  %v2712_v0 = vld [vmem:[#allocation2 + $0x3a8] sm:$0xff] }
 0x299   :  { %2842 = vmatprep.subr.bf16.mxu0 %v2672_v34  ;;  %3068 = vmatprep.subr.bf16.mxu1 %v2674_v37  ;;  %v2711_v34 = vld [vmem:[#allocation2 + $0x3a0] sm:$0xff]  ;;  %v2716_v37 = vld [vmem:[#allocation2 + $0x3c8] sm:$0xff] }
 0x29a   :  { %2775 = vmatprep.mubr.bf16.mxu0 %v6417_v26  ;;  %3001 = vmatprep.mubr.bf16.mxu1 %v6417_v26  ;;  %v2681_v26 = vld [vmem:[#allocation2 + $0x2b0] sm:$0xff] }
 0x29c   :  { %2843 = vmatpush1.bf16.msra.mxu0 %v2671_v58  ;;  %3069 = vmatpush1.bf16.msra.mxu1 %v2673_v46  ;;  %v2718_v58 = vld [vmem:[#allocation2 + $0x3d8] sm:$0xff]  ;;  %v2715_v46 = vld [vmem:[#allocation2 + $0x3c0] sm:$0xff] }
 0x29d   :  { %2844 = vmatprep.subr.bf16.mxu0 %v2676_v54  ;;  %3070 = vmatprep.subr.bf16.mxu1 %v2678_v15  ;;  %v2717_v54 = vld [vmem:[#allocation2 + $0x3d0] sm:$0xff]  ;;  %v2720_v15 = vld [vmem:[#allocation2 + $0x3e8] sm:$0xff] }
 0x29f   :  { %2776 = vmatmul.mubr.bf16.gmra.mrb[40].mxu0 %v6320_v32  ;;  %3002 = vmatmul.mubr.bf16.gmra.mrb[40].mxu1 %v6320_v32  ;;  %v2690_v32 = vld [vmem:[#allocation2 + $0x2f8] sm:$0xff] }
 0x2a0   :  { %2845 = vmatpush1.bf16.msra.mxu0 %v2675_v28  ;;  %3071 = vmatpush1.bf16.msra.mxu1 %v2677_v60  ;;  %v2719_v28 = vld [vmem:[#allocation2 + $0x3e0] sm:$0xff] }
 0x2a1   :  { %2846 = vmatprep.subr.bf16.mxu0 %v2680_v25  ;;  %3072 = vmatprep.subr.bf16.mxu1 %v2682_v18 }
 0x2a2   :  { %2785 = vmatprep.mubr.bf16.mxu0 %v6419_v10  ;;  %3011 = vmatprep.mubr.bf16.mxu1 %v6419_v10  ;;  %v2689_v10 = vld [vmem:[#allocation2 + $0x2f0] sm:$0xff] }
 0x2a4   :  { %2847 = vmatpush1.bf16.msra.mxu0 %v2679_v53  ;;  %3073 = vmatpush1.bf16.msra.mxu1 %v2681_v26 }
 0x2a5   :  { %2848 = vmatprep.subr.bf16.mxu0 %v2684_v61  ;;  %3074 = vmatprep.subr.bf16.mxu1 %v2686_v35 }
 0x2a7   :  { %2786 = vmatmul.mubr.bf16.gmra.mrb[44].mxu0 %v6322_v21  ;;  %3012 = vmatmul.mubr.bf16.gmra.mrb[44].mxu1 %v6322_v21  ;;  %v2698_v21 = vld [vmem:[#allocation2 + $0x338] sm:$0xff] }
 0x2a8   :  { %2849 = vmatpush1.bf16.msra.mxu0 %v2683_v42  ;;  %3075 = vmatpush1.bf16.msra.mxu1 %v2685_v11 }
 0x2a9   :  { %2850 = vmatprep.subr.bf16.mxu0 %v2688_v1  ;;  %3076 = vmatprep.subr.bf16.mxu1 %v2690_v32 }
 0x2aa   :  { %2795 = vmatprep.mubr.bf16.mxu0 %v6421_v51  ;;  %3021 = vmatprep.mubr.bf16.mxu1 %v6421_v51  ;;  %v2697_v51 = vld [vmem:[#allocation2 + $0x330] sm:$0xff] }
 0x2ac   :  { %2851 = vmatpush1.bf16.msra.mxu0 %v2687_v48  ;;  %3077 = vmatpush1.bf16.msra.mxu1 %v2689_v10 }
 0x2ad   :  { %2852 = vmatprep.subr.bf16.mxu0 %v2692_v3  ;;  %3078 = vmatprep.subr.bf16.mxu1 %v2694_v23 }
 0x2af   :  { %2796 = vmatmul.mubr.bf16.gmra.mrb[48].mxu0 %v6324_v12  ;;  %3022 = vmatmul.mubr.bf16.gmra.mrb[48].mxu1 %v6324_v12  ;;  %v2706_v12 = vld [vmem:[#allocation2 + $0x378] sm:$0xff] }
 0x2b0   :  { %2853 = vmatpush1.bf16.msra.mxu0 %v2691_v56  ;;  %3079 = vmatpush1.bf16.msra.mxu1 %v2693_v33 }
 0x2b1   :  { %2854 = vmatprep.subr.bf16.mxu0 %v2696_v62  ;;  %3080 = vmatprep.subr.bf16.mxu1 %v2698_v21 }
 0x2b2   :  { %2805 = vmatprep.mubr.bf16.mxu0 %v6423_v6  ;;  %3031 = vmatprep.mubr.bf16.mxu1 %v6423_v6  ;;  %v2705_v6 = vld [vmem:[#allocation2 + $0x370] sm:$0xff] }
 0x2b4   :  { %2855 = vmatpush1.bf16.msra.mxu0 %v2695_v9  ;;  %3081 = vmatpush1.bf16.msra.mxu1 %v2697_v51 }
 0x2b5   :  { %2856 = vmatprep.subr.bf16.mxu0 %v2700_v4  ;;  %3082 = vmatprep.subr.bf16.mxu1 %v2702_v49 }
 0x2b7   :  { %2806 = vmatmul.mubr.bf16.gmra.mrb[52].mxu0 %v6326_v17  ;;  %3032 = vmatmul.mubr.bf16.gmra.mrb[52].mxu1 %v6326_v17  ;;  %v2714_v17 = vld [vmem:[#allocation2 + $0x3b8] sm:$0xff] }
 0x2b8   :  { %2857 = vmatpush1.bf16.msra.mxu0 %v2699_v29  ;;  %3083 = vmatpush1.bf16.msra.mxu1 %v2701_v59 }
 0x2b9   :  { %2858 = vmatprep.subr.bf16.mxu0 %v2704_v5  ;;  %3084 = vmatprep.subr.bf16.mxu1 %v2706_v12 }
 0x2ba   :  { %2815 = vmatprep.mubr.bf16.mxu0 %v6425_v30  ;;  %3041 = vmatprep.mubr.bf16.mxu1 %v6425_v30  ;;  %v2713_v30 = vld [vmem:[#allocation2 + $0x3b0] sm:$0xff] }
 0x2bc   :  { %2859 = vmatpush1.bf16.msra.mxu0 %v2703_v16  ;;  %3085 = vmatpush1.bf16.msra.mxu1 %v2705_v6 }
 0x2bd   :  { %2860 = vmatprep.subr.bf16.mxu0 %v2708_v41  ;;  %3086 = vmatprep.subr.bf16.mxu1 %v2710_v7 }
 0x2bf   :  { %2816 = vmatmul.mubr.bf16.gmra.mrb[56].mxu0 %v6328_v55  ;;  %3042 = vmatmul.mubr.bf16.gmra.mrb[56].mxu1 %v6328_v55  ;;  %v2722_v55 = vld [vmem:[#allocation2 + $0x3f8] sm:$0xff] }
 0x2c0   :  { %2861 = vmatpush1.bf16.msra.mxu0 %v2707_v27  ;;  %3087 = vmatpush1.bf16.msra.mxu1 %v2709_v43 }
 0x2c1   :  { %2862 = vmatprep.subr.bf16.mxu0 %v2712_v0  ;;  %3088 = vmatprep.subr.bf16.mxu1 %v2714_v17 }
 0x2c2   :  { %2825 = vmatprep.mubr.bf16.mxu0 %v6427_v40  ;;  %3051 = vmatprep.mubr.bf16.mxu1 %v6427_v40  ;;  %v2721_v40 = vld [vmem:[#allocation2 + $0x3f0] sm:$0xff] }
 0x2c4   :  { %2863 = vmatpush1.bf16.msra.mxu0 %v2711_v34  ;;  %3089 = vmatpush1.bf16.msra.mxu1 %v2713_v30 }
 0x2c5   :  { %2864 = vmatprep.subr.bf16.mxu0 %v2716_v37  ;;  %3090 = vmatprep.subr.bf16.mxu1 %v2718_v58 }
 0x2c7   :  { %2826 = vmatmul.mubr.bf16.gmra.mrb[60].mxu0 %v6330_v13  ;;  %3052 = vmatmul.mubr.bf16.gmra.mrb[60].mxu1 %v6330_v13 }
 0x2c8   :  { %2865 = vmatpush1.bf16.msra.mxu0 %v2715_v46  ;;  %3091 = vmatpush1.bf16.msra.mxu1 %v2717_v54 }
 0x2c9   :  { %2866 = vmatprep.subr.bf16.mxu0 %v2720_v15  ;;  %3092 = vmatprep.subr.bf16.mxu1 %v2722_v55 }
 0x2ca   :  { %2868 = vmatprep.mubr.bf16.mxu0 %v6455_v52  ;;  %3094 = vmatprep.mubr.bf16.mxu1 %v6455_v52 }
 0x2cc   :  { %2867 = vmatpush1.bf16.msra.mxu0 %v2719_v28  ;;  %3093 = vmatpush1.bf16.msra.mxu1 %v2721_v40 }
 0x2cf   :  { %2869 = vmatmul.mubr.bf16.vlgmr.msra.gmra.mrb[32].mxu0 %v6370_v47  ;;  %3095 = vmatmul.mubr.bf16.vlgmr.msra.gmra.mrb[32].mxu1 %v6370_v47 }
 0x2d0   :  { %2878 = vmatprep.mubr.bf16.mxu0 %v6457_v50  ;;  %3104 = vmatprep.mubr.bf16.mxu1 %v6457_v50 }
 0x2d7   :  { %2879 = vmatmul.mubr.bf16.gmra.mrb[36].mxu0 %v6372_v24  ;;  %3105 = vmatmul.mubr.bf16.gmra.mrb[36].mxu1 %v6372_v24 }
 0x2d8   :  { %2888 = vmatprep.mubr.bf16.mxu0 %v6459_v63  ;;  %3114 = vmatprep.mubr.bf16.mxu1 %v6459_v63 }
 0x2df   :  { %2889 = vmatmul.mubr.bf16.gmra.mrb[40].mxu0 %v6374_v36  ;;  %3115 = vmatmul.mubr.bf16.gmra.mrb[40].mxu1 %v6374_v36 }
 0x2e0   :  { %2898 = vmatprep.mubr.bf16.mxu0 %v6461_v2  ;;  %3124 = vmatprep.mubr.bf16.mxu1 %v6461_v2 }
 0x2e7   :  { %2899 = vmatmul.mubr.bf16.gmra.mrb[44].mxu0 %v6376_v19  ;;  %3125 = vmatmul.mubr.bf16.gmra.mrb[44].mxu1 %v6376_v19 }
 0x2e8   :  { %2908 = vmatprep.mubr.bf16.mxu0 %v6463_v20  ;;  %3134 = vmatprep.mubr.bf16.mxu1 %v6463_v20 }
 0x2ef   :  { %2909 = vmatmul.mubr.bf16.gmra.mrb[48].mxu0 %v6378_v14  ;;  %3135 = vmatmul.mubr.bf16.gmra.mrb[48].mxu1 %v6378_v14 }
 0x2f0   :  { %2918 = vmatprep.mubr.bf16.mxu0 %v6465_v8  ;;  %3144 = vmatprep.mubr.bf16.mxu1 %v6465_v8 }
 0x2f7   :  { %2919 = vmatmul.mubr.bf16.gmra.mrb[52].mxu0 %v6380_v38  ;;  %3145 = vmatmul.mubr.bf16.gmra.mrb[52].mxu1 %v6380_v38 }
 0x2f8   :  { %2928 = vmatprep.mubr.bf16.mxu0 %v6467_v45  ;;  %3154 = vmatprep.mubr.bf16.mxu1 %v6467_v45 }
 0x2ff   :  { %2929 = vmatmul.mubr.bf16.gmra.mrb[56].mxu0 %v6382_v22  ;;  %3155 = vmatmul.mubr.bf16.gmra.mrb[56].mxu1 %v6382_v22 }
 0x300   :  { %2938 = vmatprep.mubr.bf16.mxu0 %v6469_v44  ;;  %3164 = vmatprep.mubr.bf16.mxu1 %v6469_v44 }
 0x307   :  { %2939 = vmatmul.mubr.bf16.gmra.mrb[60].mxu0 %v6384_v39  ;;  %3165 = vmatmul.mubr.bf16.gmra.mrb[60].mxu1 %v6384_v39 }
 0x3a2   :  { %v6535_v13 = vpop.f32.mrb[32].mxu0  ;;  %v6537_v47 = vpop.f32.mrb[32].mxu1 }
 0x3a3   :  { %v6539_v24 = vpop.f32.mrb[33].mxu0  ;;  %v6541_v36 = vpop.f32.mrb[33].mxu1  ;;  %v3263_v19 = vmul.f32 %v6535_v13, %v6535_v13  ;;  %v3265_v14 = vmul.f32 %v6537_v47, %v6537_v47 }
 0x3a4   :  { %7709 = vst [vmem:[#allocation56_spill] sm:$0xff] %v6539_v24  ;;  %7710 = vst [vmem:[#allocation59_spill] sm:$0xff] %v6541_v36  ;;  %v3264_v38 = vmul.f32 %v6539_v24, %v6539_v24  ;;  %v3266_v22 = vmul.f32 %v6541_v36, %v6541_v36  ;;  %v6551_v39 = vpop.f32.mrb[34].mxu0  ;;  %v6553_v52 = vpop.f32.mrb[34].mxu1 }
 0x3a5   :  { %v3175_v50 = vadd.f32 %v6551_v39, %v6535_v13  ;;  %v3267_v63 = vmul.f32 %v6551_v39, %v6551_v39  ;;  %v3217_v2 = vadd.f32 %v6553_v52, %v6537_v47  ;;  %v3269_v20 = vmul.f32 %v6553_v52, %v6553_v52  ;;  %v6563_v8 = vpop.f32.mrb[35].mxu0  ;;  %v6565_v45 = vpop.f32.mrb[35].mxu1 }
 0x3a6   :  { %7711 = vst [vmem:[#allocation28_spill] sm:$0xff] %v6563_v8  ;;  %7712 = vst [vmem:[#allocation30_spill] sm:$0xff] %v6565_v45  ;;  %v3196_v44 = vadd.f32 %v6563_v8, %v6539_v24  ;;  %v3268_v60 = vmul.f32 %v6563_v8, %v6563_v8  ;;  %v3238_v25 = vadd.f32 %v6565_v45, %v6541_v36 }
 0x3a7   :  { %v3270_v18 = vmul.f32 %v6565_v45, %v6565_v45  ;;  %v3327_v53 = vadd.f32 %v3267_v63, %v3263_v19  ;;  %v3369_v26 = vadd.f32 %v3269_v20, %v3265_v14 }
 0x3a8   :  { %v3348_v61 = vadd.f32 %v3268_v60, %v3264_v38 }
 0x3a9   :  { %v3390_v35 = vadd.f32 %v3270_v18, %v3266_v22 }
 0x3aa   :  { %v6575_v42 = vpop.f32.mrb[36].mxu0  ;;  %v6577_v11 = vpop.f32.mrb[36].mxu1 }
 0x3ab   :  { %v3176_v1 = vadd.f32 %v3175_v50, %v6575_v42  ;;  %v3271_v32 = vmul.f32 %v6575_v42, %v6575_v42  ;;  %v3218_v48 = vadd.f32 %v3217_v2, %v6577_v11  ;;  %v3273_v10 = vmul.f32 %v6577_v11, %v6577_v11  ;;  %v6585_v3 = vpop.f32.mrb[37].mxu0  ;;  %v6587_v23 = vpop.f32.mrb[37].mxu1 }
 0x3ac   :  { %7713 = vst [vmem:[#allocation32_spill] sm:$0xff] %v6585_v3  ;;  %7714 = vst [vmem:[#allocation34_spill] sm:$0xff] %v6587_v23  ;;  %v3197_v56 = vadd.f32 %v3196_v44, %v6585_v3  ;;  %v3272_v33 = vmul.f32 %v6585_v3, %v6585_v3  ;;  %v3239_v62 = vadd.f32 %v3238_v25, %v6587_v23  ;;  %v6595_v9 = vpop.f32.mrb[38].mxu0  ;;  %v6597_v51 = vpop.f32.mrb[38].mxu1 }
 0x3ad   :  { %v3274_v21 = vmul.f32 %v6587_v23, %v6587_v23  ;;  %v3328_v4 = vadd.f32 %v3327_v53, %v3271_v32  ;;  %v3370_v49 = vadd.f32 %v3369_v26, %v3273_v10  ;;  %v3177_v29 = vadd.f32 %v3176_v1, %v6595_v9  ;;  %v6602_v5 = vpop.f32.mrb[39].mxu0  ;;  %v6604_v12 = vpop.f32.mrb[39].mxu1 }
 0x3ae   :  { %v3275_v59 = vmul.f32 %v6595_v9, %v6595_v9  ;;  %7715 = vst [vmem:[#allocation36_spill] sm:$0xff] %v6602_v5  ;;  %7716 = vst [vmem:[#allocation38_spill] sm:$0xff] %v6604_v12  ;;  %v3349_v16 = vadd.f32 %v3348_v61, %v3272_v33  ;;  %v3219_v41 = vadd.f32 %v3218_v48, %v6597_v51 }
 0x3af   :  { %v3391_v6 = vadd.f32 %v3390_v35, %v3274_v21  ;;  %v3277_v7 = vmul.f32 %v6597_v51, %v6597_v51  ;;  %v3198_v43 = vadd.f32 %v3197_v56, %v6602_v5  ;;  %v3276_v0 = vmul.f32 %v6602_v5, %v6602_v5 }
 0x3b0   :  { %v3329_v27 = vadd.f32 %v3328_v4, %v3275_v59  ;;  %v3240_v17 = vadd.f32 %v3239_v62, %v6604_v12  ;;  %v3278_v30 = vmul.f32 %v6604_v12, %v6604_v12 }
 0x3b1   :  { %v3371_v34 = vadd.f32 %v3370_v49, %v3277_v7  ;;  %v3350_v37 = vadd.f32 %v3349_v16, %v3276_v0 }
 0x3b2   :  { %v3392_v58 = vadd.f32 %v3391_v6, %v3278_v30  ;;  %v6615_v46 = vpop.f32.mrb[40].mxu0  ;;  %v6617_v54 = vpop.f32.mrb[40].mxu1 }
 0x3b3   :  { %v3178_v15 = vadd.f32 %v3177_v29, %v6615_v46  ;;  %v3279_v55 = vmul.f32 %v6615_v46, %v6615_v46  ;;  %v3220_v28 = vadd.f32 %v3219_v41, %v6617_v54  ;;  %v3281_v40 = vmul.f32 %v6617_v54, %v6617_v54  ;;  %v6625_v19 = vpop.f32.mrb[41].mxu0  ;;  %v6627_v14 = vpop.f32.mrb[41].mxu1 }
 0x3b4   :  { %7717 = vst [vmem:[#allocation40_spill] sm:$0xff] %v6625_v19  ;;  %7718 = vst [vmem:[#allocation42_spill] sm:$0xff] %v6627_v14  ;;  %v3199_v38 = vadd.f32 %v3198_v43, %v6625_v19  ;;  %v3280_v22 = vmul.f32 %v6625_v19, %v6625_v19  ;;  %v3241_v50 = vadd.f32 %v3240_v17, %v6627_v14  ;;  %v6635_v2 = vpop.f32.mrb[42].mxu0  ;;  %v6637_v20 = vpop.f32.mrb[42].mxu1 }
 0x3b5   :  { %v3282_v63 = vmul.f32 %v6627_v14, %v6627_v14  ;;  %v3330_v44 = vadd.f32 %v3329_v27, %v3279_v55  ;;  %v3372_v60 = vadd.f32 %v3371_v34, %v3281_v40  ;;  %v3179_v25 = vadd.f32 %v3178_v15, %v6635_v2  ;;  %v6642_v53 = vpop.f32.mrb[43].mxu0  ;;  %v6644_v26 = vpop.f32.mrb[43].mxu1 }
 0x3b6   :  { %v3283_v18 = vmul.f32 %v6635_v2, %v6635_v2  ;;  %7719 = vst [vmem:[#allocation44_spill] sm:$0xff] %v6642_v53  ;;  %7720 = vst [vmem:[#allocation46_spill] sm:$0xff] %v6644_v26  ;;  %v3351_v61 = vadd.f32 %v3350_v37, %v3280_v22  ;;  %v3221_v1 = vadd.f32 %v3220_v28, %v6637_v20 }
 0x3b7   :  { %v3393_v35 = vadd.f32 %v3392_v58, %v3282_v63  ;;  %v3285_v32 = vmul.f32 %v6637_v20, %v6637_v20  ;;  %v3200_v10 = vadd.f32 %v3199_v38, %v6642_v53  ;;  %v3284_v56 = vmul.f32 %v6642_v53, %v6642_v53 }
 0x3b8   :  { %v3331_v48 = vadd.f32 %v3330_v44, %v3283_v18  ;;  %v3242_v33 = vadd.f32 %v3241_v50, %v6644_v26  ;;  %v3286_v21 = vmul.f32 %v6644_v26, %v6644_v26 }
 0x3b9   :  { %v3373_v62 = vadd.f32 %v3372_v60, %v3285_v32  ;;  %v3352_v4 = vadd.f32 %v3351_v61, %v3284_v56 }
 0x3ba   :  { %v3394_v49 = vadd.f32 %v3393_v35, %v3286_v21  ;;  %v6655_v29 = vpop.f32.mrb[44].mxu0  ;;  %v6657_v59 = vpop.f32.mrb[44].mxu1 }
 0x3bb   :  { %v3180_v16 = vadd.f32 %v3179_v25, %v6655_v29  ;;  %v3287_v6 = vmul.f32 %v6655_v29, %v6655_v29  ;;  %v3222_v41 = vadd.f32 %v3221_v1, %v6657_v59  ;;  %v3289_v7 = vmul.f32 %v6657_v59, %v6657_v59  ;;  %v6665_v27 = vpop.f32.mrb[45].mxu0  ;;  %v6667_v43 = vpop.f32.mrb[45].mxu1 }
 0x3bc   :  { %7721 = vst [vmem:[#allocation48_spill] sm:$0xff] %v6665_v27  ;;  %7722 = vst [vmem:[#allocation50_spill] sm:$0xff] %v6667_v43  ;;  %v3201_v0 = vadd.f32 %v3200_v10, %v6665_v27  ;;  %v3288_v17 = vmul.f32 %v6665_v27, %v6665_v27  ;;  %v3243_v34 = vadd.f32 %v3242_v33, %v6667_v43  ;;  %v6675_v37 = vpop.f32.mrb[46].mxu0  ;;  %v6677_v58 = vpop.f32.mrb[46].mxu1 }
 0x3bd   :  { %v3290_v30 = vmul.f32 %v6667_v43, %v6667_v43  ;;  %v3332_v15 = vadd.f32 %v3331_v48, %v3287_v6  ;;  %v3374_v55 = vadd.f32 %v3373_v62, %v3289_v7  ;;  %v3181_v28 = vadd.f32 %v3180_v16, %v6675_v37  ;;  %v6682_v38 = vpop.f32.mrb[47].mxu0  ;;  %v6684_v22 = vpop.f32.mrb[47].mxu1 }
 0x3be   :  { %v3291_v40 = vmul.f32 %v6675_v37, %v6675_v37  ;;  %7723 = vst [vmem:[#allocation52_spill] sm:$0xff] %v6682_v38  ;;  %7724 = vst [vmem:[#allocation54_spill] sm:$0xff] %v6684_v22  ;;  %v3353_v50 = vadd.f32 %v3352_v4, %v3288_v17  ;;  %v3223_v44 = vadd.f32 %v3222_v41, %v6677_v58 }
 0x3bf   :  { %v3395_v63 = vadd.f32 %v3394_v49, %v3290_v30  ;;  %v3293_v60 = vmul.f32 %v6677_v58, %v6677_v58  ;;  %v3202_v18 = vadd.f32 %v3201_v0, %v6682_v38  ;;  %v3292_v61 = vmul.f32 %v6682_v38, %v6682_v38 }
 0x3c0   :  { %v3333_v25 = vadd.f32 %v3332_v15, %v3291_v40  ;;  %v3244_v35 = vadd.f32 %v3243_v34, %v6684_v22  ;;  %v3294_v32 = vmul.f32 %v6684_v22, %v6684_v22 }
 0x3c1   :  { %v3375_v1 = vadd.f32 %v3374_v55, %v3293_v60  ;;  %v3354_v48 = vadd.f32 %v3353_v50, %v3292_v61 }
 0x3c2   :  { %v3396_v10 = vadd.f32 %v3395_v63, %v3294_v32  ;;  %v6695_v56 = vpop.f32.mrb[48].mxu0  ;;  %v6697_v33 = vpop.f32.mrb[48].mxu1 }
 0x3c3   :  { %v3182_v62 = vadd.f32 %v3181_v28, %v6695_v56  ;;  %v3295_v21 = vmul.f32 %v6695_v56, %v6695_v56  ;;  %v3224_v4 = vadd.f32 %v3223_v44, %v6697_v33  ;;  %v3297_v49 = vmul.f32 %v6697_v33, %v6697_v33  ;;  %v6705_v16 = vpop.f32.mrb[49].mxu0  ;;  %v6707_v6 = vpop.f32.mrb[49].mxu1 }
 0x3c4   :  { %7725 = vst [vmem:[#allocation57_spill] sm:$0xff] %v6705_v16  ;;  %7726 = vst [vmem:[#allocation60_spill] sm:$0xff] %v6707_v6  ;;  %v3203_v41 = vadd.f32 %v3202_v18, %v6705_v16  ;;  %v3296_v7 = vmul.f32 %v6705_v16, %v6705_v16  ;;  %v3245_v0 = vadd.f32 %v3244_v35, %v6707_v6  ;;  %v6715_v34 = vpop.f32.mrb[50].mxu0  ;;  %v6717_v30 = vpop.f32.mrb[50].mxu1 }
 0x3c5   :  { %v3298_v17 = vmul.f32 %v6707_v6, %v6707_v6  ;;  %v3334_v15 = vadd.f32 %v3333_v25, %v3295_v21  ;;  %v3376_v55 = vadd.f32 %v3375_v1, %v3297_v49  ;;  %v3183_v28 = vadd.f32 %v3182_v62, %v6715_v34  ;;  %v6722_v50 = vpop.f32.mrb[51].mxu0  ;;  %v6724_v63 = vpop.f32.mrb[51].mxu1 }
 0x3c6   :  { %v3299_v40 = vmul.f32 %v6715_v34, %v6715_v34  ;;  %7727 = vst [vmem:[#allocation29_spill] sm:$0xff] %v6722_v50  ;;  %7728 = vst [vmem:[#allocation31_spill] sm:$0xff] %v6724_v63  ;;  %v3355_v44 = vadd.f32 %v3354_v48, %v3296_v7  ;;  %v3225_v18 = vadd.f32 %v3224_v4, %v6717_v30 }
 0x3c7   :  { %v3397_v60 = vadd.f32 %v3396_v10, %v3298_v17  ;;  %v3301_v61 = vmul.f32 %v6717_v30, %v6717_v30  ;;  %v3204_v25 = vadd.f32 %v3203_v41, %v6722_v50  ;;  %v3300_v1 = vmul.f32 %v6722_v50, %v6722_v50 }
 0x3c8   :  { %v3335_v35 = vadd.f32 %v3334_v15, %v3299_v40  ;;  %v3246_v32 = vadd.f32 %v3245_v0, %v6724_v63  ;;  %v3302_v21 = vmul.f32 %v6724_v63, %v6724_v63 }
 0x3c9   :  { %v3377_v62 = vadd.f32 %v3376_v55, %v3301_v61  ;;  %v3356_v49 = vadd.f32 %v3355_v44, %v3300_v1 }
 0x3ca   :  { %v3398_v48 = vadd.f32 %v3397_v60, %v3302_v21  ;;  %v6735_v10 = vpop.f32.mrb[52].mxu0  ;;  %v6737_v4 = vpop.f32.mrb[52].mxu1 }
 0x3cb   :  { %v3184_v7 = vadd.f32 %v3183_v28, %v6735_v10  ;;  %v3303_v41 = vmul.f32 %v6735_v10, %v6735_v10  ;;  %v3226_v17 = vadd.f32 %v3225_v18, %v6737_v4  ;;  %v3305_v0 = vmul.f32 %v6737_v4, %v6737_v4  ;;  %v6745_v15 = vpop.f32.mrb[53].mxu0  ;;  %v6747_v55 = vpop.f32.mrb[53].mxu1 }
 0x3cc   :  { %7729 = vst [vmem:[#allocation33_spill] sm:$0xff] %v6745_v15  ;;  %7730 = vst [vmem:[#allocation35_spill] sm:$0xff] %v6747_v55  ;;  %v3205_v40 = vadd.f32 %v3204_v25, %v6745_v15  ;;  %v3304_v44 = vmul.f32 %v6745_v15, %v6745_v15  ;;  %v3247_v60 = vadd.f32 %v3246_v32, %v6747_v55  ;;  %v6755_v61 = vpop.f32.mrb[54].mxu0  ;;  %v6757_v18 = vpop.f32.mrb[54].mxu1 }
 0x3cd   :  { %v3306_v28 = vmul.f32 %v6747_v55, %v6747_v55  ;;  %v3336_v1 = vadd.f32 %v3335_v35, %v3303_v41  ;;  %v3378_v21 = vadd.f32 %v3377_v62, %v3305_v0  ;;  %v3185_v63 = vadd.f32 %v3184_v7, %v6755_v61  ;;  %v6762_v25 = vpop.f32.mrb[55].mxu0  ;;  %v6764_v22 = vpop.f32.mrb[55].mxu1 }
 0x3ce   :  { %v3307_v6 = vmul.f32 %v6755_v61, %v6755_v61  ;;  %7731 = vst [vmem:[#allocation37_spill] sm:$0xff] %v6762_v25  ;;  %7732 = vst [vmem:[#allocation39_spill] sm:$0xff] %v6764_v22  ;;  %v3357_v43 = vadd.f32 %v3356_v49, %v3304_v44  ;;  %v3227_v26 = vadd.f32 %v3226_v17, %v6757_v18 }
 0x3cf   :  { %v3399_v32 = vadd.f32 %v3398_v48, %v3306_v28  ;;  %v3309_v55 = vmul.f32 %v6757_v18, %v6757_v18  ;;  %v3206_v35 = vadd.f32 %v3205_v40, %v6762_v25  ;;  %v3308_v62 = vmul.f32 %v6762_v25, %v6762_v25 }
 0x3d0   :  { %v3337_v14 = vadd.f32 %v3336_v1, %v3307_v6  ;;  %v3248_v7 = vadd.f32 %v3247_v60, %v6764_v22  ;;  %v3310_v0 = vmul.f32 %v6764_v22, %v6764_v22 }
 0x3d1   :  { %v3379_v41 = vadd.f32 %v3378_v21, %v3309_v55  ;;  %v3358_v12 = vadd.f32 %v3357_v43, %v3308_v62 }
 0x3d2   :  { %v3400_v49 = vadd.f32 %v3399_v32, %v3310_v0  ;;  %v6775_v48 = vpop.f32.mrb[56].mxu0  ;;  %v6777_v17 = vpop.f32.mrb[56].mxu1 }
 0x3d3   :  { %v3186_v44 = vadd.f32 %v3185_v63, %v6775_v48  ;;  %v3311_v6 = vmul.f32 %v6775_v48, %v6775_v48  ;;  %v3228_v40 = vadd.f32 %v3227_v26, %v6777_v17  ;;  %v3313_v60 = vmul.f32 %v6777_v17, %v6777_v17  ;;  %v6785_v55 = vpop.f32.mrb[57].mxu0  ;;  %v6787_v28 = vpop.f32.mrb[57].mxu1 }
 0x3d4   :  { %7733 = vst [vmem:[#allocation41_spill] sm:$0xff] %v6785_v55  ;;  %7734 = vst [vmem:[#allocation43_spill] sm:$0xff] %v6787_v28  ;;  %v3207_v43 = vadd.f32 %v3206_v35, %v6785_v55  ;;  %v3312_v1 = vmul.f32 %v6785_v55, %v6785_v55  ;;  %v3249_v21 = vadd.f32 %v3248_v7, %v6787_v28  ;;  %v6795_v32 = vpop.f32.mrb[58].mxu0  ;;  %v6797_v26 = vpop.f32.mrb[58].mxu1 }
 0x3d5   :  { %v3314_v63 = vmul.f32 %v6787_v28, %v6787_v28  ;;  %7735 = vst [vmem:[#allocation45_spill] sm:$0xff] %v6797_v26  ;;  %v3338_v62 = vadd.f32 %v3337_v14, %v3311_v6  ;;  %v3380_v0 = vadd.f32 %v3379_v41, %v3313_v60  ;;  %v3187_v22 = vadd.f32 %v3186_v44, %v6795_v32  ;;  %v6802_v35 = vpop.f32.mrb[59].mxu0  ;;  %v6804_v45 = vpop.f32.mrb[59].mxu1 }
 0x3d6   :  { %v3315_v23 = vmul.f32 %v6795_v32, %v6795_v32  ;;  %7736 = vst [vmem:[#allocation47_spill] sm:$0xff] %v6802_v35  ;;  %7737 = vst [vmem:[#allocation49_spill] sm:$0xff] %v6804_v45  ;;  %v3359_v36 = vadd.f32 %v3358_v12, %v3312_v1  ;;  %v3229_v55 = vadd.f32 %v3228_v40, %v6797_v26 }
 0x3d7   :  { %v3401_v7 = vadd.f32 %v3400_v49, %v3314_v63  ;;  %v3317_v28 = vmul.f32 %v6797_v26, %v6797_v26  ;;  %v3208_v14 = vadd.f32 %v3207_v43, %v6802_v35  ;;  %v3316_v41 = vmul.f32 %v6802_v35, %v6802_v35 }
 0x3d8   :  { %v3339_v25 = vadd.f32 %v3338_v62, %v3315_v23  ;;  %v3250_v44 = vadd.f32 %v3249_v21, %v6804_v45  ;;  %v3318_v60 = vmul.f32 %v6804_v45, %v6804_v45 }
 0x3d9   :  { %v3381_v6 = vadd.f32 %v3380_v0, %v3317_v28  ;;  %v3360_v15 = vadd.f32 %v3359_v36, %v3316_v41 }
 0x3da   :  { %v3402_v12 = vadd.f32 %v3401_v7, %v3318_v60  ;;  %v6815_v49 = vpop.f32.mrb[60].mxu0  ;;  %v6817_v40 = vpop.f32.mrb[60].mxu1 }
 0x3db   :  { %7738 = vst [vmem:[#allocation51_spill] sm:$0xff] %v6817_v40  ;;  %v3188_v1 = vadd.f32 %v3187_v22, %v6815_v49  ;;  %v3319_v23 = vmul.f32 %v6815_v49, %v6815_v49  ;;  %v3230_v43 = vadd.f32 %v3229_v55, %v6817_v40  ;;  %v3321_v21 = vmul.f32 %v6817_v40, %v6817_v40  ;;  %v6825_v28 = vpop.f32.mrb[61].mxu0  ;;  %v6827_v63 = vpop.f32.mrb[61].mxu1 }
 0x3dc   :  { %7739 = vst [vmem:[#allocation53_spill] sm:$0xff] %v6825_v28  ;;  %7740 = vst [vmem:[#allocation55_spill] sm:$0xff] %v6827_v63  ;;  %v3209_v36 = vadd.f32 %v3208_v14, %v6825_v28  ;;  %v3320_v62 = vmul.f32 %v6825_v28, %v6825_v28  ;;  %v3251_v0 = vadd.f32 %v3250_v44, %v6827_v63  ;;  %v6835_v7 = vpop.f32.mrb[62].mxu0  ;;  %v6837_v55 = vpop.f32.mrb[62].mxu1 }
 0x3dd   :  { %v3322_v22 = vmul.f32 %v6827_v63, %v6827_v63  ;;  %7741 = vst [vmem:[#allocation58_spill] sm:$0xff] %v6837_v55  ;;  %v3340_v41 = vadd.f32 %v3339_v25, %v3319_v23  ;;  %v3382_v60 = vadd.f32 %v3381_v6, %v3321_v21  ;;  %v3189_v45 = vadd.f32 %v3188_v1, %v6835_v7  ;;  %v6842_v14 = vpop.f32.mrb[63].mxu0  ;;  %v6844_v50 = vpop.f32.mrb[63].mxu1 }
 0x3de   :  { %v3323_v35 = vmul.f32 %v6835_v7, %v6835_v7  ;;  %7742 = vst [vmem:[#allocation61_spill] sm:$0xff] %v6842_v14  ;;  %7743 = vst [vmem:[#allocation67_spill] sm:$0xff] %v6844_v50  ;;  %v3361_v28 = vadd.f32 %v3360_v15, %v3320_v62  ;;  %v3231_v16 = vadd.f32 %v3230_v43, %v6837_v55 }
 0x3df   :  { %v3403_v44 = vadd.f32 %v3402_v12, %v3322_v22  ;;  %v3325_v63 = vmul.f32 %v6837_v55, %v6837_v55  ;;  %v3190_v38 = vrot.slane %v3189_v45, 4  ;;  %v3210_v25 = vadd.f32 %v3209_v36, %v6842_v14 }
 0x3e0   :  { %v3341_v27 = vadd.f32 %v3340_v41, %v3323_v35  ;;  %v3324_v6 = vmul.f32 %v6842_v14, %v6842_v14  ;;  %v3232_v1 = vrot.slane %v3231_v16, 4  ;;  %v3252_v21 = vadd.f32 %v3251_v0, %v6844_v50 }
 0x3e1   :  { %v3383_v23 = vadd.f32 %v3382_v60, %v3325_v63  ;;  %v3326_v15 = vmul.f32 %v6844_v50, %v6844_v50  ;;  %v3191_v12 = vadd.f32 %v3190_v38, %v3189_v45  ;;  %v3211_v43 = vrot.slane %v3210_v25, 4 }
 0x3e2   :  { %v3342_v62 = vrot.slane %v3341_v27, 4  ;;  %v3362_v22 = vadd.f32 %v3361_v28, %v3324_v6  ;;  %v3233_v53 = vadd.f32 %v3232_v1, %v3231_v16  ;;  %v3253_v5 = vrot.slane %v3252_v21, 4 }
 0x3e3   :  { %v3384_v19 = vrot.slane %v3383_v23, 4  ;;  %v3404_v35 = vadd.f32 %v3403_v44, %v3326_v15  ;;  %v3192_v41 = vrot.slane %v3191_v12, 2  ;;  %v3212_v3 = vadd.f32 %v3211_v43, %v3210_v25 }
 0x3e4   :  { %v3343_v36 = vadd.f32 %v3342_v62, %v3341_v27  ;;  %v3363_v8 = vrot.slane %v3362_v22, 4  ;;  %v3234_v14 = vrot.slane %v3233_v53, 2  ;;  %v3254_v63 = vadd.f32 %v3253_v5, %v3252_v21 }
 0x3e5   :  { %v3385_v24 = vadd.f32 %v3384_v19, %v3383_v23  ;;  %v3405_v60 = vrot.slane %v3404_v35, 4  ;;  %v3193_v0 = vadd.f32 %v3192_v41, %v3191_v12  ;;  %v3213_v40 = vrot.slane %v3212_v3, 2 }
 0x3e6   :  { %v3344_v55 = vrot.slane %v3343_v36, 2  ;;  %v3364_v50 = vadd.f32 %v3363_v8, %v3362_v22  ;;  %v3235_v45 = vadd.f32 %v3234_v14, %v3233_v53  ;;  %v3255_v26 = vrot.slane %v3254_v63, 2 }
 0x3e7   :  { %v3386_v38 = vrot.slane %v3385_v24, 2  ;;  %v3406_v28 = vadd.f32 %v3405_v60, %v3404_v35  ;;  %v3194_v16 = vrot.slane %v3193_v0, 1  ;;  %v3214_v1 = vadd.f32 %v3213_v40, %v3212_v3 }
 0x3e8   :  { %v3345_v6 = vadd.f32 %v3344_v55, %v3343_v36  ;;  %v3365_v44 = vrot.slane %v3364_v50, 2  ;;  %v3236_v15 = vrot.slane %v3235_v45, 1  ;;  %v3256_v25 = vadd.f32 %v3255_v26, %v3254_v63 }
 0x3e9   :  { %v3387_v27 = vadd.f32 %v3386_v38, %v3385_v24  ;;  %v3407_v62 = vrot.slane %v3406_v28, 2  ;;  %v3195_v43 = vadd.f32 %v3194_v16, %v3193_v0  ;;  %v3215_v5 = vrot.slane %v3214_v1, 1 }
 0x3ea   :  { %v3346_v19 = vrot.slane %v3345_v6, 1  ;;  %v3366_v23 = vadd.f32 %v3365_v44, %v3364_v50  ;;  %v3237_v21 = vadd.f32 %v3236_v15, %v3235_v45  ;;  %v3257_v41 = vrot.slane %v3256_v25, 1 }
 0x3eb   :  { %v3388_v12 = vrot.slane %v3387_v27, 1  ;;  %v3408_v8 = vadd.f32 %v3407_v62, %v3406_v28  ;;  %v3259_v53 = vmul.f32 0.0078125, %v3195_v43  ;;  %v3216_v22 = vadd.f32 %v3215_v5, %v3214_v1 }
 0x3ec   :  { %v3347_v14 = vadd.f32 %v3346_v19, %v3345_v6  ;;  %v3367_v35 = vrot.slane %v3366_v23, 1  ;;  %v3261_v60 = vmul.f32 0.0078125, %v3237_v21  ;;  %v3258_v3 = vadd.f32 %v3257_v41, %v3256_v25 }
 0x3ed   :  { %v3389_v55 = vadd.f32 %v3388_v12, %v3387_v27  ;;  %v3409_v40 = vrot.slane %v3408_v8, 1  ;;  %v3415_v24 = vmul.f32 %v3259_v53, %v3259_v53  ;;  %v6855_v26 = vmul.f32 0.0078125, %v3216_v22 }
 0x3ee   :  { %v3411_v36 = vmul.f32 0.0078125, %v3347_v14  ;;  %v3368_v63 = vadd.f32 %v3367_v35, %v3366_v23  ;;  %v3417_v38 = vmul.f32 %v3261_v60, %v3261_v60  ;;  %v6857_v50 = vmul.f32 0.0078125, %v3258_v3  ;;  %v7744_v3 = vld [vmem:[#allocation64_spill] sm:$0xff] }
 0x3ef   :  { %v3413_v0 = vmul.f32 0.0078125, %v3389_v55  ;;  %v3410_v45 = vadd.f32 %v3409_v40, %v3408_v8  ;;  %v3416_v6 = vmul.f32 %v6855_v26, %v6855_v26  ;;  %v6864_v8 = vsub.s32 2, %v6247_v31 }
 0x3f0   :  { %v3419_v16 = vsub.f32 %v3411_v36, %v3415_v24  ;;  %v3412_v28 = vmul.f32 0.0078125, %v3368_v63  ;;  %v3418_v15 = vmul.f32 %v6857_v50, %v6857_v50 }
 0x3f1   :  { %v3421_v1 = vsub.f32 %v3413_v0, %v3417_v38  ;;  %v3414_v44 = vmul.f32 0.0078125, %v3410_v45  ;;  %v6870_v0 = vsub.s32 3, %v6247_v31 }
 0x3f2   :  { %v3423_v27 = vmax.f32 %v3419_v16, 0.0  ;;  %v3420_v25 = vsub.f32 %v3412_v28, %v3416_v6  ;;  %v7745_v16 = vld [vmem:[#allocation65_spill] sm:$0xff]  ;;  %v7746_v6 = vld [vmem:[#allocation66_spill] sm:$0xff] }
 0x3f3   :  { %v3425_v62 = vmax.f32 %v3421_v1, 0.0  ;;  %v3422_v43 = vsub.f32 %v3414_v44, %v3418_v15 }
 0x3f4   :  { %v3427_v19 = vadd.f32 1e-05, %v3423_v27  ;;  %v3424_v5 = vmax.f32 %v3420_v25, 0.0 }
 0x3f5   :  { %v3429_v23 = vadd.f32 1e-05, %v3425_v62  ;;  %v3426_v21 = vmax.f32 %v3422_v43, 0.0 }
 0x3f6   :  { %4715 = vrsqrt.f32 %v3427_v19  ;;  %v3428_v12 = vadd.f32 1e-05, %v3424_v5 }
 0x3f7   :  { %4717 = vrsqrt.f32 %v3429_v23  ;;  %v3430_v41 = vadd.f32 1e-05, %v3426_v21 }
 0x3f8   :  { %4719 = vrsqrt.f32 %v3428_v12 }
 0x3f9   :  { %4721 = vrsqrt.f32 %v3430_v41 }
 0x400   :  { %v4716_v14 = vpop.eup %4715 }
 0x401   :  { %v4718_v22 = vpop.eup %4717  ;;  %v3435_v35 = vmul.f32 %v4716_v14, %v6252_v57 }
 0x402   :  { %v4720_v55 = vpop.eup %4719  ;;  %v3437_v40 = vmul.f32 %v4718_v22, %v7744_v3 }
 0x403   :  { %v4722_v36 = vpop.eup %4721  ;;  %v3439_v24 = vmul.f32 %v3435_v35, %v3259_v53  ;;  %v3462_v63 = vrot.slane %v3435_v35, %v6864_v8  ;;  %v6878_v28 = vmul.f32 %v4720_v55, %v7745_v16 }
 0x404   :  { %v6872_v38 = vmul.f32 %v3437_v40, %v3261_v60  ;;  %v6875_v45 = vrot.slane %v3437_v40, %v6864_v8  ;;  %v6881_v1 = vmul.f32 %v4722_v36, %v7746_v6 }
 0x405   :  { %v3447_v44 = vrot.slane %v3439_v24, 7  ;;  %v3475_v15 = vmul.f32 %v3462_v63, %v6535_v13  ;;  %v3479_v53 = vmul.f32 %v3462_v63, %v6551_v39  ;;  %v3483_v27 = vmul.f32 %v3462_v63, %v6575_v42 }
 0x406   :  { %v3487_v25 = vmul.f32 %v3462_v63, %v6595_v9  ;;  %v3491_v60 = vmul.f32 %v3462_v63, %v6615_v46  ;;  %v3495_v62 = vmul.f32 %v3462_v63, %v6635_v2  ;;  %v3499_v43 = vmul.f32 %v3462_v63, %v6655_v29 }
 0x407   :  { %v3455_v19 = vsub.f32 %v6252_v57, %v3447_v44  ;;  %v3503_v5 = vmul.f32 %v3462_v63, %v6675_v37  ;;  %v3507_v23 = vmul.f32 %v3462_v63, %v6695_v56  ;;  %v3511_v13 = vmul.f32 %v3462_v63, %v6715_v34 }
 0x408   :  { %v3515_v39 = vmul.f32 %v3462_v63, %v6735_v10  ;;  %v3519_v42 = vmul.f32 %v3462_v63, %v6755_v61  ;;  %v3523_v9 = vmul.f32 %v3462_v63, %v6775_v48  ;;  %v3527_v46 = vmul.f32 %v3462_v63, %v6795_v32 }
 0x409   :  { %v3531_v2 = vmul.f32 %v3462_v63, %v6815_v49  ;;  %v3535_v29 = vmul.f32 %v3462_v63, %v6835_v7  ;;  %v3542_v21 = vrot.slane %v3455_v19, %v6870_v0  ;;  %v3449_v37 = vrot.slane %v6872_v38, 7 }
 0x40a   :  { %v3477_v56 = vmul.f32 %v6875_v45, %v6537_v47  ;;  %v3481_v34 = vmul.f32 %v6875_v45, %v6553_v52  ;;  %v3485_v10 = vmul.f32 %v6875_v45, %v6577_v11  ;;  %v3489_v61 = vmul.f32 %v6875_v45, %v6597_v51 }
 0x40b   :  { %v3555_v48 = vadd.f32 %v3542_v21, %v3475_v15  ;;  %v3559_v32 = vadd.f32 %v3542_v21, %v3479_v53  ;;  %v3563_v49 = vadd.f32 %v3542_v21, %v3483_v27  ;;  %v3567_v7 = vadd.f32 %v3542_v21, %v3487_v25 }
 0x40c   :  { %v3571_v12 = vadd.f32 %v3542_v21, %v3491_v60  ;;  %v3575_v41 = vadd.f32 %v3542_v21, %v3495_v62  ;;  %v3579_v14 = vadd.f32 %v3542_v21, %v3499_v43  ;;  %v3583_v22 = vadd.f32 %v3542_v21, %v3503_v5 }
 0x40d   :  { %v3587_v35 = vadd.f32 %v3542_v21, %v3507_v23  ;;  %v3591_v55 = vadd.f32 %v3542_v21, %v3511_v13  ;;  %v3595_v47 = vadd.f32 %v3542_v21, %v3515_v39  ;;  %v3599_v40 = vadd.f32 %v3542_v21, %v3519_v42 }
 0x40e   :  { %v3603_v36 = vadd.f32 %v3542_v21, %v3523_v9  ;;  %v3607_v52 = vadd.f32 %v3542_v21, %v3527_v46  ;;  %v3611_v24 = vadd.f32 %v3542_v21, %v3531_v2  ;;  %v3615_v63 = vadd.f32 %v3542_v21, %v3535_v29 }
 0x40f   :  { %v3619_v11 = vmax.f32 %v3555_v48, 0.0  ;;  %v3623_v38 = vmax.f32 %v3559_v32, 0.0  ;;  %v3627_v44 = vmax.f32 %v3563_v49, 0.0  ;;  %v3631_v51 = vmax.f32 %v3567_v7, 0.0 }
 0x410   :  { %v3635_v15 = vmax.f32 %v3571_v12, 0.0  ;;  %v3639_v53 = vmax.f32 %v3575_v41, 0.0  ;;  %v3643_v27 = vmax.f32 %v3579_v14, 0.0  ;;  %v3647_v25 = vmax.f32 %v3583_v22, 0.0 }
 0x411   :  { %v3651_v60 = vmax.f32 %v3587_v35, 0.0  ;;  %v3655_v62 = vmax.f32 %v3591_v55, 0.0  ;;  %v3659_v43 = vmax.f32 %v3595_v47, 0.0  ;;  %v3663_v19 = vmax.f32 %v3599_v40, 0.0  ;;  %v7748_v55 = vld [vmem:[#allocation51_spill] sm:$0xff]  ;;  %v7749_v47 = vld [vmem:[#allocation58_spill] sm:$0xff] }
 0x412   :  { %v3667_v5 = vmax.f32 %v3603_v36, 0.0  ;;  %v3671_v23 = vmax.f32 %v3607_v52, 0.0  ;;  %v3675_v13 = vmax.f32 %v3611_v24, 0.0  ;;  %v3679_v39 = vmax.f32 %v3615_v63, 0.0 }
 0x413   :  { %v6910_v42 = vpack.c.bf16 %v3623_v38, %v3619_v11  ;;  %v6912_v9 = vpack.c.bf16 %v3631_v51, %v3627_v44  ;;  %v6914_v46 = vpack.c.bf16 %v3639_v53, %v3635_v15  ;;  %v6916_v2 = vpack.c.bf16 %v3647_v25, %v3643_v27 }
 0x414   :  { %v6918_v29 = vpack.c.bf16 %v3655_v62, %v3651_v60  ;;  %v6920_v21 = vpack.c.bf16 %v3663_v19, %v3659_v43  ;;  %v6922_v48 = vpack.c.bf16 %v3671_v23, %v3667_v5  ;;  %v6924_v32 = vpack.c.bf16 %v3679_v39, %v3675_v13 }
 0x415   :  { %v3457_v49 = vsub.f32 %v7744_v3, %v3449_v37  ;;  %v3493_v7 = vmul.f32 %v6875_v45, %v6617_v54  ;;  %v3497_v12 = vmul.f32 %v6875_v45, %v6637_v20  ;;  %v3501_v41 = vmul.f32 %v6875_v45, %v6657_v59  ;;  %v7747_v37 = vld [vmem:[#allocation45_spill] sm:$0xff] }
 0x416   :  { %v3505_v14 = vmul.f32 %v6875_v45, %v6677_v58  ;;  %v3509_v22 = vmul.f32 %v6875_v45, %v6697_v33  ;;  %v3513_v35 = vmul.f32 %v6875_v45, %v6717_v30  ;;  %v3517_v3 = vmul.f32 %v6875_v45, %v6737_v4 }
 0x417   :  { %v3521_v54 = vmul.f32 %v6875_v45, %v6757_v18  ;;  %v3525_v20 = vmul.f32 %v6875_v45, %v6777_v17  ;;  %v3529_v59 = vmul.f32 %v6875_v45, %v7747_v37  ;;  %v3533_v58 = vmul.f32 %v6875_v45, %v7748_v55 }
 0x418   :  { %v3537_v33 = vmul.f32 %v6875_v45, %v7749_v47  ;;  %v3550_v30 = vrot.slane %v3457_v49, %v6870_v0  ;;  %v3440_v4 = vmul.f32 %v6878_v28, %v6855_v26  ;;  %v3466_v18 = vrot.slane %v6878_v28, %v6864_v8 }
 0x419   :  { %v6958_v17 = vmul.f32 %v6881_v1, %v6857_v50  ;;  %v6962_v40 = vrot.slane %v6881_v1, %v6864_v8 }
 0x41a   :  { %v3557_v36 = vadd.f32 %v3550_v30, %v3477_v56  ;;  %v3561_v52 = vadd.f32 %v3550_v30, %v3481_v34  ;;  %v3565_v24 = vadd.f32 %v3550_v30, %v3485_v10  ;;  %v3569_v45 = vadd.f32 %v3550_v30, %v3489_v61 }
 0x41b   :  { %v3573_v63 = vadd.f32 %v3550_v30, %v3493_v7  ;;  %v3577_v11 = vadd.f32 %v3550_v30, %v3497_v12  ;;  %v3581_v38 = vadd.f32 %v3550_v30, %v3501_v41  ;;  %v3585_v44 = vadd.f32 %v3550_v30, %v3505_v14 }
 0x41c   :  { %v3589_v26 = vadd.f32 %v3550_v30, %v3509_v22  ;;  %v3593_v51 = vadd.f32 %v3550_v30, %v3513_v35  ;;  %v3597_v15 = vadd.f32 %v3550_v30, %v3517_v3  ;;  %v3601_v28 = vadd.f32 %v3550_v30, %v3521_v54 }
 0x41d   :  { %v3605_v53 = vadd.f32 %v3550_v30, %v3525_v20  ;;  %v3609_v27 = vadd.f32 %v3550_v30, %v3529_v59  ;;  %v3613_v50 = vadd.f32 %v3550_v30, %v3533_v58  ;;  %v3617_v25 = vadd.f32 %v3550_v30, %v3537_v33  ;;  %v7751_v59 = vld [vmem:[#allocation56_spill] sm:$0xff] }
 0x41e   :  { %v3621_v60 = vmax.f32 %v3557_v36, 0.0  ;;  %v3625_v62 = vmax.f32 %v3561_v52, 0.0  ;;  %v3629_v8 = vmax.f32 %v3565_v24, 0.0  ;;  %v3633_v1 = vmax.f32 %v3569_v45, 0.0  ;;  %v7752_v58 = vld [vmem:[#allocation28_spill] sm:$0xff] }
 0x41f   :  { %v3637_v56 = vmax.f32 %v3573_v63, 0.0  ;;  %v3641_v34 = vmax.f32 %v3577_v11, 0.0  ;;  %v3645_v10 = vmax.f32 %v3581_v38, 0.0  ;;  %v3649_v61 = vmax.f32 %v3585_v44, 0.0  ;;  %v7753_v33 = vld [vmem:[#allocation32_spill] sm:$0xff] }
 0x420   :  { %v3653_v43 = vmax.f32 %v3589_v26, 0.0  ;;  %v3657_v19 = vmax.f32 %v3593_v51, 0.0  ;;  %v3661_v5 = vmax.f32 %v3597_v15, 0.0  ;;  %v3665_v23 = vmax.f32 %v3601_v28, 0.0  ;;  %v7754_v36 = vld [vmem:[#allocation36_spill] sm:$0xff]  ;;  %v7759_v28 = vld [vmem:[#allocation57_spill] sm:$0xff] }
 0x421   :  { %v3669_v13 = vmax.f32 %v3605_v53, 0.0  ;;  %v3673_v39 = vmax.f32 %v3609_v27, 0.0  ;;  %v3677_v49 = vmax.f32 %v3613_v50, 0.0  ;;  %v3681_v7 = vmax.f32 %v3617_v25, 0.0  ;;  %v7755_v24 = vld [vmem:[#allocation40_spill] sm:$0xff]  ;;  %v7760_v53 = vld [vmem:[#allocation29_spill] sm:$0xff] }
 0x422   :  { %v6964_v12 = vpack.c.bf16 %v3625_v62, %v3621_v60  ;;  %v6966_v41 = vpack.c.bf16 %v3633_v1, %v3629_v8  ;;  %v6968_v14 = vpack.c.bf16 %v3641_v34, %v3637_v56  ;;  %v6970_v22 = vpack.c.bf16 %v3649_v61, %v3645_v10  ;;  %v7756_v63 = vld [vmem:[#allocation44_spill] sm:$0xff]  ;;  %v7761_v50 = vld [vmem:[#allocation33_spill] sm:$0xff]  ;;  %v7764_v56 = vld [vmem:[#allocation47_spill] sm:$0xff] }
 0x423   :  { %v6972_v35 = vpack.c.bf16 %v3657_v19, %v3653_v43  ;;  %v6974_v3 = vpack.c.bf16 %v3665_v23, %v3661_v5  ;;  %v6976_v54 = vpack.c.bf16 %v3673_v39, %v3669_v13  ;;  %v6978_v20 = vpack.c.bf16 %v3681_v7, %v3677_v49  ;;  %v7757_v38 = vld [vmem:[#allocation48_spill] sm:$0xff]  ;;  %v7762_v60 = vld [vmem:[#allocation37_spill] sm:$0xff]  ;;  %v7767_v13 = vld [vmem:[#allocation59_spill] sm:$0xff] }
 0x424   :  { %7750 = vst [vmem:[#allocation64_spill] sm:$0xff] %v6970_v22  ;;  %v3448_v37 = vrot.slane %v3440_v4, 7  ;;  %v3476_v55 = vmul.f32 %v3466_v18, %v7751_v59  ;;  %v3480_v47 = vmul.f32 %v3466_v18, %v7752_v58  ;;  %v3484_v30 = vmul.f32 %v3466_v18, %v7753_v33  ;;  %v7758_v51 = vld [vmem:[#allocation52_spill] sm:$0xff]  ;;  %v7763_v8 = vld [vmem:[#allocation41_spill] sm:$0xff]  ;;  %v7768_v49 = vld [vmem:[#allocation30_spill] sm:$0xff] }
 0x425   :  { %v3488_v52 = vmul.f32 %v3466_v18, %v7754_v36  ;;  %v3492_v45 = vmul.f32 %v3466_v18, %v7755_v24  ;;  %v3496_v11 = vmul.f32 %v3466_v18, %v7756_v63  ;;  %v3500_v44 = vmul.f32 %v3466_v18, %v7757_v38  ;;  %v7765_v10 = vld [vmem:[#allocation53_spill] sm:$0xff]  ;;  %v7770_v58 = vld [vmem:[#allocation38_spill] sm:$0xff] }
 0x426   :  { %v3456_v26 = vsub.f32 %v7745_v16, %v3448_v37  ;;  %v3504_v15 = vmul.f32 %v3466_v18, %v7758_v51  ;;  %v3508_v4 = vmul.f32 %v3466_v18, %v7759_v28  ;;  %v3512_v27 = vmul.f32 %v3466_v18, %v7760_v53  ;;  %v7766_v43 = vld [vmem:[#allocation61_spill] sm:$0xff]  ;;  %v7769_v37 = vld [vmem:[#allocation34_spill] sm:$0xff] }
 0x427   :  { %v3516_v25 = vmul.f32 %v3466_v18, %v7761_v50  ;;  %v3520_v62 = vmul.f32 %v3466_v18, %v7762_v60  ;;  %v3524_v1 = vmul.f32 %v3466_v18, %v7763_v8  ;;  %v3528_v34 = vmul.f32 %v3466_v18, %v7764_v56 }
 0x428   :  { %v3532_v61 = vmul.f32 %v3466_v18, %v7765_v10  ;;  %v3536_v19 = vmul.f32 %v3466_v18, %v7766_v43  ;;  %v3546_v5 = vrot.slane %v3456_v26, %v6870_v0  ;;  %v3450_v23 = vrot.slane %v6958_v17, 7 }
 0x429   :  { %v3478_v39 = vmul.f32 %v6962_v40, %v7767_v13  ;;  %v3482_v7 = vmul.f32 %v6962_v40, %v7768_v49  ;;  %v3486_v59 = vmul.f32 %v6962_v40, %v7769_v37  ;;  %v3490_v33 = vmul.f32 %v6962_v40, %v7770_v58 }
 0x42a   :  { %v3556_v36 = vadd.f32 %v3546_v5, %v3476_v55  ;;  %v3560_v24 = vadd.f32 %v3546_v5, %v3480_v47  ;;  %v3564_v63 = vadd.f32 %v3546_v5, %v3484_v30  ;;  %v3568_v18 = vadd.f32 %v3546_v5, %v3488_v52 }
 0x42b   :  { %v3572_v38 = vadd.f32 %v3546_v5, %v3492_v45  ;;  %v3576_v26 = vadd.f32 %v3546_v5, %v3496_v11  ;;  %v3580_v51 = vadd.f32 %v3546_v5, %v3500_v44  ;;  %v3584_v17 = vadd.f32 %v3546_v5, %v3504_v15 }
 0x42c   :  { %v3588_v28 = vadd.f32 %v3546_v5, %v3508_v4  ;;  %v3592_v53 = vadd.f32 %v3546_v5, %v3512_v27  ;;  %v3596_v50 = vadd.f32 %v3546_v5, %v3516_v25  ;;  %v3600_v60 = vadd.f32 %v3546_v5, %v3520_v62 }
 0x42d   :  { %v3604_v8 = vadd.f32 %v3546_v5, %v3524_v1  ;;  %v3608_v56 = vadd.f32 %v3546_v5, %v3528_v34  ;;  %v3612_v10 = vadd.f32 %v3546_v5, %v3532_v61  ;;  %v3616_v43 = vadd.f32 %v3546_v5, %v3536_v19 }
 0x42e   :  { %v3620_v13 = vmax.f32 %v3556_v36, 0.0  ;;  %v3624_v49 = vmax.f32 %v3560_v24, 0.0  ;;  %v3628_v37 = vmax.f32 %v3564_v63, 0.0  ;;  %v3632_v58 = vmax.f32 %v3568_v18, 0.0 }
 0x42f   :  { %v3636_v55 = vmax.f32 %v3572_v38, 0.0  ;;  %v3640_v47 = vmax.f32 %v3576_v26, 0.0  ;;  %v3644_v30 = vmax.f32 %v3580_v51, 0.0  ;;  %v3648_v52 = vmax.f32 %v3584_v17, 0.0  ;;  %v7771_v38 = vld [vmem:[#allocation42_spill] sm:$0xff] }
 0x430   :  { %v3652_v45 = vmax.f32 %v3588_v28, 0.0  ;;  %v3656_v11 = vmax.f32 %v3592_v53, 0.0  ;;  %v3660_v44 = vmax.f32 %v3596_v50, 0.0  ;;  %v3664_v15 = vmax.f32 %v3600_v60, 0.0  ;;  %v7772_v51 = vld [vmem:[#allocation46_spill] sm:$0xff] }
 0x431   :  { %v3668_v4 = vmax.f32 %v3604_v8, 0.0  ;;  %v3672_v27 = vmax.f32 %v3608_v56, 0.0  ;;  %v3676_v25 = vmax.f32 %v3612_v10, 0.0  ;;  %v3680_v62 = vmax.f32 %v3616_v43, 0.0  ;;  %v7773_v28 = vld [vmem:[#allocation50_spill] sm:$0xff]  ;;  %v7775_v8 = vld [vmem:[#allocation60_spill] sm:$0xff] }
 0x432   :  { %v7007_v1 = vpack.c.bf16 %v3624_v49, %v3620_v13  ;;  %v7009_v34 = vpack.c.bf16 %v3632_v58, %v3628_v37  ;;  %v7011_v61 = vpack.c.bf16 %v3640_v47, %v3636_v55  ;;  %v7013_v19 = vpack.c.bf16 %v3648_v52, %v3644_v30  ;;  %v7774_v50 = vld [vmem:[#allocation54_spill] sm:$0xff]  ;;  %v7776_v10 = vld [vmem:[#allocation31_spill] sm:$0xff]  ;;  %v7780_v55 = vld [vmem:[#allocation49_spill] sm:$0xff] }
 0x433   :  { %v7015_v5 = vpack.c.bf16 %v3656_v11, %v3652_v45  ;;  %v7017_v36 = vpack.c.bf16 %v3664_v15, %v3660_v44  ;;  %v7019_v24 = vpack.c.bf16 %v3672_v27, %v3668_v4  ;;  %v7021_v63 = vpack.c.bf16 %v3680_v62, %v3676_v25  ;;  %v7777_v13 = vld [vmem:[#allocation35_spill] sm:$0xff] }
 0x434   :  { %v3458_v18 = vsub.f32 %v7746_v6, %v3450_v23  ;;  %v3494_v26 = vmul.f32 %v6962_v40, %v7771_v38  ;;  %v3498_v17 = vmul.f32 %v6962_v40, %v7772_v51  ;;  %v3502_v53 = vmul.f32 %v6962_v40, %v7773_v28  ;;  %v7778_v23 = vld [vmem:[#allocation39_spill] sm:$0xff] }
 0x435   :  { %v3506_v60 = vmul.f32 %v6962_v40, %v7774_v50  ;;  %v3510_v56 = vmul.f32 %v6962_v40, %v7775_v8  ;;  %v3514_v43 = vmul.f32 %v6962_v40, %v7776_v10  ;;  %v3518_v6 = vmul.f32 %v6962_v40, %v7777_v13  ;;  %v7779_v37 = vld [vmem:[#allocation43_spill] sm:$0xff] }
 0x436   :  { %v3522_v49 = vmul.f32 %v6962_v40, %v7778_v23  ;;  %v3526_v58 = vmul.f32 %v6962_v40, %v7779_v37  ;;  %v3530_v47 = vmul.f32 %v6962_v40, %v7780_v55  ;;  %v7781_v30 = vld [vmem:[#allocation55_spill] sm:$0xff]  ;;  %v3554_v44 = vrot.slane %v3458_v18, %v6870_v0 }
 0x437   :  { %v3534_v52 = vmul.f32 %v6962_v40, %v7781_v30  ;;  %v7782_v45 = vld [vmem:[#allocation67_spill] sm:$0xff] }
 0x438   :  { %v3538_v11 = vmul.f32 %v6962_v40, %v7782_v45  ;;  %v3558_v15 = vadd.f32 %v3554_v44, %v3478_v39  ;;  %v3562_v4 = vadd.f32 %v3554_v44, %v3482_v7  ;;  %v3566_v27 = vadd.f32 %v3554_v44, %v3486_v59 }
 0x439   :  { %v3570_v25 = vadd.f32 %v3554_v44, %v3490_v33  ;;  %v3574_v62 = vadd.f32 %v3554_v44, %v3494_v26  ;;  %v3578_v38 = vadd.f32 %v3554_v44, %v3498_v17  ;;  %v3582_v51 = vadd.f32 %v3554_v44, %v3502_v53 }
 0x43a   :  { %v3586_v28 = vadd.f32 %v3554_v44, %v3506_v60  ;;  %v3590_v50 = vadd.f32 %v3554_v44, %v3510_v56  ;;  %v3594_v8 = vadd.f32 %v3554_v44, %v3514_v43  ;;  %v3598_v10 = vadd.f32 %v3554_v44, %v3518_v6 }
 0x43b   :  { %v3602_v13 = vadd.f32 %v3554_v44, %v3522_v49  ;;  %v3606_v23 = vadd.f32 %v3554_v44, %v3526_v58  ;;  %v3610_v37 = vadd.f32 %v3554_v44, %v3530_v47  ;;  %v3614_v55 = vadd.f32 %v3554_v44, %v3534_v52 }
 0x43c   :  { %v3618_v30 = vadd.f32 %v3554_v44, %v3538_v11  ;;  %v3622_v16 = vmax.f32 %v3558_v15, 0.0  ;;  %v3626_v40 = vmax.f32 %v3562_v4, 0.0  ;;  %v3630_v45 = vmax.f32 %v3566_v27, 0.0 }
 0x43d   :  { %v3634_v0 = vmax.f32 %v3570_v25, 0.0  ;;  %v3638_v39 = vmax.f32 %v3574_v62, 0.0  ;;  %v3642_v7 = vmax.f32 %v3578_v38, 0.0  ;;  %v3646_v59 = vmax.f32 %v3582_v51, 0.0 }
 0x43e   :  { %v3650_v33 = vmax.f32 %v3586_v28, 0.0  ;;  %v3654_v18 = vmax.f32 %v3590_v50, 0.0  ;;  %v3658_v26 = vmax.f32 %v3594_v8, 0.0  ;;  %v3662_v17 = vmax.f32 %v3598_v10, 0.0 }
 0x43f   :  { %v3666_v53 = vmax.f32 %v3602_v13, 0.0  ;;  %v3670_v60 = vmax.f32 %v3606_v23, 0.0  ;;  %v3674_v56 = vmax.f32 %v3610_v37, 0.0  ;;  %v3678_v43 = vmax.f32 %v3614_v55, 0.0 }
 0x440   :  { %v3682_v6 = vmax.f32 %v3618_v30, 0.0  ;;  %v7049_v49 = vpack.c.bf16 %v3626_v40, %v3622_v16  ;;  %v7051_v58 = vpack.c.bf16 %v3634_v0, %v3630_v45  ;;  %v7053_v47 = vpack.c.bf16 %v3642_v7, %v3638_v39 }
 0x441   :  { %v7055_v52 = vpack.c.bf16 %v3650_v33, %v3646_v59  ;;  %v3702_v11 = vpack.c.bf16 %v3658_v26, %v3654_v18  ;;  %v7057_v44 = vpack.c.bf16 %v3666_v53, %v3662_v17  ;;  %v7059_v15 = vpack.c.bf16 %v3674_v56, %v3670_v60 }
 0x442   :  { %v7061_v4 = vpack.c.bf16 %v3682_v6, %v3678_v43 }
 0x443   :  { %7783 = vst [vmem:[#allocation66_spill] sm:$0xff] %v7055_v52 }
 0x444   :  { %4729 = dma.done.wait [#allocation5 + $0x1], 8192 }
 0x445   :  { %4730 = vsyncadd [#allocation5 + $0x1], 4294959104  ;;  %3814 = vmatprep.mubr.bf16.mxu0 %v7007_v1  ;;  %3967 = vmatprep.mubr.bf16.mxu1 %v3702_v11  ;;  %v3719_v16 = vld [vmem:[#allocation3 + $0x8] sm:$0xff]  ;;  %v3718_v27 = vld [vmem:[#allocation3] sm:$0xff] }
 0x446   :  { %v3721_v25 = vld [vmem:[#allocation3 + $0x18] sm:$0xff]  ;;  %3782 = vmatprep.subr.bf16.mxu0 %v3719_v16  ;;  %v3720_v62 = vld [vmem:[#allocation3 + $0x10] sm:$0xff]  ;;  %v3723_v38 = vld [vmem:[#allocation3 + $0x28] sm:$0xff] }
 0x447   :  { %3783 = vmatpush1.bf16.msra.mxu0 %v3718_v27  ;;  %v7064_v51 = vld [vmem:[#allocation3 + $0x108] sm:$0xff]  ;;  %v7067_v28 = vld [vmem:[#allocation3 + $0x100] sm:$0xff]  ;;  %v7070_v1 = vld [vmem:[#allocation3 + $0x118] sm:$0xff] }
 0x448   :  { %3784 = vmatprep.subr.bf16.mxu0 %v3721_v25  ;;  %4566 = vmatprep.subr.bf16.mxu1 %v7064_v51  ;;  %v3722_v50 = vld [vmem:[#allocation3 + $0x20] sm:$0xff]  ;;  %v3725_v8 = vld [vmem:[#allocation3 + $0x38] sm:$0xff]  ;;  %v7073_v10 = vld [vmem:[#allocation3 + $0x110] sm:$0xff] }
 0x449   :  { %4582 = vmatpush1.bf16.msra.mxu1 %v7067_v28  ;;  %v7075_v13 = vld [vmem:[#allocation3 + $0x128] sm:$0xff]  ;;  %v3724_v23 = vld [vmem:[#allocation3 + $0x30] sm:$0xff]  ;;  %v7079_v55 = vld [vmem:[#allocation3 + $0x120] sm:$0xff] }
 0x44a   :  { %4567 = vmatprep.subr.bf16.mxu1 %v7070_v1  ;;  %v3727_v37 = vld [vmem:[#allocation3 + $0x48] sm:$0xff]  ;;  %v7081_v30 = vld [vmem:[#allocation3 + $0x138] sm:$0xff]  ;;  %v3726_v40 = vld [vmem:[#allocation3 + $0x40] sm:$0xff] }
 0x44b   :  { %3785 = vmatpush1.bf16.msra.mxu0 %v3720_v62  ;;  %v3729_v45 = vld [vmem:[#allocation3 + $0x58] sm:$0xff]  ;;  %v7085_v0 = vld [vmem:[#allocation3 + $0x130] sm:$0xff]  ;;  %v7087_v39 = vld [vmem:[#allocation3 + $0x148] sm:$0xff] }
 0x44c   :  { %3786 = vmatprep.subr.bf16.mxu0 %v3723_v38  ;;  %v3728_v7 = vld [vmem:[#allocation3 + $0x50] sm:$0xff]  ;;  %v3731_v59 = vld [vmem:[#allocation3 + $0x68] sm:$0xff]  ;;  %v7091_v33 = vld [vmem:[#allocation3 + $0x140] sm:$0xff] }
 0x44d   :  { %4583 = vmatpush1.bf16.msra.mxu1 %v7073_v10  ;;  %v7093_v18 = vld [vmem:[#allocation3 + $0x158] sm:$0xff]  ;;  %v3730_v26 = vld [vmem:[#allocation3 + $0x60] sm:$0xff]  ;;  %v7097_v53 = vld [vmem:[#allocation3 + $0x150] sm:$0xff] }
 0x44e   :  { %4568 = vmatprep.subr.bf16.mxu1 %v7075_v13  ;;  %v3733_v17 = vld [vmem:[#allocation3 + $0x78] sm:$0xff]  ;;  %v7099_v60 = vld [vmem:[#allocation3 + $0x168] sm:$0xff]  ;;  %v3732_v56 = vld [vmem:[#allocation3 + $0x70] sm:$0xff] }
 0x44f   :  { %3787 = vmatpush1.bf16.msra.mxu0 %v3722_v50  ;;  %v3735_v43 = vld [vmem:[#allocation3 + $0x88] sm:$0xff]  ;;  %v7103_v6 = vld [vmem:[#allocation3 + $0x160] sm:$0xff]  ;;  %v7105_v11 = vld [vmem:[#allocation3 + $0x178] sm:$0xff] }
 0x450   :  { %3788 = vmatprep.subr.bf16.mxu0 %v3725_v8  ;;  %v3734_v16 = vld [vmem:[#allocation3 + $0x80] sm:$0xff]  ;;  %v3737_v27 = vld [vmem:[#allocation3 + $0x98] sm:$0xff]  ;;  %v7109_v25 = vld [vmem:[#allocation3 + $0x170] sm:$0xff] }
 0x451   :  { %4584 = vmatpush1.bf16.msra.mxu1 %v7079_v55  ;;  %v7111_v62 = vld [vmem:[#allocation3 + $0x188] sm:$0xff]  ;;  %v3736_v38 = vld [vmem:[#allocation3 + $0x90] sm:$0xff]  ;;  %v7115_v8 = vld [vmem:[#allocation3 + $0x180] sm:$0xff] }
 0x452   :  { %4569 = vmatprep.subr.bf16.mxu1 %v7081_v30  ;;  %v3739_v50 = vld [vmem:[#allocation3 + $0xa8] sm:$0xff]  ;;  %v3749_v57 = vld [vmem:[#allocation3 + $0xf8] sm:$0xff]  ;;  %v3748_v31 = vld [vmem:[#allocation3 + $0xf0] sm:$0xff] }
 0x453   :  { %3789 = vmatpush1.bf16.msra.mxu0 %v3724_v23  ;;  %v7117_v23 = vld [vmem:[#allocation3 + $0x198] sm:$0xff]  ;;  %v3778_v22 = vld [vmem:[#allocation3 + $0x1e0] sm:$0xff] }
 0x454   :  { %3790 = vmatprep.subr.bf16.mxu0 %v3727_v37  ;;  %v3738_v37 = vld [vmem:[#allocation3 + $0xa0] sm:$0xff]  ;;  %v3781_v52 = vld [vmem:[#allocation3 + $0x1f8] sm:$0xff] }
 0x455   :  { %4585 = vmatpush1.bf16.msra.mxu1 %v7085_v0 }
 0x456   :  { %4570 = vmatprep.subr.bf16.mxu1 %v7087_v39 }
 0x457   :  { %3791 = vmatpush1.bf16.msra.mxu0 %v3726_v40  ;;  %v3741_v40 = vld [vmem:[#allocation3 + $0xb8] sm:$0xff] }
 0x458   :  { %3792 = vmatprep.subr.bf16.mxu0 %v3729_v45  ;;  %v7121_v45 = vld [vmem:[#allocation3 + $0x190] sm:$0xff] }
 0x459   :  { %4586 = vmatpush1.bf16.msra.mxu1 %v7091_v33 }
 0x45a   :  { %4571 = vmatprep.subr.bf16.mxu1 %v7093_v18 }
 0x45b   :  { %3793 = vmatpush1.bf16.msra.mxu0 %v3728_v7  ;;  %v7123_v7 = vld [vmem:[#allocation3 + $0x1a8] sm:$0xff] }
 0x45c   :  { %3794 = vmatprep.subr.bf16.mxu0 %v3731_v59  ;;  %v3740_v59 = vld [vmem:[#allocation3 + $0xb0] sm:$0xff] }
 0x45d   :  { %4587 = vmatpush1.bf16.msra.mxu1 %v7097_v53 }
 0x45e   :  { %4572 = vmatprep.subr.bf16.mxu1 %v7099_v60 }
 0x45f   :  { %3795 = vmatpush1.bf16.msra.mxu0 %v3730_v26  ;;  %v3743_v26 = vld [vmem:[#allocation3 + $0xc8] sm:$0xff] }
 0x460   :  { %3796 = vmatprep.subr.bf16.mxu0 %v3733_v17  ;;  %v7127_v17 = vld [vmem:[#allocation3 + $0x1a0] sm:$0xff] }
 0x461   :  { %4588 = vmatpush1.bf16.msra.mxu1 %v7103_v6 }
 0x462   :  { %4573 = vmatprep.subr.bf16.mxu1 %v7105_v11 }
 0x463   :  { %3797 = vmatpush1.bf16.msra.mxu0 %v3732_v56  ;;  %v7129_v56 = vld [vmem:[#allocation3 + $0x1b8] sm:$0xff] }
 0x464   :  { %3798 = vmatprep.subr.bf16.mxu0 %v3735_v43  ;;  %v3742_v43 = vld [vmem:[#allocation3 + $0xc0] sm:$0xff] }
 0x465   :  { %4589 = vmatpush1.bf16.msra.mxu1 %v7109_v25 }
 0x466   :  { %4574 = vmatprep.subr.bf16.mxu1 %v7111_v62 }
 0x467   :  { %3799 = vmatpush1.bf16.msra.mxu0 %v3734_v16  ;;  %v3745_v16 = vld [vmem:[#allocation3 + $0xd8] sm:$0xff] }
 0x468   :  { %3800 = vmatprep.subr.bf16.mxu0 %v3737_v27  ;;  %v7133_v27 = vld [vmem:[#allocation3 + $0x1b0] sm:$0xff] }
 0x469   :  { %4590 = vmatpush1.bf16.msra.mxu1 %v7115_v8 }
 0x46a   :  { %4575 = vmatprep.subr.bf16.mxu1 %v7117_v23 }
 0x46b   :  { %3801 = vmatpush1.bf16.msra.mxu0 %v3736_v38  ;;  %v7135_v38 = vld [vmem:[#allocation3 + $0x1c8] sm:$0xff] }
 0x46c   :  { %3802 = vmatprep.subr.bf16.mxu0 %v3739_v50  ;;  %v3744_v50 = vld [vmem:[#allocation3 + $0xd0] sm:$0xff] }
 0x46d   :  { %4591 = vmatpush1.bf16.msra.mxu1 %v7121_v45 }
 0x46e   :  { %4576 = vmatprep.subr.bf16.mxu1 %v7123_v7 }
 0x46f   :  { %3803 = vmatpush1.bf16.msra.mxu0 %v3738_v37  ;;  %v3747_v37 = vld [vmem:[#allocation3 + $0xe8] sm:$0xff] }
 0x470   :  { %3804 = vmatprep.subr.bf16.mxu0 %v3741_v40  ;;  %v7139_v40 = vld [vmem:[#allocation3 + $0x1c0] sm:$0xff] }
 0x471   :  { %4592 = vmatpush1.bf16.msra.mxu1 %v7127_v17 }
 0x472   :  { %4577 = vmatprep.subr.bf16.mxu1 %v7129_v56 }
 0x473   :  { %3805 = vmatpush1.bf16.msra.mxu0 %v3740_v59  ;;  %v7141_v59 = vld [vmem:[#allocation3 + $0x1d8] sm:$0xff] }
 0x474   :  { %3806 = vmatprep.subr.bf16.mxu0 %v3743_v26  ;;  %v3746_v26 = vld [vmem:[#allocation3 + $0xe0] sm:$0xff] }
 0x475   :  { %4593 = vmatpush1.bf16.msra.mxu1 %v7133_v27 }
 0x476   :  { %4578 = vmatprep.subr.bf16.mxu1 %v7135_v38 }
 0x477   :  { %3807 = vmatpush1.bf16.msra.mxu0 %v3742_v43  ;;  %v3776_v43 = vld [vmem:[#allocation3 + $0x1d0] sm:$0xff] }
 0x478   :  { %3808 = vmatprep.subr.bf16.mxu0 %v3745_v16  ;;  %v3779_v16 = vld [vmem:[#allocation3 + $0x1e8] sm:$0xff] }
 0x479   :  { %4594 = vmatpush1.bf16.msra.mxu1 %v7139_v40 }
 0x47a   :  { %4579 = vmatprep.subr.bf16.mxu1 %v7141_v59 }
 0x47b   :  { %3809 = vmatpush1.bf16.msra.mxu0 %v3744_v50  ;;  %v3780_v50 = vld [vmem:[#allocation3 + $0x1f0] sm:$0xff] }
 0x47c   :  { %3810 = vmatprep.subr.bf16.mxu0 %v3747_v37 }
 0x47d   :  { %4595 = vmatpush1.bf16.msra.mxu1 %v3776_v43 }
 0x47e   :  { %4580 = vmatprep.subr.bf16.mxu1 %v3779_v16 }
 0x47f   :  { %3811 = vmatpush1.bf16.msra.mxu0 %v3746_v26 }
 0x480   :  { %3812 = vmatprep.subr.bf16.mxu0 %v3749_v57  ;;  %v7785_v57 = vld [vmem:[#allocation64_spill] sm:$0xff] }
 0x481   :  { %4596 = vmatpush1.bf16.msra.mxu1 %v3778_v22 }
 0x482   :  { %4581 = vmatprep.subr.bf16.mxu1 %v3781_v52 }
 0x483   :  { %3813 = vmatpush1.bf16.msra.mxu0 %v3748_v31  ;;  %v7784_v31 = vld [vmem:[#allocation66_spill] sm:$0xff] }
 0x484   :  { %3895 = vmatprep.subr.bf16.mxu0 %v7064_v51 }
 0x485   :  { %4597 = vmatpush1.bf16.msra.mxu1 %v3780_v50 }
 0x486   :  { %3815 = vmatmul.mubr.bf16.vlgmr.msra.gmra.mrb[64].mxu0 %v6910_v42 }
 0x487   :  { %3896 = vmatpush1.bf16.msra.mxu0 %v7067_v28  ;;  %3824 = vmatprep.mubr.bf16.mxu0 %v7009_v34 }
 0x488   :  { %3897 = vmatprep.subr.bf16.mxu0 %v7070_v1  ;;  %3968 = vmatmul.mubr.bf16.vlgmr.msra.gmra.mrb[64].mxu1 %v6972_v35 }
 0x489   :  { %3977 = vmatprep.mubr.bf16.mxu1 %v7057_v44 }
 0x48b   :  { %3898 = vmatpush1.bf16.msra.mxu0 %v7073_v10 }
 0x48c   :  { %3899 = vmatprep.subr.bf16.mxu0 %v7075_v13 }
 0x48e   :  { %3825 = vmatmul.mubr.bf16.gmra.mrb[68].mxu0 %v6912_v9 }
 0x48f   :  { %3900 = vmatpush1.bf16.msra.mxu0 %v7079_v55  ;;  %3834 = vmatprep.mubr.bf16.mxu0 %v7011_v61 }
 0x490   :  { %3901 = vmatprep.subr.bf16.mxu0 %v7081_v30  ;;  %3978 = vmatmul.mubr.bf16.gmra.mrb[68].mxu1 %v6974_v3 }
 0x491   :  { %3987 = vmatprep.mubr.bf16.mxu1 %v7059_v15 }
 0x493   :  { %3902 = vmatpush1.bf16.msra.mxu0 %v7085_v0 }
 0x494   :  { %3903 = vmatprep.subr.bf16.mxu0 %v7087_v39 }
 0x496   :  { %3835 = vmatmul.mubr.bf16.gmra.mrb[72].mxu0 %v6914_v46 }
 0x497   :  { %3904 = vmatpush1.bf16.msra.mxu0 %v7091_v33  ;;  %3844 = vmatprep.mubr.bf16.mxu0 %v7013_v19 }
 0x498   :  { %3905 = vmatprep.subr.bf16.mxu0 %v7093_v18  ;;  %3988 = vmatmul.mubr.bf16.gmra.mrb[72].mxu1 %v6976_v54 }
 0x499   :  { %3997 = vmatprep.mubr.bf16.mxu1 %v7061_v4 }
 0x49b   :  { %3906 = vmatpush1.bf16.msra.mxu0 %v7097_v53 }
 0x49c   :  { %3907 = vmatprep.subr.bf16.mxu0 %v7099_v60 }
 0x49e   :  { %3845 = vmatmul.mubr.bf16.gmra.mrb[76].mxu0 %v6916_v2 }
 0x49f   :  { %3908 = vmatpush1.bf16.msra.mxu0 %v7103_v6  ;;  %3854 = vmatprep.mubr.bf16.mxu0 %v7015_v5 }
 0x4a0   :  { %3909 = vmatprep.subr.bf16.mxu0 %v7105_v11  ;;  %3998 = vmatmul.mubr.bf16.gmra.mrb[76].mxu1 %v6978_v20 }
 0x4a3   :  { %3910 = vmatpush1.bf16.msra.mxu0 %v7109_v25 }
 0x4a4   :  { %3911 = vmatprep.subr.bf16.mxu0 %v7111_v62 }
 0x4a6   :  { %3855 = vmatmul.mubr.bf16.gmra.mrb[80].mxu0 %v6918_v29 }
 0x4a7   :  { %3912 = vmatpush1.bf16.msra.mxu0 %v7115_v8  ;;  %3864 = vmatprep.mubr.bf16.mxu0 %v7017_v36 }
 0x4a8   :  { %3913 = vmatprep.subr.bf16.mxu0 %v7117_v23 }
 0x4ab   :  { %3914 = vmatpush1.bf16.msra.mxu0 %v7121_v45 }
 0x4ac   :  { %3915 = vmatprep.subr.bf16.mxu0 %v7123_v7 }
 0x4ae   :  { %3865 = vmatmul.mubr.bf16.gmra.mrb[84].mxu0 %v6920_v21 }
 0x4af   :  { %3916 = vmatpush1.bf16.msra.mxu0 %v7127_v17  ;;  %3874 = vmatprep.mubr.bf16.mxu0 %v7019_v24 }
 0x4b0   :  { %3917 = vmatprep.subr.bf16.mxu0 %v7129_v56 }
 0x4b3   :  { %3918 = vmatpush1.bf16.msra.mxu0 %v7133_v27 }
 0x4b4   :  { %3919 = vmatprep.subr.bf16.mxu0 %v7135_v38 }
 0x4b6   :  { %3875 = vmatmul.mubr.bf16.gmra.mrb[88].mxu0 %v6922_v48 }
 0x4b7   :  { %3920 = vmatpush1.bf16.msra.mxu0 %v7139_v40  ;;  %3884 = vmatprep.mubr.bf16.mxu0 %v7021_v63 }
 0x4b8   :  { %3921 = vmatprep.subr.bf16.mxu0 %v7141_v59 }
 0x4bb   :  { %3922 = vmatpush1.bf16.msra.mxu0 %v3776_v43 }
 0x4bc   :  { %3923 = vmatprep.subr.bf16.mxu0 %v3779_v16 }
 0x4be   :  { %3885 = vmatmul.mubr.bf16.gmra.mrb[92].mxu0 %v6924_v32 }
 0x4bf   :  { %3924 = vmatpush1.bf16.msra.mxu0 %v3778_v22  ;;  %3927 = vmatprep.mubr.bf16.mxu0 %v7049_v49 }
 0x4c0   :  { %3925 = vmatprep.subr.bf16.mxu0 %v3781_v52 }
 0x4c3   :  { %3926 = vmatpush1.bf16.msra.mxu0 %v3780_v50 }
 0x4c6   :  { %3928 = vmatmul.mubr.bf16.vlgmr.msra.gmra.mrb[64].mxu0 %v6964_v12 }
 0x4c7   :  { %3937 = vmatprep.mubr.bf16.mxu0 %v7051_v58 }
 0x4ce   :  { %3938 = vmatmul.mubr.bf16.gmra.mrb[68].mxu0 %v6966_v41 }
 0x4cf   :  { %3947 = vmatprep.mubr.bf16.mxu0 %v7053_v47 }
 0x4d6   :  { %3948 = vmatmul.mubr.bf16.gmra.mrb[72].mxu0 %v6968_v14 }
 0x4d7   :  { %3957 = vmatprep.mubr.bf16.mxu0 %v7784_v31 }
 0x4de   :  { %3958 = vmatmul.mubr.bf16.gmra.mrb[76].mxu0 %v7785_v57 }
 0x55b   :  { %v3969_v42 = vpop.f32.mrb[64].mxu1 }
 0x55c   :  { %v3971_v9 = vpop.f32.mrb[65].mxu1 }
 0x55d   :  { %v3973_v46 = vpop.f32.mrb[66].mxu1 }
 0x55e   :  { %v3975_v2 = vpop.f32.mrb[67].mxu1 }
 0x563   :  { %v3979_v29 = vpop.f32.mrb[68].mxu1 }
 0x564   :  { %v3981_v21 = vpop.f32.mrb[69].mxu1 }
 0x565   :  { %v3983_v48 = vpop.f32.mrb[70].mxu1 }
 0x566   :  { %v3985_v32 = vpop.f32.mrb[71].mxu1 }
 0x56b   :  { %v3989_v12 = vpop.f32.mrb[72].mxu1 }
 0x56c   :  { %v3991_v22 = vpop.f32.mrb[73].mxu1 }
 0x56d   :  { %v3993_v35 = vpop.f32.mrb[74].mxu1 }
 0x56e   :  { %v3995_v41 = vpop.f32.mrb[75].mxu1 }
 0x573   :  { %v3999_v3 = vpop.f32.mrb[76].mxu1 }
 0x574   :  { %v4001_v54 = vpop.f32.mrb[77].mxu1 }
 0x575   :  { %v4003_v20 = vpop.f32.mrb[78].mxu1 }
 0x576   :  { %v4005_v34 = vpop.f32.mrb[79].mxu1 }
 0x579   :  { %v3856_v14 = vpop.f32.mrb[80].mxu0 }
 0x57a   :  { %v7202_v61 = vadd.f32 %v3969_v42, %v3856_v14  ;;  %v3858_v19 = vpop.f32.mrb[81].mxu0 }
 0x57b   :  { %v7204_v5 = vadd.f32 %v3971_v9, %v3858_v19  ;;  %v3860_v36 = vpop.f32.mrb[82].mxu0 }
 0x57c   :  { %v7206_v24 = vadd.f32 %v3973_v46, %v3860_v36  ;;  %v3862_v63 = vpop.f32.mrb[83].mxu0 }
 0x57d   :  { %v7208_v49 = vadd.f32 %v3975_v2, %v3862_v63 }
 0x581   :  { %v3866_v58 = vpop.f32.mrb[84].mxu0 }
 0x582   :  { %v7210_v47 = vadd.f32 %v3979_v29, %v3866_v58  ;;  %v3868_v52 = vpop.f32.mrb[85].mxu0 }
 0x583   :  { %v7212_v44 = vadd.f32 %v3981_v21, %v3868_v52  ;;  %v3870_v15 = vpop.f32.mrb[86].mxu0 }
 0x584   :  { %v7214_v4 = vadd.f32 %v3983_v48, %v3870_v15  ;;  %v3872_v51 = vpop.f32.mrb[87].mxu0 }
 0x585   :  { %v7216_v28 = vadd.f32 %v3985_v32, %v3872_v51 }
 0x589   :  { %v3876_v1 = vpop.f32.mrb[88].mxu0 }
 0x58a   :  { %v7218_v10 = vadd.f32 %v3989_v12, %v3876_v1  ;;  %v3878_v13 = vpop.f32.mrb[89].mxu0 }
 0x58b   :  { %v7220_v55 = vadd.f32 %v3991_v22, %v3878_v13  ;;  %v3880_v30 = vpop.f32.mrb[90].mxu0 }
 0x58c   :  { %v7222_v0 = vadd.f32 %v3993_v35, %v3880_v30  ;;  %v3882_v39 = vpop.f32.mrb[91].mxu0 }
 0x58d   :  { %v7224_v33 = vadd.f32 %v3995_v41, %v3882_v39 }
 0x591   :  { %v3886_v18 = vpop.f32.mrb[92].mxu0 }
 0x592   :  { %v7226_v53 = vadd.f32 %v3999_v3, %v3886_v18  ;;  %v3888_v60 = vpop.f32.mrb[93].mxu0 }
 0x593   :  { %v7228_v6 = vadd.f32 %v4001_v54, %v3888_v60  ;;  %v3890_v11 = vpop.f32.mrb[94].mxu0 }
 0x594   :  { %v7230_v25 = vadd.f32 %v4003_v20, %v3890_v11  ;;  %v3892_v62 = vpop.f32.mrb[95].mxu0 }
 0x595   :  { %v7232_v8 = vadd.f32 %v4005_v34, %v3892_v62 }
 0x599   :  { %v7234_v23 = vpop.f32.mrb[64].mxu0 }
 0x59a   :  { %v7236_v45 = vpop.f32.mrb[65].mxu0  ;;  %v4052_v17 = vmul.f32 %v7234_v23, %v7234_v23 }
 0x59b   :  { %v7238_v7 = vpop.f32.mrb[66].mxu0  ;;  %v4053_v37 = vmul.f32 %v7236_v45, %v7236_v45 }
 0x59c   :  { %v4008_v56 = vadd.f32 %v7238_v7, %v7234_v23  ;;  %v4054_v27 = vmul.f32 %v7238_v7, %v7238_v7  ;;  %v7246_v38 = vpop.f32.mrb[67].mxu0 }
 0x59d   :  { %v4029_v40 = vadd.f32 %v7246_v38, %v7236_v45  ;;  %v4055_v59 = vmul.f32 %v7246_v38, %v7246_v38 }
 0x59e   :  { %v4084_v26 = vadd.f32 %v4054_v27, %v4052_v17 }
 0x59f   :  { %v4105_v43 = vadd.f32 %v4055_v59, %v4053_v37 }
 0x5a1   :  { %v7254_v16 = vpop.f32.mrb[68].mxu0 }
 0x5a2   :  { %v4009_v50 = vadd.f32 %v4008_v56, %v7254_v16  ;;  %v4056_v31 = vmul.f32 %v7254_v16, %v7254_v16  ;;  %v7259_v57 = vpop.f32.mrb[69].mxu0 }
 0x5a3   :  { %v4030_v42 = vadd.f32 %v4029_v40, %v7259_v57  ;;  %v4057_v9 = vmul.f32 %v7259_v57, %v7259_v57  ;;  %v7264_v46 = vpop.f32.mrb[70].mxu0 }
 0x5a4   :  { %v4085_v2 = vadd.f32 %v4084_v26, %v4056_v31  ;;  %v4010_v29 = vadd.f32 %v4009_v50, %v7264_v46  ;;  %v4058_v21 = vmul.f32 %v7264_v46, %v7264_v46  ;;  %v7269_v48 = vpop.f32.mrb[71].mxu0 }
 0x5a5   :  { %v4106_v32 = vadd.f32 %v4105_v43, %v4057_v9  ;;  %v4031_v12 = vadd.f32 %v4030_v42, %v7269_v48  ;;  %v4059_v22 = vmul.f32 %v7269_v48, %v7269_v48  ;;  %v4068_v42 = vmul.f32 %v7202_v61, %v7202_v61 }
 0x5a6   :  { %v4086_v35 = vadd.f32 %v4085_v2, %v4058_v21 }
 0x5a7   :  { %v4107_v41 = vadd.f32 %v4106_v32, %v4059_v22 }
 0x5a9   :  { %v7274_v3 = vpop.f32.mrb[72].mxu0 }
 0x5aa   :  { %v4011_v54 = vadd.f32 %v4010_v29, %v7274_v3  ;;  %v4060_v20 = vmul.f32 %v7274_v3, %v7274_v3  ;;  %v7279_v14 = vpop.f32.mrb[73].mxu0  ;;  %v4069_v29 = vmul.f32 %v7204_v5, %v7204_v5 }
 0x5ab   :  { %v4032_v34 = vadd.f32 %v4031_v12, %v7279_v14  ;;  %v4061_v19 = vmul.f32 %v7279_v14, %v7279_v14  ;;  %v7284_v36 = vpop.f32.mrb[74].mxu0  ;;  %v4070_v12 = vmul.f32 %v7206_v24, %v7206_v24 }
 0x5ac   :  { %v4087_v63 = vadd.f32 %v4086_v35, %v4060_v20  ;;  %v4012_v58 = vadd.f32 %v4011_v54, %v7284_v36  ;;  %v4062_v52 = vmul.f32 %v7284_v36, %v7284_v36  ;;  %v7289_v15 = vpop.f32.mrb[75].mxu0 }
 0x5ad   :  { %v4108_v51 = vadd.f32 %v4107_v41, %v4061_v19  ;;  %v4033_v1 = vadd.f32 %v4032_v34, %v7289_v15  ;;  %v4063_v13 = vmul.f32 %v7289_v15, %v7289_v15  ;;  %v4071_v41 = vmul.f32 %v7208_v49, %v7208_v49 }
 0x5ae   :  { %v4088_v30 = vadd.f32 %v4087_v63, %v4062_v52  ;;  %v4072_v34 = vmul.f32 %v7210_v47, %v7210_v47 }
 0x5af   :  { %v4109_v39 = vadd.f32 %v4108_v51, %v4063_v13 }
 0x5b1   :  { %v7294_v18 = vpop.f32.mrb[76].mxu0 }
 0x5b2   :  { %v4013_v60 = vadd.f32 %v4012_v58, %v7294_v18  ;;  %v4064_v11 = vmul.f32 %v7294_v18, %v7294_v18  ;;  %v7299_v62 = vpop.f32.mrb[77].mxu0  ;;  %v4073_v58 = vmul.f32 %v7212_v44, %v7212_v44 }
 0x5b3   :  { %v4034_v17 = vadd.f32 %v4033_v1, %v7299_v62  ;;  %v4065_v56 = vmul.f32 %v7299_v62, %v7299_v62  ;;  %v7304_v27 = vpop.f32.mrb[78].mxu0  ;;  %v4074_v1 = vmul.f32 %v7214_v4, %v7214_v4 }
 0x5b4   :  { %v4089_v37 = vadd.f32 %v4088_v30, %v4064_v11  ;;  %v4014_v40 = vadd.f32 %v4013_v60, %v7304_v27  ;;  %v4066_v59 = vmul.f32 %v7304_v27, %v7304_v27  ;;  %v7309_v26 = vpop.f32.mrb[79].mxu0 }
 0x5b5   :  { %v4110_v43 = vadd.f32 %v4109_v39, %v4065_v56  ;;  %v4035_v50 = vadd.f32 %v4034_v17, %v7309_v26  ;;  %v4067_v31 = vmul.f32 %v7309_v26, %v7309_v26  ;;  %v4075_v39 = vmul.f32 %v7216_v28, %v7216_v28 }
 0x5b6   :  { %v4015_v9 = vadd.f32 %v4014_v40, %v7202_v61  ;;  %v4090_v2 = vadd.f32 %v4089_v37, %v4066_v59  ;;  %v4076_v17 = vmul.f32 %v7218_v10, %v7218_v10  ;;  %v4077_v40 = vmul.f32 %v7220_v55, %v7220_v55 }
 0x5b7   :  { %v4036_v21 = vadd.f32 %v4035_v50, %v7204_v5  ;;  %v4111_v32 = vadd.f32 %v4110_v43, %v4067_v31  ;;  %v4078_v50 = vmul.f32 %v7222_v0, %v7222_v0 }
 0x5b8   :  { %v4016_v22 = vadd.f32 %v4015_v9, %v7206_v24  ;;  %v4091_v35 = vadd.f32 %v4090_v2, %v4068_v42  ;;  %v4079_v9 = vmul.f32 %v7224_v33, %v7224_v33 }
 0x5b9   :  { %v4037_v54 = vadd.f32 %v4036_v21, %v7208_v49  ;;  %v4112_v20 = vadd.f32 %v4111_v32, %v4069_v29  ;;  %v4080_v21 = vmul.f32 %v7226_v53, %v7226_v53 }
 0x5ba   :  { %v4017_v19 = vadd.f32 %v4016_v22, %v7210_v47  ;;  %v4092_v63 = vadd.f32 %v4091_v35, %v4070_v12  ;;  %v4081_v22 = vmul.f32 %v7228_v6, %v7228_v6 }
 0x5bb   :  { %v4038_v52 = vadd.f32 %v4037_v54, %v7212_v44  ;;  %v4113_v51 = vadd.f32 %v4112_v20, %v4071_v41  ;;  %v4082_v54 = vmul.f32 %v7230_v25, %v7230_v25 }
 0x5bc   :  { %v4018_v13 = vadd.f32 %v4017_v19, %v7214_v4  ;;  %v4093_v30 = vadd.f32 %v4092_v63, %v4072_v34  ;;  %v4083_v19 = vmul.f32 %v7232_v8, %v7232_v8 }
 0x5bd   :  { %v4039_v60 = vadd.f32 %v4038_v52, %v7216_v28  ;;  %v4114_v11 = vadd.f32 %v4113_v51, %v4073_v58 }
 0x5be   :  { %v4019_v56 = vadd.f32 %v4018_v13, %v7218_v10  ;;  %v4094_v37 = vadd.f32 %v4093_v30, %v4074_v1 }
 0x5bf   :  { %v4040_v59 = vadd.f32 %v4039_v60, %v7220_v55  ;;  %v4115_v43 = vadd.f32 %v4114_v11, %v4075_v39 }
 0x5c0   :  { %v4020_v31 = vadd.f32 %v4019_v56, %v7222_v0  ;;  %v4095_v42 = vadd.f32 %v4094_v37, %v4076_v17 }
 0x5c1   :  { %v4041_v2 = vadd.f32 %v4040_v59, %v7224_v33  ;;  %v4116_v29 = vadd.f32 %v4115_v43, %v4077_v40 }
 0x5c2   :  { %v4021_v32 = vadd.f32 %v4020_v31, %v7226_v53  ;;  %v4096_v12 = vadd.f32 %v4095_v42, %v4078_v50 }
 0x5c3   :  { %v4042_v35 = vadd.f32 %v4041_v2, %v7228_v6  ;;  %v4117_v41 = vadd.f32 %v4116_v29, %v4079_v9 }
 0x5c4   :  { %v4022_v20 = vadd.f32 %v4021_v32, %v7230_v25  ;;  %v4097_v34 = vadd.f32 %v4096_v12, %v4080_v21 }
 0x5c5   :  { %v4043_v63 = vadd.f32 %v4042_v35, %v7232_v8  ;;  %v4118_v58 = vadd.f32 %v4117_v41, %v4081_v22 }
 0x5c6   :  { %v4023_v52 = vrot.slane %v4022_v20, 4  ;;  %v4098_v51 = vadd.f32 %v4097_v34, %v4082_v54 }
 0x5c7   :  { %v4044_v1 = vrot.slane %v4043_v63, 4  ;;  %v4119_v13 = vadd.f32 %v4118_v58, %v4083_v19 }
 0x5c8   :  { %v4024_v30 = vadd.f32 %v4023_v52, %v4022_v20  ;;  %v4099_v39 = vrot.slane %v4098_v51, 4 }
 0x5c9   :  { %v4045_v60 = vadd.f32 %v4044_v1, %v4043_v63  ;;  %v4120_v11 = vrot.slane %v4119_v13, 4 }
 0x5ca   :  { %v4025_v17 = vrot.slane %v4024_v30, 2  ;;  %v4100_v56 = vadd.f32 %v4099_v39, %v4098_v51 }
 0x5cb   :  { %v4046_v37 = vrot.slane %v4045_v60, 2  ;;  %v4121_v40 = vadd.f32 %v4120_v11, %v4119_v13 }
 0x5cc   :  { %v4026_v59 = vadd.f32 %v4025_v17, %v4024_v30  ;;  %v4101_v43 = vrot.slane %v4100_v56, 2 }
 0x5cd   :  { %v4047_v50 = vadd.f32 %v4046_v37, %v4045_v60  ;;  %v4122_v31 = vrot.slane %v4121_v40, 2  ;;  %v7786_v60 = vld [vmem:[#allocation62_spill] sm:$0xff]  ;;  %v7787_v37 = vld [vmem:[#allocation63_spill] sm:$0xff] }
 0x5ce   :  { %v4027_v42 = vrot.slane %v4026_v59, 1  ;;  %v4102_v9 = vadd.f32 %v4101_v43, %v4100_v56  ;;  %v4152_v11 = vsub.s32 4, %v7786_v60 }
 0x5cf   :  { %v4048_v2 = vrot.slane %v4047_v50, 1  ;;  %v4123_v29 = vadd.f32 %v4122_v31, %v4121_v40 }
 0x5d0   :  { %v4028_v21 = vadd.f32 %v4027_v42, %v4026_v59  ;;  %v4103_v32 = vrot.slane %v4102_v9, 1  ;;  %v7788_v59 = vld [vmem:[#allocation65_spill] sm:$0xff]  ;;  %v4192_v42 = vsub.s32 5, %v7786_v60 }
 0x5d1   :  { %v4049_v12 = vadd.f32 %v4048_v2, %v4047_v50  ;;  %v4124_v22 = vrot.slane %v4123_v29, 1 }
 0x5d2   :  { %v4050_v35 = vmul.f32 0.0078125, %v4028_v21  ;;  %v4104_v41 = vadd.f32 %v4103_v32, %v4102_v9 }
 0x5d3   :  { %v4051_v54 = vmul.f32 0.0078125, %v4049_v12  ;;  %v4125_v20 = vadd.f32 %v4124_v22, %v4123_v29 }
 0x5d4   :  { %v4126_v34 = vmul.f32 0.0078125, %v4104_v41  ;;  %v4128_v19 = vmul.f32 %v4050_v35, %v4050_v35 }
 0x5d5   :  { %v4127_v63 = vmul.f32 0.0078125, %v4125_v20  ;;  %v4129_v58 = vmul.f32 %v4051_v54, %v4051_v54 }
 0x5d6   :  { %v4130_v52 = vsub.f32 %v4126_v34, %v4128_v19 }
 0x5d7   :  { %v4131_v51 = vsub.f32 %v4127_v63, %v4129_v58 }
 0x5d8   :  { %v4132_v1 = vmax.f32 %v4130_v52, 0.0 }
 0x5d9   :  { %v4133_v13 = vmax.f32 %v4131_v51, 0.0 }
 0x5da   :  { %v4134_v30 = vadd.f32 1e-05, %v4132_v1 }
 0x5db   :  { %v4135_v39 = vadd.f32 1e-05, %v4133_v13 }
 0x5dc   :  { %4723 = vrsqrt.f32 %v4134_v30 }
 0x5dd   :  { %4725 = vrsqrt.f32 %v4135_v39 }
 0x5e6   :  { %v4724_v17 = vpop.eup %4723 }
 0x5e7   :  { %v4726_v56 = vpop.eup %4725  ;;  %v4138_v40 = vmul.f32 %v4724_v17, %v7787_v37 }
 0x5e8   :  { %v4139_v43 = vmul.f32 %v4726_v56, %v7788_v59 }
 0x5e9   :  { %v4140_v50 = vmul.f32 %v4138_v40, %v4050_v35  ;;  %v4153_v31 = vrot.slane %v4138_v40, %v4152_v11 }
 0x5ea   :  { %v7366_v9 = vmul.f32 %v4139_v43, %v4051_v54  ;;  %v7368_v2 = vrot.slane %v4139_v43, %v4152_v11 }
 0x5eb   :  { %v4144_v29 = vrot.slane %v4140_v50, 7  ;;  %v4158_v21 = vmul.f32 %v4153_v31, %v7234_v23  ;;  %v4160_v32 = vmul.f32 %v4153_v31, %v7238_v7  ;;  %v4162_v12 = vmul.f32 %v4153_v31, %v7254_v16 }
 0x5ec   :  { %v4164_v22 = vmul.f32 %v4153_v31, %v7264_v46  ;;  %v4166_v41 = vmul.f32 %v4153_v31, %v7274_v3  ;;  %v4168_v35 = vmul.f32 %v4153_v31, %v7284_v36  ;;  %v4170_v20 = vmul.f32 %v4153_v31, %v7294_v18 }
 0x5ed   :  { %v4148_v54 = vsub.f32 %v7787_v37, %v4144_v29  ;;  %v4172_v34 = vmul.f32 %v4153_v31, %v7304_v27  ;;  %v4174_v19 = vmul.f32 %v4153_v31, %v7202_v61  ;;  %v4176_v23 = vmul.f32 %v4153_v31, %v7206_v24 }
 0x5ee   :  { %v4178_v7 = vmul.f32 %v4153_v31, %v7210_v47  ;;  %v4180_v16 = vmul.f32 %v4153_v31, %v7214_v4  ;;  %v4182_v46 = vmul.f32 %v4153_v31, %v7218_v10  ;;  %v4184_v3 = vmul.f32 %v4153_v31, %v7222_v0 }
 0x5ef   :  { %v4186_v36 = vmul.f32 %v4153_v31, %v7226_v53  ;;  %v4188_v18 = vmul.f32 %v4153_v31, %v7230_v25  ;;  %v4193_v63 = vrot.slane %v4148_v54, %v4192_v42  ;;  %v4145_v27 = vrot.slane %v7366_v9, 7 }
 0x5f0   :  { %v4159_v61 = vmul.f32 %v7368_v2, %v7236_v45  ;;  %v4161_v24 = vmul.f32 %v7368_v2, %v7246_v38  ;;  %v4163_v47 = vmul.f32 %v7368_v2, %v7259_v57  ;;  %v4165_v4 = vmul.f32 %v7368_v2, %v7269_v48 }
 0x5f1   :  { %v4198_v10 = vadd.f32 %v4193_v63, %v4158_v21  ;;  %v4200_v0 = vadd.f32 %v4193_v63, %v4160_v32  ;;  %v4202_v53 = vadd.f32 %v4193_v63, %v4162_v12  ;;  %v4204_v25 = vadd.f32 %v4193_v63, %v4164_v22 }
 0x5f2   :  { %v4206_v58 = vadd.f32 %v4193_v63, %v4166_v41  ;;  %v4208_v52 = vadd.f32 %v4193_v63, %v4168_v35  ;;  %v4210_v51 = vadd.f32 %v4193_v63, %v4170_v20  ;;  %v4212_v1 = vadd.f32 %v4193_v63, %v4172_v34 }
 0x5f3   :  { %v4214_v13 = vadd.f32 %v4193_v63, %v4174_v19  ;;  %v4216_v30 = vadd.f32 %v4193_v63, %v4176_v23  ;;  %v4218_v45 = vadd.f32 %v4193_v63, %v4178_v7  ;;  %v4220_v39 = vadd.f32 %v4193_v63, %v4180_v16 }
 0x5f4   :  { %v4222_v11 = vadd.f32 %v4193_v63, %v4182_v46  ;;  %v4224_v38 = vadd.f32 %v4193_v63, %v4184_v3  ;;  %v4226_v17 = vadd.f32 %v4193_v63, %v4186_v36  ;;  %v4228_v56 = vadd.f32 %v4193_v63, %v4188_v18 }
 0x5f5   :  { %v4230_v57 = vmax.f32 %v4198_v10, 0.0  ;;  %v4232_v40 = vmax.f32 %v4200_v0, 0.0  ;;  %v4234_v43 = vmax.f32 %v4202_v53, 0.0  ;;  %v4236_v48 = vmax.f32 %v4204_v25, 0.0 }
 0x5f6   :  { %v4238_v50 = vmax.f32 %v4206_v58, 0.0  ;;  %v4240_v31 = vmax.f32 %v4208_v52, 0.0  ;;  %v4242_v9 = vmax.f32 %v4210_v51, 0.0  ;;  %v4244_v29 = vmax.f32 %v4212_v1, 0.0 }
 0x5f7   :  { %v4246_v21 = vmax.f32 %v4214_v13, 0.0  ;;  %v4248_v32 = vmax.f32 %v4216_v30, 0.0  ;;  %v4250_v12 = vmax.f32 %v4218_v45, 0.0  ;;  %v4252_v22 = vmax.f32 %v4220_v39, 0.0 }
 0x5f8   :  { %v4254_v41 = vmax.f32 %v4222_v11, 0.0  ;;  %v4256_v35 = vmax.f32 %v4224_v38, 0.0  ;;  %v4258_v20 = vmax.f32 %v4226_v17, 0.0  ;;  %v4260_v54 = vmax.f32 %v4228_v56, 0.0 }
 0x5f9   :  { %v7398_v34 = vpack.c.bf16 %v4232_v40, %v4230_v57  ;;  %v7400_v19 = vpack.c.bf16 %v4236_v48, %v4234_v43  ;;  %v7402_v23 = vpack.c.bf16 %v4240_v31, %v4238_v50  ;;  %v7404_v7 = vpack.c.bf16 %v4244_v29, %v4242_v9 }
 0x5fa   :  { %v7406_v16 = vpack.c.bf16 %v4248_v32, %v4246_v21  ;;  %v7408_v46 = vpack.c.bf16 %v4252_v22, %v4250_v12  ;;  %v7410_v3 = vpack.c.bf16 %v4256_v35, %v4254_v41  ;;  %v7412_v36 = vpack.c.bf16 %v4260_v54, %v4258_v20 }
 0x5fb   :  { %v4149_v18 = vsub.f32 %v7788_v59, %v4145_v27  ;;  %v4167_v63 = vmul.f32 %v7368_v2, %v7279_v14  ;;  %v4169_v10 = vmul.f32 %v7368_v2, %v7289_v15  ;;  %v4171_v0 = vmul.f32 %v7368_v2, %v7299_v62 }
 0x5fc   :  { %v4173_v53 = vmul.f32 %v7368_v2, %v7309_v26  ;;  %v4175_v25 = vmul.f32 %v7368_v2, %v7204_v5  ;;  %v4177_v58 = vmul.f32 %v7368_v2, %v7208_v49  ;;  %v4179_v59 = vmul.f32 %v7368_v2, %v7212_v44 }
 0x5fd   :  { %v4181_v14 = vmul.f32 %v7368_v2, %v7216_v28  ;;  %v4183_v15 = vmul.f32 %v7368_v2, %v7220_v55  ;;  %v4185_v62 = vmul.f32 %v7368_v2, %v7224_v33  ;;  %v4187_v26 = vmul.f32 %v7368_v2, %v7228_v6 }
 0x5fe   :  { %v4189_v5 = vmul.f32 %v7368_v2, %v7232_v8  ;;  %v4197_v49 = vrot.slane %v4149_v18, %v4192_v42  ;;  %v7789_v18 = vld [vmem:[#allocation20_spill] sm:$0xff] }
 0x5ff   :  { %4502 = vmatprep.subr.bf16.mxu1 %v7789_v18 }
 0x600   :  { %v4199_v27 = vadd.f32 %v4197_v49, %v4159_v61  ;;  %v4201_v44 = vadd.f32 %v4197_v49, %v4161_v24  ;;  %v4203_v52 = vadd.f32 %v4197_v49, %v4163_v47  ;;  %v4205_v51 = vadd.f32 %v4197_v49, %v4165_v4 }
 0x601   :  { %v4207_v28 = vadd.f32 %v4197_v49, %v4167_v63  ;;  %v4209_v1 = vadd.f32 %v4197_v49, %v4169_v10  ;;  %v4211_v13 = vadd.f32 %v4197_v49, %v4171_v0  ;;  %v4213_v55 = vadd.f32 %v4197_v49, %v4173_v53 }
 0x602   :  { %v4215_v30 = vadd.f32 %v4197_v49, %v4175_v25  ;;  %v4217_v45 = vadd.f32 %v4197_v49, %v4177_v58  ;;  %v4219_v33 = vadd.f32 %v4197_v49, %v4179_v59  ;;  %v4221_v39 = vadd.f32 %v4197_v49, %v4181_v14 }
 0x603   :  { %v4223_v11 = vadd.f32 %v4197_v49, %v4183_v15  ;;  %v4225_v6 = vadd.f32 %v4197_v49, %v4185_v62  ;;  %v4227_v38 = vadd.f32 %v4197_v49, %v4187_v26  ;;  %v4229_v17 = vadd.f32 %v4197_v49, %v4189_v5 }
 0x604   :  { %v4231_v8 = vmax.f32 %v4199_v27, 0.0  ;;  %v4233_v2 = vmax.f32 %v4201_v44, 0.0  ;;  %v4235_v56 = vmax.f32 %v4203_v52, 0.0  ;;  %v4237_v42 = vmax.f32 %v4205_v51, 0.0 }
 0x605   :  { %v4239_v61 = vmax.f32 %v4207_v28, 0.0  ;;  %v4241_v24 = vmax.f32 %v4209_v1, 0.0  ;;  %v4243_v47 = vmax.f32 %v4211_v13, 0.0  ;;  %v4245_v4 = vmax.f32 %v4213_v55, 0.0 }
 0x606   :  { %v4247_v57 = vmax.f32 %v4215_v30, 0.0  ;;  %v4249_v40 = vmax.f32 %v4217_v45, 0.0  ;;  %v4251_v43 = vmax.f32 %v4219_v33, 0.0  ;;  %v4253_v48 = vmax.f32 %v4221_v39, 0.0 }
 0x607   :  { %v4255_v50 = vmax.f32 %v4223_v11, 0.0  ;;  %v4257_v31 = vmax.f32 %v4225_v6, 0.0  ;;  %v4259_v9 = vmax.f32 %v4227_v38, 0.0  ;;  %v4261_v29 = vmax.f32 %v4229_v17, 0.0 }
 0x608   :  { %v4263_v21 = vpack.c.bf16 %v4233_v2, %v4231_v8  ;;  %v4265_v32 = vpack.c.bf16 %v4237_v42, %v4235_v56  ;;  %v4267_v12 = vpack.c.bf16 %v4241_v24, %v4239_v61  ;;  %v4269_v22 = vpack.c.bf16 %v4245_v4, %v4243_v47 }
 0x609   :  { %v4271_v41 = vpack.c.bf16 %v4249_v40, %v4247_v57  ;;  %v4273_v35 = vpack.c.bf16 %v4253_v48, %v4251_v43  ;;  %v4275_v20 = vpack.c.bf16 %v4257_v31, %v4255_v50  ;;  %v4277_v54 = vpack.c.bf16 %v4261_v29, %v4259_v9 }
 0x60a   :  { %4334 = vmatprep.mubr.bf16.mxu1 %v4263_v21 }
 0x60b   :  { %4731 = dma.done.wait [#allocation5 + $0x2], 2048 }
 0x60c   :  { %4732 = vsyncadd [#allocation5 + $0x2], 4294965248  ;;  %v7790_v63 = vld [vmem:[#allocation12_spill] sm:$0xff]  ;;  %v7791_v10 = vld [vmem:[#allocation21_spill] sm:$0xff] }
 0x60d   :  { %4503 = vmatpush3.bf16.msra.mxu1 %v7790_v63  ;;  %v7792_v0 = vld [vmem:[#allocation13_spill] sm:$0xff]  ;;  %v7793_v53 = vld [vmem:[#allocation22_spill] sm:$0xff]  ;;  %v7795_v58 = vld [vmem:[#allocation23_spill] sm:$0xff] }
 0x60e   :  { %4504 = vmatprep.subr.bf16.mxu1 %v7791_v10  ;;  %v7794_v25 = vld [vmem:[#allocation14_spill] sm:$0xff]  ;;  %v7796_v59 = vld [vmem:[#allocation15_spill] sm:$0xff]  ;;  %v7797_v14 = vld [vmem:[#allocation24_spill] sm:$0xff] }
 0x60f   :  { %v7798_v15 = vld [vmem:[#allocation16_spill] sm:$0xff]  ;;  %v7799_v62 = vld [vmem:[#allocation25_spill] sm:$0xff]  ;;  %v7801_v5 = vld [vmem:[#allocation26_spill] sm:$0xff] }
 0x610   :  { %v7800_v26 = vld [vmem:[#allocation17_spill] sm:$0xff]  ;;  %v7802_v49 = vld [vmem:[#allocation18_spill] sm:$0xff]  ;;  %v7803_v27 = vld [vmem:[#allocation27_spill] sm:$0xff] }
 0x611   :  { %4505 = vmatpush3.bf16.msra.mxu1 %v7792_v0  ;;  %v7804_v44 = vld [vmem:[#allocation19_spill] sm:$0xff] }
 0x612   :  { %4506 = vmatprep.subr.bf16.mxu1 %v7793_v53 }
 0x615   :  { %4507 = vmatpush3.bf16.msra.mxu1 %v7794_v25 }
 0x616   :  { %4508 = vmatprep.subr.bf16.mxu1 %v7795_v58 }
 0x619   :  { %4509 = vmatpush3.bf16.msra.mxu1 %v7796_v59 }
 0x61a   :  { %4510 = vmatprep.subr.bf16.mxu1 %v7797_v14 }
 0x61d   :  { %4511 = vmatpush3.bf16.msra.mxu1 %v7798_v15 }
 0x61e   :  { %4512 = vmatprep.subr.bf16.mxu1 %v7799_v62 }
 0x621   :  { %4513 = vmatpush3.bf16.msra.mxu1 %v7800_v26 }
 0x622   :  { %4514 = vmatprep.subr.bf16.mxu1 %v7801_v5 }
 0x625   :  { %4515 = vmatpush3.bf16.msra.mxu1 %v7802_v49 }
 0x626   :  { %4516 = vmatprep.subr.bf16.mxu1 %v7803_v27 }
 0x629   :  { %4517 = vmatpush3.bf16.msra.mxu1 %v7804_v44 }
 0x62c   :  { %4335 = vmatmul.mubr.bf16.vlgmr.msra.gmra.mrb[80].mxu1 %v7398_v34  ;;  %v4300_v34 = vsub.s32 6, %v7786_v60 }
 0x62d   :  { %4342 = vmatprep.mubr.bf16.mxu1 %v4265_v32 }
 0x634   :  { %4343 = vmatmul.mubr.bf16.gmra.mrb[84].mxu1 %v7400_v19 }
 0x635   :  { %4350 = vmatprep.mubr.bf16.mxu1 %v4267_v12 }
 0x63c   :  { %4351 = vmatmul.mubr.bf16.gmra.mrb[88].mxu1 %v7402_v23  ;;  %v7467_v23 = vrot.slane %v7787_v37, %v4300_v34 }
 0x63d   :  { %4358 = vmatprep.mubr.bf16.mxu1 %v4269_v22 }
 0x644   :  { %4359 = vmatmul.mubr.bf16.gmra.mrb[92].mxu1 %v7404_v7 }
 0x645   :  { %4366 = vmatprep.mubr.bf16.mxu1 %v4271_v41 }
 0x64c   :  { %4367 = vmatmul.mubr.bf16.gmra.mrb[96].mxu1 %v7406_v16 }
 0x64d   :  { %4374 = vmatprep.mubr.bf16.mxu1 %v4273_v35 }
 0x654   :  { %4375 = vmatmul.mubr.bf16.gmra.mrb[100].mxu1 %v7408_v46 }
 0x655   :  { %4382 = vmatprep.mubr.bf16.mxu1 %v4275_v20 }
 0x65c   :  { %4383 = vmatmul.mubr.bf16.gmra.mrb[104].mxu1 %v7410_v3 }
 0x65d   :  { %4390 = vmatprep.mubr.bf16.mxu1 %v4277_v54 }
 0x664   :  { %4391 = vmatmul.mubr.bf16.gmra.mrb[108].mxu1 %v7412_v36 }
 0x6ff   :  { %v4518_v19 = vpop.f32.mrb[80].mxu1 }
 0x700   :  { %v4519_v52 = vpop.f32.mrb[81].mxu1 }
 0x701   :  { %v4520_v7 = vadd.f32 %v4519_v52, %v4518_v19  ;;  %v4521_v51 = vpop.f32.mrb[82].mxu1 }
 0x702   :  { %v4522_v28 = vpop.f32.mrb[83].mxu1 }
 0x703   :  { %v4337_v16 = vadd.f32 %v4520_v7, %v7467_v23  ;;  %v4523_v1 = vadd.f32 %v4522_v28, %v4521_v51 }
 0x705   :  { %v4340_v46 = vadd.f32 %v4523_v1, %v7467_v23  ;;  %4399 = vst [vmem:[%s7539_s6] sm:$0xff] %v4337_v16 }
 0x707   :  { %4400 = vst [vmem:[%s7539_s6 + $0x8] sm:$0xff] %v4340_v46  ;;  %v4524_v60 = vpop.f32.mrb[84].mxu1 }
 0x708   :  { %v4525_v37 = vpop.f32.mrb[85].mxu1 }
 0x709   :  { %v4526_v3 = vadd.f32 %v4525_v37, %v4524_v60  ;;  %v4527_v36 = vpop.f32.mrb[86].mxu1 }
 0x70a   :  { %v4528_v13 = vpop.f32.mrb[87].mxu1 }
 0x70b   :  { %v4345_v55 = vadd.f32 %v4526_v3, %v7467_v23  ;;  %v4529_v30 = vadd.f32 %v4528_v13, %v4527_v36 }
 0x70d   :  { %4401 = vst [vmem:[%s7539_s6 + $0x10] sm:$0xff] %v4345_v55  ;;  %v4348_v45 = vadd.f32 %v4529_v30, %v7467_v23 }
 0x70f   :  { %4402 = vst [vmem:[%s7539_s6 + $0x18] sm:$0xff] %v4348_v45  ;;  %v4530_v33 = vpop.f32.mrb[88].mxu1 }
 0x710   :  { %v4531_v39 = vpop.f32.mrb[89].mxu1 }
 0x711   :  { %v4532_v11 = vadd.f32 %v4531_v39, %v4530_v33  ;;  %v4533_v6 = vpop.f32.mrb[90].mxu1 }
 0x712   :  { %v4534_v38 = vpop.f32.mrb[91].mxu1 }
 0x713   :  { %v4353_v17 = vadd.f32 %v4532_v11, %v7467_v23  ;;  %v4535_v8 = vadd.f32 %v4534_v38, %v4533_v6 }
 0x715   :  { %4403 = vst [vmem:[%s7539_s6 + $0x20] sm:$0xff] %v4353_v17  ;;  %v4356_v2 = vadd.f32 %v4535_v8, %v7467_v23 }
 0x717   :  { %4404 = vst [vmem:[%s7539_s6 + $0x28] sm:$0xff] %v4356_v2  ;;  %v4536_v56 = vpop.f32.mrb[92].mxu1 }
 0x718   :  { %v4537_v42 = vpop.f32.mrb[93].mxu1 }
 0x719   :  { %v4538_v61 = vadd.f32 %v4537_v42, %v4536_v56  ;;  %v4539_v24 = vpop.f32.mrb[94].mxu1 }
 0x71a   :  { %v4540_v47 = vpop.f32.mrb[95].mxu1 }
 0x71b   :  { %v4361_v4 = vadd.f32 %v4538_v61, %v7467_v23  ;;  %v4541_v57 = vadd.f32 %v4540_v47, %v4539_v24 }
 0x71d   :  { %4405 = vst [vmem:[%s7539_s6 + $0x30] sm:$0xff] %v4361_v4  ;;  %v4364_v40 = vadd.f32 %v4541_v57, %v7467_v23 }
 0x71f   :  { %4406 = vst [vmem:[%s7539_s6 + $0x38] sm:$0xff] %v4364_v40  ;;  %v4542_v43 = vpop.f32.mrb[96].mxu1 }
 0x720   :  { %v4543_v48 = vpop.f32.mrb[97].mxu1 }
 0x721   :  { %v4544_v50 = vadd.f32 %v4543_v48, %v4542_v43  ;;  %v4545_v31 = vpop.f32.mrb[98].mxu1 }
 0x722   :  { %v4546_v9 = vpop.f32.mrb[99].mxu1 }
 0x723   :  { %v4369_v29 = vadd.f32 %v4544_v50, %v7467_v23  ;;  %v4547_v21 = vadd.f32 %v4546_v9, %v4545_v31 }
 0x725   :  { %4407 = vst [vmem:[%s7539_s6 + $0x40] sm:$0xff] %v4369_v29  ;;  %v4372_v32 = vadd.f32 %v4547_v21, %v7467_v23 }
 0x727   :  { %4408 = vst [vmem:[%s7539_s6 + $0x48] sm:$0xff] %v4372_v32  ;;  %v4548_v12 = vpop.f32.mrb[100].mxu1 }
 0x728   :  { %v4549_v22 = vpop.f32.mrb[101].mxu1 }
 0x729   :  { %v4550_v41 = vadd.f32 %v4549_v22, %v4548_v12  ;;  %v4551_v35 = vpop.f32.mrb[102].mxu1 }
 0x72a   :  { %v4552_v20 = vpop.f32.mrb[103].mxu1 }
 0x72b   :  { %v4377_v54 = vadd.f32 %v4550_v41, %v7467_v23  ;;  %v4553_v18 = vadd.f32 %v4552_v20, %v4551_v35 }
 0x72d   :  { %4409 = vst [vmem:[%s7539_s6 + $0x50] sm:$0xff] %v4377_v54  ;;  %v4380_v63 = vadd.f32 %v4553_v18, %v7467_v23 }
 0x72f   :  { %4410 = vst [vmem:[%s7539_s6 + $0x58] sm:$0xff] %v4380_v63  ;;  %v4554_v10 = vpop.f32.mrb[104].mxu1 }
 0x730   :  { %v4555_v0 = vpop.f32.mrb[105].mxu1 }
 0x731   :  { %v4556_v53 = vadd.f32 %v4555_v0, %v4554_v10  ;;  %v4557_v25 = vpop.f32.mrb[106].mxu1 }
 0x732   :  { %v4558_v58 = vpop.f32.mrb[107].mxu1 }
 0x733   :  { %v4385_v59 = vadd.f32 %v4556_v53, %v7467_v23  ;;  %v4559_v14 = vadd.f32 %v4558_v58, %v4557_v25 }
 0x735   :  { %4411 = vst [vmem:[%s7539_s6 + $0x60] sm:$0xff] %v4385_v59  ;;  %v4388_v15 = vadd.f32 %v4559_v14, %v7467_v23 }
 0x737   :  { %4412 = vst [vmem:[%s7539_s6 + $0x68] sm:$0xff] %v4388_v15  ;;  %v4560_v62 = vpop.f32.mrb[108].mxu1 }
 0x738   :  { %v4561_v26 = vpop.f32.mrb[109].mxu1 }
 0x739   :  { %v4562_v5 = vadd.f32 %v4561_v26, %v4560_v62  ;;  %v4563_v49 = vpop.f32.mrb[110].mxu1 }
 0x73a   :  { %v4564_v27 = vpop.f32.mrb[111].mxu1 }
 0x73b   :  { %v4393_v44 = vadd.f32 %v4562_v5, %v7467_v23  ;;  %v4565_v34 = vadd.f32 %v4564_v27, %v4563_v49 }
 0x73d   :  { %4413 = vst [vmem:[%s7539_s6 + $0x70] sm:$0xff] %v4393_v44  ;;  %v4396_v19 = vadd.f32 %v4565_v34, %v7467_v23 }
 0x73f   :  { %4414 = vst [vmem:[%s7539_s6 + $0x78] sm:$0xff] %v4396_v19 }
 0x740   :  { %4419 = vsyncmov [#allocation5] }
 0x743   :  { %s4420_s15 = vpop.sfrf %4419 }
 0x744   :  { %p4499_p0 = scmp.ne.s32.totalorder %s4420_s15, 0 }
 0x746   :  { %4424 = shalt.err (%p4499_p0)  }
 0x747   :  { %4426 = vsyncmov [#allocation5 + $0x1] }
 0x74a   :  { %s4427_s4 = vpop.sfrf %4426 }
 0x74b   :  { %p4500_p1 = scmp.ne.s32.totalorder %s4427_s4, 0 }
 0x74d   :  { %4431 = shalt.err (%p4500_p1)  }
 0x74e   :  { %4433 = vsyncmov [#allocation5 + $0x2] }
 0x751   :  { %s4434_s16 = vpop.sfrf %4433 }
 0x752   :  { %p4501_p2 = scmp.ne.s32.totalorder %s4434_s16, 0 }
 0x754   :  { %4438 = shalt.err (%p4501_p2)  }

</bundles_post_ra>
